<compile_context>
chip_gen: v7x
topology: tpu7x:2x2x1
jax: 0.10.0
libtpu: 0.0.40
codegen_flags: <defaults>
</compile_context>

<pallas_src>
import functools

import jax
import jax.numpy as jnp
from jax.experimental import pallas as pl
from jax.experimental.pallas import tpu as pltpu

D_IN = 784
D_H1 = 256
D_H2 = 100
D_H2_PAD = 128  # pad hidden-2 width 100 -> 128 for (8,128) lane alignment


def _round_up(n, m):
    return (n + m - 1) // m * m


def _leaky_relu(x, slope=0.2):
    return jnp.where(x > 0, x, slope * x)


def _pick_tb(batch, tb):
    """Clamp/shape the batch tile: multiple of 16 (bf16 sublane pairs), and
    keep the grid >= 4 steps for larger batches so the x DMA stays pipelined
    and both v7x TensorCores get >= 2 steps each."""
    tb = min(tb, _round_up(batch, 16))
    while tb > 256 and pl.cdiv(batch, tb) < 4:
        tb //= 2
    return max(tb, 16)


def discriminator_kernel(x_ref, w1_ref, b1_ref, w2_ref, b2_ref, w3_ref, b3_ref,
                         o_ref):
    # x tile arrives as f32; cast to bf16 in-kernel (VPU filler under the MXU).
    x = x_ref[...].astype(jnp.bfloat16)

    # layer1: Linear(784, 256) + LeakyReLU(0.2), f32 accumulation on the MXU.
    h1 = jnp.dot(x, w1_ref[...], preferred_element_type=jnp.float32) + b1_ref[...]
    h1 = _leaky_relu(h1).astype(jnp.bfloat16)

    # layer2: Linear(256, 128 [=100 zero-padded]) + LeakyReLU(0.2).
    # Dropout is identity in eval mode.
    h2 = jnp.dot(h1, w2_ref[...], preferred_element_type=jnp.float32) + b2_ref[...]
    h2 = _leaky_relu(h2)

    # layer3: Linear(128->1) as VPU multiply + XLU lane reduction (padded lanes
    # of h2 and w3 are exactly zero, so they contribute nothing). Dropout = id.
    h3 = jnp.sum(h2 * w3_ref[...], axis=-1, keepdims=True) + b3_ref[0]
    h3 = _leaky_relu(h3)

    # layer4: Sigmoid. exp + reciprocal both run on the EUP; the clamp keeps
    # the denominator finite for very negative pre-activations (and for any
    # masked garbage rows in the partial last tile).
    z = jnp.exp(jnp.minimum(-h3, 80.0))
    o_ref[...] = pl.reciprocal(1.0 + z, approx=True)


@functools.partial(jax.jit, static_argnames=("tb",))
def discriminator_forward(x, kernel_params, tb=512):
    """x: (B, 784) float32; kernel_params from prepare_kernel_params().
    Returns (B, 1) float32 in [0, 1]."""
    w1, b1, w2, b2, w3, b3 = kernel_params
    B = x.shape[0]
    tb = _pick_tb(B, tb)
    x = x.astype(jnp.float32)

    return pl.pallas_call(
        discriminator_kernel,
        out_shape=jax.ShapeDtypeStruct((B, 1), jnp.float32),
        grid_spec=pltpu.PrefetchScalarGridSpec(
            num_scalar_prefetch=0,
            grid=(pl.cdiv(B, tb),),
            in_specs=[
                pl.BlockSpec((tb, D_IN), lambda i: (i, 0)),       # x tile (pipelined)
                pl.BlockSpec((D_IN, D_H1), lambda i: (0, 0)),     # weights: VMEM-resident
                pl.BlockSpec((1, D_H1), lambda i: (0, 0)),
                pl.BlockSpec((D_H1, D_H2_PAD), lambda i: (0, 0)),
                pl.BlockSpec((1, D_H2_PAD), lambda i: (0, 0)),
                pl.BlockSpec((1, D_H2_PAD), lambda i: (0, 0)),    # w3 as (1,128) row
                pl.BlockSpec(memory_space=pltpu.MemorySpace.SMEM),  # b3 scalar
            ],
            out_specs=pl.BlockSpec((tb, 1), lambda i: (i, 0)),
        ),
        compiler_params=pltpu.CompilerParams(
            dimension_semantics=("parallel",)),
    )(x, w1, b1, w2, b2, w3, b3)


def init_params(key):
    """f32 params mimicking nn.Linear default init; W stored as (in, out)."""
    dims = [(D_IN, D_H1), (D_H1, D_H2), (D_H2, 1)]
    params = []
    for i, (fan_in, fan_out) in enumerate(dims):
        kw, kb = jax.random.split(jax.random.fold_in(key, i))
        bound = 1.0 / jnp.sqrt(jnp.float32(fan_in))
        w = jax.random.uniform(kw, (fan_in, fan_out), jnp.float32, -bound, bound)
        b = jax.random.uniform(kb, (1, fan_out), jnp.float32, -bound, bound)
        params += [w, b]
    return tuple(params)


def prepare_kernel_params(params):
    """Cast big weights to bf16, zero-pad the 100-wide hidden layer to 128, lay
    w3 out as a (1, 128) f32 row for the in-kernel lane reduction, and flatten
    b3 to a (1,) scalar for SMEM."""
    w1, b1, w2, b2, w3, b3 = params
    pad = D_H2_PAD - D_H2
    w2p = jnp.pad(w2, ((0, 0), (0, pad)))
    b2p = jnp.pad(b2, ((0, 0), (0, pad)))
    w3p = jnp.pad(w3.T, ((0, 0), (0, pad)))  # (1, 128); padded entries are zero
    return (w1.astype(jnp.bfloat16), b1.astype(jnp.float32),
            w2p.astype(jnp.bfloat16), b2p.astype(jnp.float32),
            w3p.astype(jnp.float32), b3.reshape(-1).astype(jnp.float32))


def reference_forward(x, params):
    """Plain-JAX reference matching the kernel's bf16-rounding of x/w1/w2/h1."""
    w1, b1, w2, b2, w3, b3 = params
    f32 = jnp.float32
    xb = x.astype(jnp.bfloat16).astype(f32)
    w1b = w1.astype(jnp.bfloat16).astype(f32)
    w2b = w2.astype(jnp.bfloat16).astype(f32)
    h1 = _leaky_relu(jnp.dot(xb, w1b, precision="highest") + b1)
    h1 = h1.astype(jnp.bfloat16).astype(f32)
    h2 = _leaky_relu(jnp.dot(h1, w2b, precision="highest") + b2)
    h3 = _leaky_relu(jnp.dot(h2, w3, precision="highest") + b3)  # dropout = id (eval)
    return jax.nn.sigmoid(h3)


if __name__ == "__main__":
    key = jax.random.PRNGKey(0)
    k_x, k_p = jax.random.split(key)

    # B=500 is deliberately not a tile multiple: with tb picked as 256 this
    # exercises a 2-step grid with a masked partial last block (no padding).
    B = 500
    x = jax.random.normal(k_x, (B, D_IN), jnp.float32)
    params = init_params(k_p)
    kparams = prepare_kernel_params(params)

    out = discriminator_forward(x, kparams)
    out = jax.block_until_ready(out)

    ref = reference_forward(x, params)
    assert out.shape == (B, 1), out.shape
    assert bool(jnp.all(jnp.isfinite(out)))
    assert jnp.allclose(out, ref, atol=1e-2, rtol=1e-2), (
        "max abs err = %f" % float(jnp.max(jnp.abs(out - ref))))

    # TODO(synk): training-mode Dropout(0.2) would need pltpu.prng_seed /
    # pltpu.prng_random_bits; eval-mode forward (identity) is implemented here.
    print("KERNEL_OK")
</pallas_src>

<mosaic_0001>
module attributes {stable_mosaic.version = 11 : i64} {
  func.func @discriminator_kernel(%arg0: i32, %arg1: memref<256x784xf32, #tpu.memory_space<vmem>>, %arg2: memref<784x256xbf16, #tpu.memory_space<vmem>>, %arg3: memref<1x256xf32, #tpu.memory_space<vmem>>, %arg4: memref<256x128xbf16, #tpu.memory_space<vmem>>, %arg5: memref<1x128xf32, #tpu.memory_space<vmem>>, %arg6: memref<1x128xf32, #tpu.memory_space<vmem>>, %arg7: memref<1xf32, #tpu.memory_space<smem>>, %arg8: memref<256x1xf32, #tpu.memory_space<vmem>>) attributes {dimension_semantics = [#tpu.dimension_semantics<parallel>], iteration_bounds = array<i64: 2>, scalar_prefetch = 0 : i64, scratch_operands = 0 : i64, tpu.core_type = #tpu.core_type<tc>, window_params = [{transform_indices = @transform_0, window_bounds = array<i64: 256, 784>}, {pipeline_mode = #tpu.pipeline_mode<synchronous>, transform_indices = @transform_1, window_bounds = array<i64: 784, 256>}, {pipeline_mode = #tpu.pipeline_mode<synchronous>, transform_indices = @transform_2, window_bounds = array<i64: 1, 256>}, {pipeline_mode = #tpu.pipeline_mode<synchronous>, transform_indices = @transform_3, window_bounds = array<i64: 256, 128>}, {pipeline_mode = #tpu.pipeline_mode<synchronous>, transform_indices = @transform_4, window_bounds = array<i64: 1, 128>}, {pipeline_mode = #tpu.pipeline_mode<synchronous>, transform_indices = @transform_5, window_bounds = array<i64: 1, 128>}, {transform_indices = @transform_6, window_bounds = array<i64: 1>}, {transform_indices = @transform_7, window_bounds = array<i64: 256, 1>}]} {
    %c0 = arith.constant 0 : index
    %c0_0 = arith.constant 0 : index
    %0 = vector.load %arg1[%c0, %c0_0] : memref<256x784xf32, #tpu.memory_space<vmem>>, vector<256x784xf32>
    %1 = arith.truncf %0 : vector<256x784xf32> to vector<256x784xbf16>
    %c0_1 = arith.constant 0 : index
    %c0_2 = arith.constant 0 : index
    %2 = vector.load %arg2[%c0_1, %c0_2] : memref<784x256xbf16, #tpu.memory_space<vmem>>, vector<784x256xbf16>
    %cst = arith.constant dense<0.000000e+00> : vector<256x256xf32>
    %3 = tpu.matmul %1, %2, %cst {dimension_numbers = #tpu.dot_dimension_numbers<[1], [0], [0], [1], [0, 0, 1, 1], [], []>} : vector<256x784xbf16>, vector<784x256xbf16>, vector<256x256xf32> -> vector<256x256xf32>
    %c0_3 = arith.constant 0 : index
    %c0_4 = arith.constant 0 : index
    %4 = vector.load %arg3[%c0_3, %c0_4] : memref<1x256xf32, #tpu.memory_space<vmem>>, vector<1x256xf32>
    %5 = vector.broadcast %4 : vector<1x256xf32> to vector<256x256xf32>
    %6 = arith.addf %3, %5 : vector<256x256xf32>
    %cst_5 = arith.constant 0.000000e+00 : f32
    %7 = vector.broadcast %cst_5 : f32 to vector<256x256xf32>
    %8 = arith.cmpf ogt, %6, %7 : vector<256x256xf32>
    %cst_6 = arith.constant 2.000000e-01 : f32
    %9 = vector.broadcast %cst_6 : f32 to vector<256x256xf32>
    %10 = arith.mulf %9, %6 : vector<256x256xf32>
    %11 = arith.select %8, %6, %10 : vector<256x256xi1>, vector<256x256xf32>
    %12 = arith.truncf %11 : vector<256x256xf32> to vector<256x256xbf16>
    %c0_7 = arith.constant 0 : index
    %c0_8 = arith.constant 0 : index
    %13 = vector.load %arg4[%c0_7, %c0_8] : memref<256x128xbf16, #tpu.memory_space<vmem>>, vector<256x128xbf16>
    %cst_9 = arith.constant dense<0.000000e+00> : vector<256x128xf32>
    %14 = tpu.matmul %12, %13, %cst_9 {dimension_numbers = #tpu.dot_dimension_numbers<[1], [0], [0], [1], [0, 0, 1, 1], [], []>} : vector<256x256xbf16>, vector<256x128xbf16>, vector<256x128xf32> -> vector<256x128xf32>
    %c0_10 = arith.constant 0 : index
    %c0_11 = arith.constant 0 : index
    %15 = vector.load %arg5[%c0_10, %c0_11] : memref<1x128xf32, #tpu.memory_space<vmem>>, vector<1x128xf32>
    %16 = vector.broadcast %15 : vector<1x128xf32> to vector<256x128xf32>
    %17 = arith.addf %14, %16 : vector<256x128xf32>
    %cst_12 = arith.constant 0.000000e+00 : f32
    %18 = vector.broadcast %cst_12 : f32 to vector<256x128xf32>
    %19 = arith.cmpf ogt, %17, %18 : vector<256x128xf32>
    %cst_13 = arith.constant 2.000000e-01 : f32
    %20 = vector.broadcast %cst_13 : f32 to vector<256x128xf32>
    %21 = arith.mulf %20, %17 : vector<256x128xf32>
    %22 = arith.select %19, %17, %21 : vector<256x128xi1>, vector<256x128xf32>
    %c0_14 = arith.constant 0 : index
    %c0_15 = arith.constant 0 : index
    %23 = vector.load %arg6[%c0_14, %c0_15] : memref<1x128xf32, #tpu.memory_space<vmem>>, vector<1x128xf32>
    %24 = vector.broadcast %23 : vector<1x128xf32> to vector<256x128xf32>
    %25 = arith.mulf %22, %24 : vector<256x128xf32>
    %cst_16 = arith.constant dense<0.000000e+00> : vector<256xf32>
    %26 = vector.multi_reduction <add>, %25, %cst_16 [1] : vector<256x128xf32> to vector<256xf32>
    %27 = vector.shape_cast %26 : vector<256xf32> to vector<256x1xf32>
    %c0_17 = arith.constant 0 : index
    %28 = memref.load %arg7[%c0_17] : memref<1xf32, #tpu.memory_space<smem>>
    %29 = vector.broadcast %28 : f32 to vector<256x1xf32>
    %30 = arith.addf %27, %29 : vector<256x1xf32>
    %cst_18 = arith.constant 0.000000e+00 : f32
    %31 = vector.broadcast %cst_18 : f32 to vector<256x1xf32>
    %32 = arith.cmpf ogt, %30, %31 : vector<256x1xf32>
    %cst_19 = arith.constant 2.000000e-01 : f32
    %33 = vector.broadcast %cst_19 : f32 to vector<256x1xf32>
    %34 = arith.mulf %33, %30 : vector<256x1xf32>
    %35 = arith.select %32, %30, %34 : vector<256x1xi1>, vector<256x1xf32>
    %cst_20 = arith.constant 0.000000e+00 : f32
    %36 = vector.broadcast %cst_20 : f32 to vector<256x1xf32>
    %37 = arith.subf %36, %35 : vector<256x1xf32>
    %cst_21 = arith.constant 8.000000e+01 : f32
    %38 = vector.broadcast %cst_21 : f32 to vector<256x1xf32>
    %39 = arith.minimumf %37, %38 : vector<256x1xf32>
    %40 = math.exp %39 : vector<256x1xf32>
    %cst_22 = arith.constant 1.000000e+00 : f32
    %41 = vector.broadcast %cst_22 : f32 to vector<256x1xf32>
    %42 = arith.addf %41, %40 : vector<256x1xf32>
    %43 = tpu.reciprocal %42 {approx = true} : vector<256x1xf32> -> vector<256x1xf32>
    %c0_23 = arith.constant 0 : index
    %c0_24 = arith.constant 0 : index
    %44 = vector.load %arg8[%c0_23, %c0_24] : memref<256x1xf32, #tpu.memory_space<vmem>>, vector<256x1xf32>
    tpu.vector_store %arg8[%c0_23, %c0_24], %43 {strides = array<i32>} : memref<256x1xf32, #tpu.memory_space<vmem>>, vector<256x1xf32>,
    return
  }
  func.func @transform_0(%arg0: i32) -> (i32, i32) {
    %c0_i32 = arith.constant 0 : i32
    %c0_i32_0 = arith.constant 0 : i32
    return %arg0, %c0_i32 : i32, i32
  }
  func.func @transform_1(%arg0: i32) -> (i32, i32) {
    %c0_i32 = arith.constant 0 : i32
    %c0_i32_0 = arith.constant 0 : i32
    %c0_i32_1 = arith.constant 0 : i32
    return %c0_i32, %c0_i32_0 : i32, i32
  }
  func.func @transform_2(%arg0: i32) -> (i32, i32) {
    %c0_i32 = arith.constant 0 : i32
    %c0_i32_0 = arith.constant 0 : i32
    %c0_i32_1 = arith.constant 0 : i32
    return %c0_i32, %c0_i32_0 : i32, i32
  }
  func.func @transform_3(%arg0: i32) -> (i32, i32) {
    %c0_i32 = arith.constant 0 : i32
    %c0_i32_0 = arith.constant 0 : i32
    %c0_i32_1 = arith.constant 0 : i32
    return %c0_i32, %c0_i32_0 : i32, i32
  }
  func.func @transform_4(%arg0: i32) -> (i32, i32) {
    %c0_i32 = arith.constant 0 : i32
    %c0_i32_0 = arith.constant 0 : i32
    %c0_i32_1 = arith.constant 0 : i32
    return %c0_i32, %c0_i32_0 : i32, i32
  }
  func.func @transform_5(%arg0: i32) -> (i32, i32) {
    %c0_i32 = arith.constant 0 : i32
    %c0_i32_0 = arith.constant 0 : i32
    %c0_i32_1 = arith.constant 0 : i32
    return %c0_i32, %c0_i32_0 : i32, i32
  }
  func.func @transform_6(%arg0: i32) -> i32 {
    %c0_i32 = arith.constant 0 : i32
    %c0_i32_0 = arith.constant 0 : i32
    return %c0_i32 : i32
  }
  func.func @transform_7(%arg0: i32) -> (i32, i32) {
    %c0_i32 = arith.constant 0 : i32
    %c0_i32_0 = arith.constant 0 : i32
    return %arg0, %c0_i32 : i32, i32
  }
}

</mosaic_0001>

<bundles_post_ra>
// kernel: discriminator_forward.1
= control target key start
LH: loop header
LB: loop body
LE: loop exit
PB: predicated region body
PF: predicated region fallthrough
CT: control target
= control target key end

     0   :  { %s5894_s0 = inlined_call_operand.vmem [shape: f32[500,784], index: 0, kind: input, shape index: {}]   ;;  %s5895_s1 = inlined_call_operand.vmem [shape: bf16[784,256], index: 1, kind: input, shape index: {}]   ;;  %s5896_s2 = inlined_call_operand.vmem [shape: f32[1,256], index: 2, kind: input, shape index: {}]   ;;  %s5897_s3 = inlined_call_operand.vmem [shape: bf16[256,128], index: 3, kind: input, shape index: {}]   ;;  %s5898_s4 = inlined_call_operand.vmem [shape: f32[1,128], index: 4, kind: input, shape index: {}]   ;;  %s5899_s5 = inlined_call_operand.vmem [shape: f32[1,128], index: 5, kind: input, shape index: {}]   ;;  %s5900_s6 = inlined_call_operand.<no memory space> [shape: f32[1], index: 6, kind: input, shape index: {}]   ;;  %s5901_s7 = inlined_call_operand.vmem [shape: f32[500,1], index: 7, kind: output, shape index: {}]  }
   0x1   :  { %12 = sst [smem:[#allocation2]] %s5900_s6 }
   0x2   :  { %s4552_s26 = smov 0   ;;  %s4554_s27 = smov 0  }
   0x3   :  { %s4556_s28 = smov 0  }
   0x4 LB: > { %s4565_s6 = sadd.s32 4294967295, %s4474_s28   ;;  %s4567_s29 = sadd.s32 1, %s4474_s28   ;;  %s4474_s28 = sphi %s4556_s28, %s5938_s28   ;;  %s4470_s27 = sphi %s4554_s27, %s5937_s27   ;;  %s4466_s26 = sphi %s4552_s26, %s5936_s26  }
   0x5   : > { %s174_s30 = ssub.s32 %s4474_s28, %s4567_s29  ;;  %s177_s8 = sadd.s32 1, %s4470_s27 }
   0x6   : > { %p175_p0 = scmp.eq.s32.totalorder %s174_s30, 0  ;;  %p187_p1 = scmp.ne.s32.totalorder %s4470_s27, %s4466_s26 }
   0x7   : > { %p188_p2 = scmp.eq.s32.totalorder %s4565_s6, 1  ;;  %p3483_p3 = scmp.ge.s32.totalorder %s4474_s28, 1 }
   0x8   : > { %s4575_s9 = scalar_select %p175_p0, %s4470_s27, %s177_s8  }
   0x9   : > { %p4577_p4 = por %p188_p2, %p187_p1  ;;  %p250_p5 = scmp.lt.s32.totalorder %s4474_s28, 3 }
   0xb   : > { %p251_p6 = pnand %p3483_p3, %p250_p5 }
   0xd   : > { %254 = sbr.rel (%p251_p6) target bundleno = 1078 (0x436), region = 48 }
  0x14   : > { %v4584_v0 = vld [vmem:[%s5895_s1 + $0x104] ss:$8 sps:$4 sm:$0xff]   ;;  %v4589_v1 = vld [vmem:[%s5895_s1 + $0x100] ss:$8 sps:$4 sm:$0xff]   ;;  %v4595_v2 = vld [vmem:[%s5895_s1 + $0x114] ss:$8 sps:$4 sm:$0xff]  }
  0x15   : > { %1488 = vmatprep.subr.bf16.mxu0 %v4584_v0  ;;  %v4601_v3 = vld [vmem:[%s5895_s1 + $0x110] ss:$8 sps:$4 sm:$0xff]   ;;  %v4607_v4 = vld [vmem:[%s5895_s1 + $0x124] ss:$8 sps:$4 sm:$0xff]   ;;  %s4610_s21 = sshll.u32 %s4565_s6, 5  ;;  %vm1246_vm0 = vcmask 130048  }
  0x16   : > { %1489 = vmatpush1.bf16.msra.mxu0 %v4589_v1  ;;  %v4616_v5 = vld [vmem:[%s5895_s1 + $0x120] ss:$8 sps:$4 sm:$0xff]   ;;  %p293_p7 = scmp.lt.s32.totalorder %s4610_s21, 62  ;;  %v4623_v6 = vld [vmem:[%s5895_s1 + $0x134] ss:$8 sps:$4 sm:$0xff]   ;;  %s2786_s24 = sld [smem:[#allocation2]] }
  0x17   : > { %1490 = vmatprep.subr.bf16.mxu0 %v4595_v2  ;;  %v4629_v7 = vld [vmem:[%s5895_s1 + $0x130] ss:$8 sps:$4 sm:$0xff]   ;;  %v4636_v8 = vld [vmem:[%s5895_s1 + $0x144] ss:$8 sps:$4 sm:$0xff]   ;;  %v4642_v9 = vld [vmem:[%s5895_s1 + $0x140] ss:$8 sps:$4 sm:$0xff]  }
  0x18   : > { %s294_s8 = scalar_select %p293_p7, %s4610_s21, 62  ;;  %v4648_v10 = vld [vmem:[%s5895_s1 + $0x154] ss:$8 sps:$4 sm:$0xff]   ;;  %v4654_v11 = vld [vmem:[%s5895_s1 + $0x150] ss:$8 sps:$4 sm:$0xff]  }
  0x19   : > { %v4659_v12 = vld [vmem:[%s5895_s1 + $0x164] ss:$8 sps:$4 sm:$0xff]   ;;  %v4673_v14 = vld [vmem:[%s5895_s1 + $0x160] ss:$8 sps:$4 sm:$0xff]   ;;  %v4685_v18 = vld [vmem:[%s5895_s1 + $0x174] ss:$8 sps:$4 sm:$0xff]  }
  0x1a   : > { %1491 = vmatpush1.bf16.msra.mxu0 %v4601_v3  ;;  %s4039_s15 = smul.u32 56, %s294_s8  ;;  %v4174_v13 = vld [vmem:[%s5895_s1 + $0x4] ss:$8 sps:$4 sm:$0xff]   ;;  %v4178_v15 = vld [vmem:[%s5895_s1] ss:$8 sps:$4 sm:$0xff]   ;;  %s284_s28 = sand.u32 1, %s4466_s26  }
  0x1b   : > { %1492 = vmatprep.subr.bf16.mxu0 %v4607_v4  ;;  %1295 = vmatprep.subr.bf16.mxu1 %v4174_v13  ;;  %v4180_v20 = vld [vmem:[%s5895_s1 + $0x14] ss:$8 sps:$4 sm:$0xff]   ;;  %v4693_v21 = vld [vmem:[%s5895_s1 + $0x170] ss:$8 sps:$4 sm:$0xff]   ;;  %v4186_v23 = vld [vmem:[%s5895_s1 + $0x24] ss:$8 sps:$4 sm:$0xff]  }
  0x1c   : > { %s4664_s25 = scalar_lea.vmem %s5894_s0, %s4039_s15  ;;  %1296 = vmatpush1.bf16.msra.mxu1 %v4178_v15  ;;  %v4185_v22 = vld [vmem:[%s5895_s1 + $0x10] ss:$8 sps:$4 sm:$0xff]   ;;  %v4706_v24 = vld [vmem:[%s5895_s1 + $0x184] ss:$8 sps:$4 sm:$0xff]   ;;  %v4191_v25 = vld [vmem:[%s5895_s1 + $0x20] ss:$8 sps:$4 sm:$0xff]  }
  0x1d   : > { %v313_v16 = vld [vmem:[%s4664_s25 + $0x18] sm:$0xff]  ;;  %v320_v17 = vld [vmem:[%s4664_s25 + $0x50] sm:$0xff]  ;;  %1297 = vmatprep.subr.bf16.mxu1 %v4180_v20  ;;  %v4718_v27 = vld [vmem:[%s5895_s1 + $0x180] ss:$8 sps:$4 sm:$0xff]   ;;  %s3484_s30 = sshll.u32 %s284_s28, 8  ;;  %s3149_s8 = ssub.s32 (%p4577_p4), 63, %s4610_s21 }
  0x1e   : > { %1493 = vmatpush1.bf16.msra.mxu0 %v4616_v5  ;;  %v537_v19 = vpack.c.bf16 %v320_v17, %v313_v16  ;;  %v4192_v26 = vld [vmem:[%s5895_s1 + $0x34] ss:$8 sps:$4 sm:$0xff]   ;;  %v4197_v29 = vld [vmem:[%s5895_s1 + $0x30] ss:$8 sps:$4 sm:$0xff]   ;;  %v4198_v30 = vld [vmem:[%s5895_s1 + $0x44] ss:$8 sps:$4 sm:$0xff]  }
  0x1f   : > { %1494 = vmatprep.subr.bf16.mxu0 %v4623_v6  ;;  %v4724_v28 = vld [vmem:[%s5895_s1 + $0x194] ss:$8 sps:$4 sm:$0xff]   ;;  %v4736_v31 = vld [vmem:[%s5895_s1 + $0x190] ss:$8 sps:$4 sm:$0xff]   ;;  %v4742_v32 = vld [vmem:[%s5895_s1 + $0x1a4] ss:$8 sps:$4 sm:$0xff]  }
  0x20   : > { %1520 = vmatprep.mubr.bf16.mxu0 %v537_v19  ;;  %1298 = vmatpush1.bf16.msra.mxu1 %v4185_v22  ;;  %v4203_v33 = vld [vmem:[%s5895_s1 + $0x40] ss:$8 sps:$4 sm:$0xff]   ;;  %v4204_v34 = vld [vmem:[%s5895_s1 + $0x54] ss:$8 sps:$4 sm:$0xff]   ;;  %v4209_v37 = vld [vmem:[%s5895_s1 + $0x50] ss:$8 sps:$4 sm:$0xff]  }
  0x21   : > { %1299 = vmatprep.subr.bf16.mxu1 %v4186_v23  ;;  %v4754_v35 = vld [vmem:[%s5895_s1 + $0x1a0] ss:$8 sps:$4 sm:$0xff]   ;;  %v4759_v36 = vld [vmem:[%s5895_s1 + $0x1b4] ss:$8 sps:$4 sm:$0xff]   ;;  %v4210_v38 = vld [vmem:[%s5895_s1 + $0x64] ss:$8 sps:$4 sm:$0xff]  }
  0x22   : > { %1495 = vmatpush1.bf16.msra.mxu0 %v4629_v7  ;;  %v4772_v39 = vld [vmem:[%s5895_s1 + $0x1b0] ss:$8 sps:$4 sm:$0xff]   ;;  %v4778_v40 = vld [vmem:[%s5895_s1 + $0x1c4] ss:$8 sps:$4 sm:$0xff]   ;;  %v4215_v41 = vld [vmem:[%s5895_s1 + $0x60] ss:$8 sps:$4 sm:$0xff]  }
  0x23   : > { %1496 = vmatprep.subr.bf16.mxu0 %v4636_v8  ;;  %v4216_v42 = vld [vmem:[%s5895_s1 + $0x74] ss:$8 sps:$4 sm:$0xff]   ;;  %v4790_v43 = vld [vmem:[%s5895_s1 + $0x1c0] ss:$8 sps:$4 sm:$0xff]   ;;  %v4221_v45 = vld [vmem:[%s5895_s1 + $0x70] ss:$8 sps:$4 sm:$0xff]  }
  0x24   : > { %1300 = vmatpush1.bf16.msra.mxu1 %v4191_v25  ;;  %v4796_v44 = vld [vmem:[%s5895_s1 + $0x1d4] ss:$8 sps:$4 sm:$0xff]   ;;  %v4222_v46 = vld [vmem:[%s5895_s1 + $0x84] ss:$8 sps:$4 sm:$0xff]   ;;  %v4808_v47 = vld [vmem:[%s5895_s1 + $0x1d0] ss:$8 sps:$4 sm:$0xff]  }
  0x25   : > { %1301 = vmatprep.subr.bf16.mxu1 %v4192_v26  ;;  %v4814_v48 = vld [vmem:[%s5895_s1 + $0x1e4] ss:$8 sps:$4 sm:$0xff]   ;;  %v4227_v49 = vld [vmem:[%s5895_s1 + $0x80] ss:$8 sps:$4 sm:$0xff]   ;;  %v4228_v50 = vld [vmem:[%s5895_s1 + $0x94] ss:$8 sps:$4 sm:$0xff]  }
  0x26   : > { %1497 = vmatpush1.bf16.msra.mxu0 %v4642_v9  ;;  %v4826_v51 = vld [vmem:[%s5895_s1 + $0x1e0] ss:$8 sps:$4 sm:$0xff]   ;;  %v4832_v52 = vld [vmem:[%s5895_s1 + $0x1f4] ss:$8 sps:$4 sm:$0xff]   ;;  %v4233_v53 = vld [vmem:[%s5895_s1 + $0x90] ss:$8 sps:$4 sm:$0xff]  }
  0x27   : > { %1498 = vmatprep.subr.bf16.mxu0 %v4648_v10  ;;  %v4840_v54 = vld [vmem:[%s5895_s1 + $0x1f0] ss:$8 sps:$4 sm:$0xff]   ;;  %v4234_v56 = vld [vmem:[%s5895_s1 + $0xa4] ss:$8 sps:$4 sm:$0xff]   ;;  %v4239_v61 = vld [vmem:[%s5895_s1 + $0xa0] ss:$8 sps:$4 sm:$0xff]  }
  0x28   : > { %1302 = vmatpush1.bf16.msra.mxu1 %v4197_v29  ;;  %v312_v55 = vld [vmem:[%s4664_s25 + $0x10] sm:$0xff]  ;;  %v319_v57 = vld [vmem:[%s4664_s25 + $0x48] sm:$0xff]  ;;  %v334_v60 = vld [vmem:[%s4664_s25 + $0xc0] sm:$0xff]  ;;  %s5667_s26 = scalar_lea.vmem [#allocation3], %s3484_s30   ;;  %s3636_s11 = sshll.u32 (%p4577_p4), %s4565_s6, 8 }
  0x29   : > { %1303 = vmatprep.subr.bf16.mxu1 %v4198_v30  ;;  %v4184_v58 = vld [vmem:[%s5895_s1 + $0x204] ss:$8 sps:$4 sm:$0xff]   ;;  %v4240_v62 = vld [vmem:[%s5895_s1 + $0xb4] ss:$8 sps:$4 sm:$0xff]   ;;  %v536_v63 = vpack.c.bf16 %v319_v57, %v312_v55  ;;  %v4182_v13 = vld [vmem:[%s5895_s1 + $0x200] ss:$8 sps:$4 sm:$0xff]   ;;  %s5762_s14 = scalar_lea.vmem (%p4577_p4), %s5901_s7, %s3636_s11  }
  0x2a   : > { %1499 = vmatpush1.bf16.msra.mxu0 %v4654_v11  ;;  %v327_v59 = vld [vmem:[%s4664_s25 + $0x88] sm:$0xff]  ;;  %v4190_v16 = vld [vmem:[%s5895_s1 + $0x214] ss:$8 sps:$4 sm:$0xff]   ;;  %v4245_v17 = vld [vmem:[%s5895_s1 + $0xb0] ss:$8 sps:$4 sm:$0xff]   ;;  %p3150_p8 = scmp.lt.s32.totalorder (%p4577_p4), %s3149_s8, 32 }
  0x2b   : > { %1500 = vmatprep.subr.bf16.mxu0 %v4659_v12  ;;  %v544_v15 = vpack.c.bf16 %v334_v60, %v327_v59  ;;  %v4188_v19 = vld [vmem:[%s5895_s1 + $0x210] ss:$8 sps:$4 sm:$0xff]   ;;  %v326_v20 = vld [vmem:[%s4664_s25 + $0x80] sm:$0xff] }
  0x2c   : > { %1304 = vmatpush1.bf16.msra.mxu1 %v4203_v33  ;;  %v4246_v22 = vld [vmem:[%s5895_s1 + $0xc4] ss:$8 sps:$4 sm:$0xff]   ;;  %v333_v23 = vld [vmem:[%s4664_s25 + $0xb8] sm:$0xff]  ;;  %v348_v29 = vld [vmem:[%s4664_s25 + $0x130] sm:$0xff] }
  0x2d   : > { %1305 = vmatprep.subr.bf16.mxu1 %v4204_v34  ;;  %v4196_v25 = vld [vmem:[%s5895_s1 + $0x224] ss:$8 sps:$4 sm:$0xff]   ;;  %v341_v26 = vld [vmem:[%s4664_s25 + $0xf8] sm:$0xff]  ;;  %v4251_v30 = vld [vmem:[%s5895_s1 + $0xc0] ss:$8 sps:$4 sm:$0xff]   ;;  %v543_v34 = vpack.c.bf16 %v333_v23, %v326_v20 }
  0x2e   : > { %1501 = vmatpush1.bf16.msra.mxu0 %v4673_v14  ;;  %v4252_v33 = vld [vmem:[%s5895_s1 + $0xd4] ss:$8 sps:$4 sm:$0xff]   ;;  %v4208_v57 = vld [vmem:[%s5895_s1 + $0x244] ss:$8 sps:$4 sm:$0xff]   ;;  %v4263_v60 = vld [vmem:[%s5895_s1 + $0xe0] ss:$8 sps:$4 sm:$0xff]  }
  0x2f   : > { %1502 = vmatprep.subr.bf16.mxu0 %v4685_v18  ;;  %v362_v59 = vld [vmem:[%s4664_s25 + $0x1a0] sm:$0xff]  ;;  %v325_v20 = vld [vmem:[%s4664_s25 + $0x78] sm:$0xff] }
  0x30   : > { %1306 = vmatpush1.bf16.msra.mxu1 %v4209_v37  ;;  %v4194_v37 = vld [vmem:[%s5895_s1 + $0x220] ss:$8 sps:$4 sm:$0xff]   ;;  %v4212_v23 = vld [vmem:[%s5895_s1 + $0x250] ss:$8 sps:$4 sm:$0xff]  }
  0x31   : > { %1307 = vmatprep.subr.bf16.mxu1 %v4210_v38  ;;  %v551_v38 = vpack.c.bf16 %v348_v29, %v341_v26  ;;  %v361_v26 = vld [vmem:[%s4664_s25 + $0x198] sm:$0xff] }
  0x32   : > { %1503 = vmatpush1.bf16.msra.mxu0 %v4693_v21 }
  0x33   : > { %1504 = vmatprep.subr.bf16.mxu0 %v4706_v24 }
  0x34   : > { %1308 = vmatpush1.bf16.msra.mxu1 %v4215_v41  ;;  %v4202_v41 = vld [vmem:[%s5895_s1 + $0x234] ss:$8 sps:$4 sm:$0xff]  }
  0x35   : > { %1309 = vmatprep.subr.bf16.mxu1 %v4216_v42  ;;  %v4257_v42 = vld [vmem:[%s5895_s1 + $0xd0] ss:$8 sps:$4 sm:$0xff]  }
  0x36   : > { %1505 = vmatpush1.bf16.msra.mxu0 %v4718_v27 }
  0x37   : > { %1506 = vmatprep.subr.bf16.mxu0 %v4724_v28 }
  0x38   : > { %1310 = vmatpush1.bf16.msra.mxu1 %v4221_v45  ;;  %v4258_v45 = vld [vmem:[%s5895_s1 + $0xe4] ss:$8 sps:$4 sm:$0xff]  }
  0x39   : > { %1311 = vmatprep.subr.bf16.mxu1 %v4222_v46  ;;  %v311_v46 = vld [vmem:[%s4664_s25 + $0x8] sm:$0xff] }
  0x3a   : > { %1507 = vmatpush1.bf16.msra.mxu0 %v4736_v31 }
  0x3b   : > { %1508 = vmatprep.subr.bf16.mxu0 %v4742_v32 }
  0x3c   : > { %1312 = vmatpush1.bf16.msra.mxu1 %v4227_v49  ;;  %v318_v49 = vld [vmem:[%s4664_s25 + $0x40] sm:$0xff] }
  0x3d   : > { %1313 = vmatprep.subr.bf16.mxu1 %v4228_v50  ;;  %v4200_v50 = vld [vmem:[%s5895_s1 + $0x230] ss:$8 sps:$4 sm:$0xff]   ;;  %v535_v55 = vpack.c.bf16 %v318_v49, %v311_v46  ;;  %v339_v49 = vld [vmem:[%s4664_s25 + $0xe8] sm:$0xff] }
  0x3e   : > { %1509 = vmatpush1.bf16.msra.mxu0 %v4754_v35  ;;  %v324_v46 = vld [vmem:[%s4664_s25 + $0x70] sm:$0xff] }
  0x3f   : > { %1510 = vmatprep.subr.bf16.mxu0 %v4759_v36  ;;  %1327 = vmatprep.mubr.bf16.mxu1 %v535_v55  ;;  %v368_v55 = vld [vmem:[%s4664_s25 + $0x1d0] sm:$0xff] }
  0x40   : > { %1314 = vmatpush1.bf16.msra.mxu1 %v4233_v53  ;;  %v340_v53 = vld [vmem:[%s4664_s25 + $0xf0] sm:$0xff] }
  0x41   : > { %1315 = vmatprep.subr.bf16.mxu1 %v4234_v56  ;;  %v347_v56 = vld [vmem:[%s4664_s25 + $0x128] sm:$0xff] }
  0x42   : > { %1511 = vmatpush1.bf16.msra.mxu0 %v4772_v39 }
  0x43   : > { %1512 = vmatprep.subr.bf16.mxu0 %v4778_v40 }
  0x44   : > { %1316 = vmatpush1.bf16.msra.mxu1 %v4239_v61  ;;  %v4264_v61 = vld [vmem:[%s5895_s1 + $0xf4] ss:$8 sps:$4 sm:$0xff]  }
  0x45   : > { %1317 = vmatprep.subr.bf16.mxu1 %v4240_v62  ;;  %v550_v62 = vpack.c.bf16 %v347_v56, %v340_v53  ;;  %v4224_v53 = vld [vmem:[%s5895_s1 + $0x270] ss:$8 sps:$4 sm:$0xff]   ;;  %v375_v56 = vld [vmem:[%s4664_s25 + $0x208] sm:$0xff] }
  0x46   : > { %1513 = vmatpush1.bf16.msra.mxu0 %v4790_v43 }
  0x47   : > { %1514 = vmatprep.subr.bf16.mxu0 %v4796_v44 }
  0x48   : > { %1318 = vmatpush1.bf16.msra.mxu1 %v4245_v17  ;;  %v310_v17 = vld [vmem:[%s4664_s25] sm:$0xff] }
  0x49   : > { %1319 = vmatprep.subr.bf16.mxu1 %v4246_v22  ;;  %v332_v22 = vld [vmem:[%s4664_s25 + $0xb0] sm:$0xff] }
  0x4a   : > { %1515 = vmatpush1.bf16.msra.mxu0 %v4808_v47 }
  0x4b   : > { %1516 = vmatprep.subr.bf16.mxu0 %v4814_v48 }
  0x4c   : > { %1320 = vmatpush1.bf16.msra.mxu1 %v4251_v30  ;;  %v4220_v30 = vld [vmem:[%s5895_s1 + $0x264] ss:$8 sps:$4 sm:$0xff]  }
  0x4d   : > { %1321 = vmatprep.subr.bf16.mxu1 %v4252_v33  ;;  %v369_v33 = vld [vmem:[%s4664_s25 + $0x1d8] sm:$0xff] }
  0x4e   : > { %1517 = vmatpush1.bf16.msra.mxu0 %v4826_v51 }
  0x4f   : > { %1518 = vmatprep.subr.bf16.mxu0 %v4832_v52 }
  0x50   : > { %1322 = vmatpush1.bf16.msra.mxu1 %v4257_v42 }
  0x51   : > { %1323 = vmatprep.subr.bf16.mxu1 %v4258_v45  ;;  %v4226_v45 = vld [vmem:[%s5895_s1 + $0x274] ss:$8 sps:$4 sm:$0xff]  }
  0x52   : > { %1519 = vmatpush1.bf16.msra.mxu0 %v4840_v54 }
  0x53   : > { %1681 = vmatprep.subr.bf16.mxu0 %v4184_v58  ;;  %v355_v58 = vld [vmem:[%s4664_s25 + $0x168] sm:$0xff] }
  0x54   : > { %1324 = vmatpush1.bf16.msra.mxu1 %v4263_v60  ;;  %v564_v60 = vpack.c.bf16 %v375_v56, %v368_v55  ;;  %v373_v55 = vld [vmem:[%s4664_s25 + $0x1f8] sm:$0xff]  ;;  %v388_v56 = vld [vmem:[%s4664_s25 + $0x270] sm:$0xff] }
  0x55   : > { %1521 = vmatmul.mubr.bf16.vlgmr.msra.gmra.mrb[0].mxu0 %v536_v63  ;;  %v4206_v63 = vld [vmem:[%s5895_s1 + $0x240] ss:$8 sps:$4 sm:$0xff]   ;;  %1325 = vmatprep.subr.bf16.mxu1 %v4264_v61 }
  0x56   : > { %1682 = vmatpush1.bf16.msra.mxu0 %v4182_v13  ;;  %1530 = vmatprep.mubr.bf16.mxu0 %v544_v15  ;;  %v4214_v13 = vld [vmem:[%s5895_s1 + $0x254] ss:$8 sps:$4 sm:$0xff]   ;;  %v558_v15 = vpack.c.bf16 %v362_v59, %v355_v58  ;;  %v4232_v58 = vld [vmem:[%s5895_s1 + $0x284] ss:$8 sps:$4 sm:$0xff]   ;;  %v4230_v61 = vld [vmem:[%s5895_s1 + $0x280] ss:$8 sps:$4 sm:$0xff]  }
  0x57   : > { %1683 = vmatprep.subr.bf16.mxu0 %v4190_v16  ;;  %v4269_v16 = vld [vmem:[%s5895_s1 + $0xf0] ss:$8 sps:$4 sm:$0xff]  }
  0x58   : > { %1326 = vmatpush1.bf16.msra.mxu1 %v4269_v16  ;;  %v4236_v16 = vld [vmem:[%s5895_s1 + $0x290] ss:$8 sps:$4 sm:$0xff]  }
  0x59   : > { %3751 = vmatprep.subr.bf16.mxu1 %v4584_v0  ;;  %v331_v0 = vld [vmem:[%s4664_s25 + $0xa8] sm:$0xff] }
  0x5a   : > { %1684 = vmatpush1.bf16.msra.mxu0 %v4188_v19  ;;  %v317_v19 = vld [vmem:[%s4664_s25 + $0x38] sm:$0xff] }
  0x5b   : > { %1685 = vmatprep.subr.bf16.mxu0 %v4196_v25  ;;  %v354_v25 = vld [vmem:[%s4664_s25 + $0x160] sm:$0xff]  ;;  %v534_v29 = vpack.c.bf16 %v317_v19, %v310_v17  ;;  %v389_v19 = vld [vmem:[%s4664_s25 + $0x278] sm:$0xff] }
  0x5c   : > { %v382_v17 = vld [vmem:[%s4664_s25 + $0x240] sm:$0xff] }
  0x5d   : > { %1531 = vmatmul.mubr.bf16.gmra.mrb[4].mxu0 %v543_v34  ;;  %v376_v34 = vld [vmem:[%s4664_s25 + $0x210] sm:$0xff]  ;;  %1328 = vmatmul.mubr.bf16.vlgmr.msra.gmra.mrb[0].mxu1 %v534_v29 }
  0x5e   : > { %1686 = vmatpush1.bf16.msra.mxu0 %v4194_v37  ;;  %1540 = vmatprep.mubr.bf16.mxu0 %v551_v38  ;;  %v542_v37 = vpack.c.bf16 %v332_v22, %v325_v20  ;;  %v557_v38 = vpack.c.bf16 %v361_v26, %v354_v25  ;;  %v565_v42 = vpack.c.bf16 %v376_v34, %v369_v33  ;;  %v4244_v22 = vld [vmem:[%s5895_s1 + $0x2a4] ss:$8 sps:$4 sm:$0xff]   ;;  %v4242_v26 = vld [vmem:[%s5895_s1 + $0x2a0] ss:$8 sps:$4 sm:$0xff]  }
  0x5f   : > { %1687 = vmatprep.subr.bf16.mxu0 %v4202_v41  ;;  %v4218_v41 = vld [vmem:[%s5895_s1 + $0x260] ss:$8 sps:$4 sm:$0xff]   ;;  %3767 = vmatpush1.bf16.msra.mxu1 %v4589_v1  ;;  %v571_v25 = vpack.c.bf16 %v389_v19, %v382_v17  ;;  %v4275_v19 = vld [vmem:[%s5895_s1 + $0x304] ss:$8 sps:$4 sm:$0xff]  }
  0x60   : > { %1337 = vmatprep.mubr.bf16.mxu1 %v542_v37  ;;  %3752 = vmatprep.subr.bf16.mxu1 %v4595_v2  ;;  %v383_v1 = vld [vmem:[%s4664_s25 + $0x248] sm:$0xff]  ;;  %v390_v2 = vld [vmem:[%s4664_s25 + $0x280] sm:$0xff]  ;;  %v4248_v37 = vld [vmem:[%s5895_s1 + $0x2b0] ss:$8 sps:$4 sm:$0xff]  }
  0x61   : > { %v359_v33 = vld [vmem:[%s4664_s25 + $0x188] sm:$0xff]  ;;  %v374_v34 = vld [vmem:[%s4664_s25 + $0x200] sm:$0xff] }
  0x62   : > { %1688 = vmatpush1.bf16.msra.mxu0 %v4200_v50  ;;  %v346_v50 = vld [vmem:[%s4664_s25 + $0x120] sm:$0xff] }
  0x63   : > { %1689 = vmatprep.subr.bf16.mxu0 %v4208_v57  ;;  %v541_v57 = vpack.c.bf16 %v331_v0, %v324_v46  ;;  %v549_v59 = vpack.c.bf16 %v346_v50, %v339_v49  ;;  %3768 = vmatpush1.bf16.msra.mxu1 %v4601_v3  ;;  %v338_v3 = vld [vmem:[%s4664_s25 + $0xe0] sm:$0xff] }
  0x64   : > { %3753 = vmatprep.subr.bf16.mxu1 %v4607_v4  ;;  %v353_v4 = vld [vmem:[%s4664_s25 + $0x158] sm:$0xff]  ;;  %v4254_v49 = vld [vmem:[%s5895_s1 + $0x2c0] ss:$8 sps:$4 sm:$0xff]  }
  0x65   : > { %1541 = vmatmul.mubr.bf16.gmra.mrb[8].mxu0 %v550_v62  ;;  %v572_v62 = vpack.c.bf16 %v390_v2, %v383_v1  ;;  %1338 = vmatmul.mubr.bf16.gmra.mrb[4].mxu1 %v541_v57  ;;  %v4260_v57 = vld [vmem:[%s5895_s1 + $0x2d0] ss:$8 sps:$4 sm:$0xff]   ;;  %v402_v17 = vld [vmem:[%s4664_s25 + $0x2e0] sm:$0xff] }
  0x66   : > { %1690 = vmatpush1.bf16.msra.mxu0 %v4206_v63  ;;  %1550 = vmatprep.mubr.bf16.mxu0 %v558_v15  ;;  %v4238_v63 = vld [vmem:[%s5895_s1 + $0x294] ss:$8 sps:$4 sm:$0xff]  }
  0x67   : > { %1691 = vmatprep.subr.bf16.mxu0 %v4214_v13  ;;  %1347 = vmatprep.mubr.bf16.mxu1 %v549_v59  ;;  %v345_v13 = vld [vmem:[%s4664_s25 + $0x118] sm:$0xff]  ;;  %v360_v15 = vld [vmem:[%s4664_s25 + $0x190] sm:$0xff]  ;;  %v4268_v59 = vld [vmem:[%s5895_s1 + $0x2e4] ss:$8 sps:$4 sm:$0xff]  }
  0x68   : > { %3769 = vmatpush1.bf16.msra.mxu1 %v4616_v5  ;;  %v548_v20 = vpack.c.bf16 %v345_v13, %v338_v3  ;;  %v397_v5 = vld [vmem:[%s4664_s25 + $0x2b8] sm:$0xff]  ;;  %v380_v3 = vld [vmem:[%s4664_s25 + $0x230] sm:$0xff]  ;;  %v387_v13 = vld [vmem:[%s4664_s25 + $0x268] sm:$0xff] }
  0x69   : > { %3754 = vmatprep.subr.bf16.mxu1 %v4623_v6  ;;  %v404_v6 = vld [vmem:[%s4664_s25 + $0x2f0] sm:$0xff]  ;;  %v417_v1 = vld [vmem:[%s4664_s25 + $0x358] sm:$0xff] }
  0x6a   : > { %1692 = vmatpush1.bf16.msra.mxu0 %v4212_v23  ;;  %v556_v23 = vpack.c.bf16 %v360_v15, %v353_v4  ;;  %v579_v29 = vpack.c.bf16 %v404_v6, %v397_v5  ;;  %v314_v15 = vld [vmem:[%s4664_s25 + $0x20] sm:$0xff]  ;;  %v569_v5 = vpack.c.bf16 %v387_v13, %v380_v3  ;;  %v457_v13 = vld [vmem:[%s4664_s25 + $0x498] sm:$0xff] }
  0x6b   : > { %1693 = vmatprep.subr.bf16.mxu0 %v4220_v30  ;;  %v4250_v30 = vld [vmem:[%s5895_s1 + $0x2b4] ss:$8 sps:$4 sm:$0xff]   ;;  %v450_v3 = vld [vmem:[%s4664_s25 + $0x460] sm:$0xff] }
  0x6c   : > { %3770 = vmatpush1.bf16.msra.mxu1 %v4629_v7  ;;  %v352_v7 = vld [vmem:[%s4664_s25 + $0x150] sm:$0xff] }
  0x6d   : > { %1551 = vmatmul.mubr.bf16.gmra.mrb[12].mxu0 %v557_v38  ;;  %3755 = vmatprep.subr.bf16.mxu1 %v4636_v8  ;;  %v367_v8 = vld [vmem:[%s4664_s25 + $0x1c8] sm:$0xff]  ;;  %v396_v38 = vld [vmem:[%s4664_s25 + $0x2b0] sm:$0xff] }
  0x6e   : > { %1694 = vmatpush1.bf16.msra.mxu0 %v4218_v41  ;;  %1560 = vmatprep.mubr.bf16.mxu0 %v565_v42  ;;  %v403_v41 = vld [vmem:[%s4664_s25 + $0x2e8] sm:$0xff]  ;;  %v555_v42 = vpack.c.bf16 %v359_v33, %v352_v7  ;;  %v563_v46 = vpack.c.bf16 %v374_v34, %v367_v8  ;;  %v328_v7 = vld [vmem:[%s4664_s25 + $0x90] sm:$0xff]  ;;  %v350_v33 = vld [vmem:[%s4664_s25 + $0x140] sm:$0xff] }
  0x6f   : > { %1695 = vmatprep.subr.bf16.mxu0 %v4226_v45  ;;  %1348 = vmatmul.mubr.bf16.gmra.mrb[8].mxu1 %v548_v20  ;;  %v4256_v45 = vld [vmem:[%s5895_s1 + $0x2c4] ss:$8 sps:$4 sm:$0xff]   ;;  %v578_v0 = vpack.c.bf16 %v403_v41, %v396_v38  ;;  %v329_v20 = vld [vmem:[%s4664_s25 + $0x98] sm:$0xff] }
  0x70   : > { %1357 = vmatprep.mubr.bf16.mxu1 %v556_v23  ;;  %3771 = vmatpush1.bf16.msra.mxu1 %v4642_v9  ;;  %v411_v9 = vld [vmem:[%s4664_s25 + $0x328] sm:$0xff] }
  0x71   : > { %3756 = vmatprep.subr.bf16.mxu1 %v4648_v10  ;;  %v418_v10 = vld [vmem:[%s4664_s25 + $0x360] sm:$0xff]  ;;  %v415_v38 = vld [vmem:[%s4664_s25 + $0x348] sm:$0xff] }
  0x72   : > { %1696 = vmatpush1.bf16.msra.mxu0 %v4224_v53  ;;  %v586_v50 = vpack.c.bf16 %v418_v10, %v411_v9  ;;  %v4262_v53 = vld [vmem:[%s5895_s1 + $0x2d4] ss:$8 sps:$4 sm:$0xff]   ;;  %v423_v41 = vld [vmem:[%s4664_s25 + $0x388] sm:$0xff] }
  0x73   : > { %1697 = vmatprep.subr.bf16.mxu0 %v4232_v58  ;;  %v410_v58 = vld [vmem:[%s4664_s25 + $0x320] sm:$0xff]  ;;  %v357_v9 = vld [vmem:[%s4664_s25 + $0x178] sm:$0xff]  ;;  %v364_v10 = vld [vmem:[%s4664_s25 + $0x1b0] sm:$0xff] }
  0x74   : > { %3772 = vmatpush1.bf16.msra.mxu1 %v4654_v11  ;;  %v366_v11 = vld [vmem:[%s4664_s25 + $0x1c0] sm:$0xff] }
  0x75   : > { %1561 = vmatmul.mubr.bf16.gmra.mrb[16].mxu0 %v564_v60  ;;  %3757 = vmatprep.subr.bf16.mxu1 %v4659_v12  ;;  %v381_v12 = vld [vmem:[%s4664_s25 + $0x238] sm:$0xff]  ;;  %v562_v2 = vpack.c.bf16 %v373_v55, %v366_v11  ;;  %v322_v60 = vld [vmem:[%s4664_s25 + $0x60] sm:$0xff]  ;;  %v371_v55 = vld [vmem:[%s4664_s25 + $0x1e8] sm:$0xff] }
  0x76   : > { %1698 = vmatpush1.bf16.msra.mxu0 %v4230_v61  ;;  %1570 = vmatprep.mubr.bf16.mxu0 %v572_v62  ;;  %v4266_v61 = vld [vmem:[%s5895_s1 + $0x2e0] ss:$8 sps:$4 sm:$0xff]   ;;  %v585_v62 = vpack.c.bf16 %v417_v1, %v410_v58  ;;  %v436_v58 = vld [vmem:[%s4664_s25 + $0x3f0] sm:$0xff] }
  0x77   : > { %1699 = vmatprep.subr.bf16.mxu0 %v4238_v63  ;;  %1358 = vmatmul.mubr.bf16.gmra.mrb[12].mxu1 %v555_v42  ;;  %v4272_v63 = vld [vmem:[%s5895_s1 + $0x2f4] ss:$8 sps:$4 sm:$0xff]   ;;  %v430_v42 = vld [vmem:[%s4664_s25 + $0x3c0] sm:$0xff]  ;;  %v451_v1 = vld [vmem:[%s4664_s25 + $0x468] sm:$0xff] }
  0x78   : > { %1367 = vmatprep.mubr.bf16.mxu1 %v563_v46  ;;  %3773 = vmatpush1.bf16.msra.mxu1 %v4673_v14  ;;  %v315_v14 = vld [vmem:[%s4664_s25 + $0x28] sm:$0xff]  ;;  %v591_v46 = vpack.c.bf16 %v430_v42, %v423_v41 }
  0x79   : > { %3758 = vmatprep.subr.bf16.mxu1 %v4685_v18  ;;  %v570_v18 = vpack.c.bf16 %v388_v56, %v381_v12  ;;  %v539_v4 = vpack.c.bf16 %v322_v60, %v315_v14  ;;  %v378_v12 = vld [vmem:[%s4664_s25 + $0x220] sm:$0xff]  ;;  %v377_v14 = vld [vmem:[%s4664_s25 + $0x218] sm:$0xff]  ;;  %v427_v42 = vld [vmem:[%s4664_s25 + $0x3a8] sm:$0xff] }
  0x7a   : > { %1700 = vmatpush1.bf16.msra.mxu0 %v4236_v16  ;;  %v395_v16 = vld [vmem:[%s4664_s25 + $0x2a8] sm:$0xff] }
  0x7b   : > { %1701 = vmatprep.subr.bf16.mxu0 %v4244_v22  ;;  %v336_v22 = vld [vmem:[%s4664_s25 + $0xd0] sm:$0xff]  ;;  %v577_v6 = vpack.c.bf16 %v402_v17, %v395_v16  ;;  %v391_v16 = vld [vmem:[%s4664_s25 + $0x288] sm:$0xff]  ;;  %v604_v17 = vpack.c.bf16 %v457_v13, %v450_v3  ;;  %v454_v3 = vld [vmem:[%s4664_s25 + $0x480] sm:$0xff] }
  0x7c   : > { %3774 = vmatpush1.bf16.msra.mxu1 %v4693_v21  ;;  %v4270_v21 = vld [vmem:[%s5895_s1 + $0x2f0] ss:$8 sps:$4 sm:$0xff]  }
  0x7d   : > { %1571 = vmatmul.mubr.bf16.gmra.mrb[20].mxu0 %v571_v25  ;;  %3759 = vmatprep.subr.bf16.mxu1 %v4706_v24  ;;  %v321_v24 = vld [vmem:[%s4664_s25 + $0x58] sm:$0xff]  ;;  %v394_v25 = vld [vmem:[%s4664_s25 + $0x2a0] sm:$0xff] }
  0x7e   : > { %1702 = vmatpush1.bf16.msra.mxu0 %v4242_v26  ;;  %1580 = vmatprep.mubr.bf16.mxu0 %v579_v29  ;;  %v538_v23 = vpack.c.bf16 %v321_v24, %v314_v15  ;;  %v546_v26 = vpack.c.bf16 %v336_v22, %v329_v20  ;;  %v409_v29 = vld [vmem:[%s4664_s25 + $0x318] sm:$0xff]  ;;  %v384_v15 = vld [vmem:[%s4664_s25 + $0x250] sm:$0xff]  ;;  %v399_v24 = vld [vmem:[%s4664_s25 + $0x2c8] sm:$0xff] }
  0x7f   : > { %1703 = vmatprep.subr.bf16.mxu0 %v4250_v30  ;;  %1368 = vmatmul.mubr.bf16.gmra.mrb[16].mxu1 %v562_v2  ;;  %v416_v30 = vld [vmem:[%s4664_s25 + $0x350] sm:$0xff]  ;;  %v458_v2 = vld [vmem:[%s4664_s25 + $0x4a0] sm:$0xff]  ;;  %v573_v22 = vpack.c.bf16 %v391_v16, %v384_v15  ;;  %v461_v13 = vld [vmem:[%s4664_s25 + $0x4b8] sm:$0xff] }
  0x80   : > { %1377 = vmatprep.mubr.bf16.mxu1 %v570_v18  ;;  %3775 = vmatpush1.bf16.msra.mxu1 %v4718_v27  ;;  %v4273_v27 = vld [vmem:[%s5895_s1 + $0x300] ss:$8 sps:$4 sm:$0xff]   ;;  %v584_v34 = vpack.c.bf16 %v416_v30, %v409_v29  ;;  %v392_v18 = vld [vmem:[%s4664_s25 + $0x290] sm:$0xff]  ;;  %v413_v30 = vld [vmem:[%s4664_s25 + $0x338] sm:$0xff] }
  0x81   : > { %3760 = vmatprep.subr.bf16.mxu1 %v4724_v28  ;;  %v401_v28 = vld [vmem:[%s4664_s25 + $0x2d8] sm:$0xff]  ;;  %v476_v15 = vld [vmem:[%s4664_s25 + $0x530] sm:$0xff] }
  0x82   : > { %1704 = vmatpush1.bf16.msra.mxu0 %v4248_v37  ;;  %v576_v8 = vpack.c.bf16 %v401_v28, %v394_v25  ;;  %v486_v25 = vld [vmem:[%s4664_s25 + $0x580] sm:$0xff] }
  0x83   : > { %1705 = vmatprep.subr.bf16.mxu0 %v4256_v45  ;;  %v398_v28 = vld [vmem:[%s4664_s25 + $0x2c0] sm:$0xff] }
  0x84   : > { %3776 = vmatpush1.bf16.msra.mxu1 %v4736_v31  ;;  %v335_v31 = vld [vmem:[%s4664_s25 + $0xc8] sm:$0xff] }
  0x85   : > { %1581 = vmatmul.mubr.bf16.gmra.mrb[24].mxu0 %v578_v0  ;;  %3761 = vmatprep.subr.bf16.mxu1 %v4742_v32  ;;  %v343_v32 = vld [vmem:[%s4664_s25 + $0x108] sm:$0xff] }
  0x86   : > { %1706 = vmatpush1.bf16.msra.mxu0 %v4254_v49  ;;  %1590 = vmatprep.mubr.bf16.mxu0 %v586_v50  ;;  %v553_v37 = vpack.c.bf16 %v350_v33, %v343_v32  ;;  %v429_v49 = vld [vmem:[%s4664_s25 + $0x3b8] sm:$0xff] }
  0x87   : > { %1707 = vmatprep.subr.bf16.mxu0 %v4262_v53  ;;  %1378 = vmatmul.mubr.bf16.gmra.mrb[20].mxu1 %v569_v5  ;;  %v437_v50 = vld [vmem:[%s4664_s25 + $0x3f8] sm:$0xff]  ;;  %v444_v53 = vld [vmem:[%s4664_s25 + $0x430] sm:$0xff] }
  0x88   : > { %1387 = vmatprep.mubr.bf16.mxu1 %v577_v6  ;;  %3777 = vmatpush1.bf16.msra.mxu1 %v4754_v35  ;;  %v545_v35 = vpack.c.bf16 %v335_v31, %v328_v7  ;;  %v598_v56 = vpack.c.bf16 %v444_v53, %v437_v50  ;;  %v464_v6 = vld [vmem:[%s4664_s25 + $0x4d0] sm:$0xff]  ;;  %v441_v53 = vld [vmem:[%s4664_s25 + $0x418] sm:$0xff] }
  0x89   : > { %3762 = vmatprep.subr.bf16.mxu1 %v4759_v36  ;;  %v408_v36 = vld [vmem:[%s4664_s25 + $0x310] sm:$0xff] }
  0x8a   : > { %1708 = vmatpush1.bf16.msra.mxu0 %v4260_v57  ;;  %v583_v45 = vpack.c.bf16 %v415_v38, %v408_v36  ;;  %v567_v57 = vpack.c.bf16 %v378_v12, %v371_v55  ;;  %v420_v7 = vld [vmem:[%s4664_s25 + $0x370] sm:$0xff]  ;;  %v419_v38 = vld [vmem:[%s4664_s25 + $0x368] sm:$0xff]  ;;  %v506_v12 = vld [vmem:[%s4664_s25 + $0x620] sm:$0xff] }
  0x8b   : > { %1709 = vmatprep.subr.bf16.mxu0 %v4268_v59  ;;  %v370_v59 = vld [vmem:[%s4664_s25 + $0x1e0] sm:$0xff]  ;;  %v588_v33 = vpack.c.bf16 %v420_v7, %v413_v30  ;;  %v412_v36 = vld [vmem:[%s4664_s25 + $0x330] sm:$0xff] }
  0x8c   : > { %3778 = vmatpush1.bf16.msra.mxu1 %v4772_v39  ;;  %v342_v39 = vld [vmem:[%s4664_s25 + $0x100] sm:$0xff] }
  0x8d   : > { %1591 = vmatmul.mubr.bf16.gmra.mrb[28].mxu0 %v585_v62  ;;  %3763 = vmatprep.subr.bf16.mxu1 %v4778_v40  ;;  %v349_v40 = vld [vmem:[%s4664_s25 + $0x138] sm:$0xff]  ;;  %v566_v62 = vpack.c.bf16 %v377_v14, %v370_v59  ;;  %v462_v59 = vld [vmem:[%s4664_s25 + $0x4c0] sm:$0xff] }
  0x8e   : > { %1710 = vmatpush1.bf16.msra.mxu0 %v4266_v61  ;;  %1713 = vmatprep.mubr.bf16.mxu0 %v539_v4  ;;  %v552_v0 = vpack.c.bf16 %v349_v40, %v342_v39  ;;  %v605_v61 = vpack.c.bf16 %v458_v2, %v451_v1  ;;  %v465_v4 = vld [vmem:[%s4664_s25 + $0x4d8] sm:$0xff]  ;;  %v434_v39 = vld [vmem:[%s4664_s25 + $0x3e0] sm:$0xff]  ;;  %v455_v2 = vld [vmem:[%s4664_s25 + $0x488] sm:$0xff] }
  0x8f   : > { %1711 = vmatprep.subr.bf16.mxu0 %v4272_v63  ;;  %1388 = vmatmul.mubr.bf16.gmra.mrb[24].mxu1 %v576_v8  ;;  %v478_v8 = vld [vmem:[%s4664_s25 + $0x540] sm:$0xff] }
  0x90   : > { %1397 = vmatprep.mubr.bf16.mxu1 %v584_v34  ;;  %3779 = vmatpush1.bf16.msra.mxu1 %v4790_v43  ;;  %v560_v43 = vpack.c.bf16 %v364_v10, %v357_v9  ;;  %v485_v34 = vld [vmem:[%s4664_s25 + $0x578] sm:$0xff]  ;;  %v595_v9 = vpack.c.bf16 %v434_v39, %v427_v42  ;;  %v492_v10 = vld [vmem:[%s4664_s25 + $0x5b0] sm:$0xff]  ;;  %v438_v7 = vld [vmem:[%s4664_s25 + $0x400] sm:$0xff] }
  0x91   : > { %3764 = vmatprep.subr.bf16.mxu1 %v4796_v44  ;;  %v422_v44 = vld [vmem:[%s4664_s25 + $0x380] sm:$0xff]  ;;  %v618_v41 = vpack.c.bf16 %v485_v34, %v478_v8  ;;  %v489_v34 = vld [vmem:[%s4664_s25 + $0x598] sm:$0xff]  ;;  %v452_v39 = vld [vmem:[%s4664_s25 + $0x470] sm:$0xff] }
  0x92   : > { %1712 = vmatpush1.bf16.msra.mxu0 %v4270_v21  ;;  %v590_v11 = vpack.c.bf16 %v429_v49, %v422_v44  ;;  %v472_v21 = vld [vmem:[%s4664_s25 + $0x510] sm:$0xff]  ;;  %v426_v44 = vld [vmem:[%s4664_s25 + $0x3a0] sm:$0xff]  ;;  %v433_v49 = vld [vmem:[%s4664_s25 + $0x3d8] sm:$0xff] }
  0x93   : > { %1874 = vmatprep.subr.bf16.mxu0 %v4275_v19  ;;  %v406_v19 = vld [vmem:[%s4664_s25 + $0x300] sm:$0xff]  ;;  %v612_v20 = vpack.c.bf16 %v472_v21, %v465_v4  ;;  %v469_v21 = vld [vmem:[%s4664_s25 + $0x4f8] sm:$0xff] }
  0x94   : > { %3780 = vmatpush1.bf16.msra.mxu1 %v4808_v47  ;;  %v356_v47 = vld [vmem:[%s4664_s25 + $0x170] sm:$0xff]  ;;  %v581_v5 = vpack.c.bf16 %v406_v19, %v399_v24  ;;  %v616_v24 = vpack.c.bf16 %v476_v15, %v469_v21  ;;  %v482_v8 = vld [vmem:[%s4664_s25 + $0x560] sm:$0xff]  ;;  %v509_v21 = vld [vmem:[%s4664_s25 + $0x638] sm:$0xff] }
  0x95   : > { %1714 = vmatmul.mubr.bf16.vlgmr.msra.gmra.mrb[0].mxu0 %v538_v23  ;;  %3765 = vmatprep.subr.bf16.mxu1 %v4814_v48  ;;  %v363_v48 = vld [vmem:[%s4664_s25 + $0x1a8] sm:$0xff]  ;;  %v424_v19 = vld [vmem:[%s4664_s25 + $0x390] sm:$0xff] }
  0x96   : > { %1875 = vmatpush1.bf16.msra.mxu0 %v4273_v27  ;;  %1723 = vmatprep.mubr.bf16.mxu0 %v546_v26  ;;  %v471_v27 = vld [vmem:[%s4664_s25 + $0x508] sm:$0xff]  ;;  %v405_v26 = vld [vmem:[%s4664_s25 + $0x2f8] sm:$0xff]  ;;  %v516_v15 = vld [vmem:[%s4664_s25 + $0x670] sm:$0xff] }
  0x97   : > { %1398 = vmatmul.mubr.bf16.gmra.mrb[28].mxu1 %v583_v45  ;;  %v479_v23 = vld [vmem:[%s4664_s25 + $0x548] sm:$0xff]  ;;  %v611_v29 = vpack.c.bf16 %v471_v27, %v464_v6  ;;  %v580_v32 = vpack.c.bf16 %v405_v26, %v398_v28  ;;  %v587_v45 = vpack.c.bf16 %v419_v38, %v412_v36  ;;  %v468_v6 = vld [vmem:[%s4664_s25 + $0x4f0] sm:$0xff]  ;;  %v490_v28 = vld [vmem:[%s4664_s25 + $0x5a0] sm:$0xff] }
  0x98   : > { %1407 = vmatprep.mubr.bf16.mxu1 %v591_v46  ;;  %3781 = vmatpush1.bf16.msra.mxu1 %v4826_v51  ;;  %v559_v51 = vpack.c.bf16 %v363_v48, %v356_v47  ;;  %v619_v31 = vpack.c.bf16 %v486_v25, %v479_v23  ;;  %v499_v46 = vld [vmem:[%s4664_s25 + $0x5e8] sm:$0xff]  ;;  %v448_v47 = vld [vmem:[%s4664_s25 + $0x450] sm:$0xff] }
  0x99   : > { %3766 = vmatprep.subr.bf16.mxu1 %v4832_v52  ;;  %v443_v52 = vld [vmem:[%s4664_s25 + $0x428] sm:$0xff]  ;;  %v625_v50 = vpack.c.bf16 %v499_v46, %v492_v10  ;;  %v602_v55 = vpack.c.bf16 %v448_v47, %v441_v53  ;;  %v504_v36 = vld [vmem:[%s4664_s25 + $0x610] sm:$0xff]  ;;  %v466_v47 = vld [vmem:[%s4664_s25 + $0x4e0] sm:$0xff] }
  0x9a   : > { %v597_v60 = vpack.c.bf16 %v443_v52, %v436_v58  ;;  %v440_v58 = vld [vmem:[%s4664_s25 + $0x410] sm:$0xff]  ;;  %v447_v52 = vld [vmem:[%s4664_s25 + $0x448] sm:$0xff] }
  0x9b   : > { %v475_v27 = vld [vmem:[%s4664_s25 + $0x528] sm:$0xff]  ;;  %v496_v10 = vld [vmem:[%s4664_s25 + $0x5d0] sm:$0xff] }
  0x9c   : > { %3782 = vmatpush1.bf16.msra.mxu1 %v4840_v54  ;;  %v385_v54 = vld [vmem:[%s4664_s25 + $0x258] sm:$0xff]  ;;  %v483_v25 = vld [vmem:[%s4664_s25 + $0x568] sm:$0xff] }
  0x9d   : > { %1724 = vmatmul.mubr.bf16.gmra.mrb[4].mxu0 %v545_v35  ;;  %v574_v63 = vpack.c.bf16 %v392_v18, %v385_v54  ;;  %v493_v35 = vld [vmem:[%s4664_s25 + $0x5b8] sm:$0xff]  ;;  %v609_v54 = vpack.c.bf16 %v462_v59, %v455_v2  ;;  %v520_v18 = vld [vmem:[%s4664_s25 + $0x690] sm:$0xff]  ;;  %v623_v30 = vpack.c.bf16 %v490_v28, %v483_v25  ;;  %v503_v46 = vld [vmem:[%s4664_s25 + $0x608] sm:$0xff] }
  0x9e   : > { %1733 = vmatprep.mubr.bf16.mxu0 %v553_v37  ;;  %v500_v37 = vld [vmem:[%s4664_s25 + $0x5f0] sm:$0xff] }
  0x9f   : > { %1408 = vmatmul.mubr.bf16.gmra.mrb[32].mxu1 %v590_v11  ;;  %v626_v40 = vpack.c.bf16 %v500_v37, %v493_v35  ;;  %v594_v11 = vpack.c.bf16 %v433_v49, %v426_v44  ;;  %v497_v37 = vld [vmem:[%s4664_s25 + $0x5d8] sm:$0xff]  ;;  %v518_v44 = vld [vmem:[%s4664_s25 + $0x680] sm:$0xff]  ;;  %v480_v59 = vld [vmem:[%s4664_s25 + $0x550] sm:$0xff] }
  0xa0   : > { %1417 = vmatprep.mubr.bf16.mxu1 %v598_v56  ;;  %v513_v56 = vld [vmem:[%s4664_s25 + $0x658] sm:$0xff]  ;;  %v630_v42 = vpack.c.bf16 %v504_v36, %v497_v37  ;;  %v4280_v25 = vld [vmem:[%s5897_s3 + $0x50] sm:$0xff]   ;;  %v4284_v36 = vld [vmem:[%s5897_s3 + $0x60] sm:$0xff]  }
  0xa1   : > { %v632_v1 = vpack.c.bf16 %v513_v56, %v506_v12  ;;  %v510_v12 = vld [vmem:[%s4664_s25 + $0x640] sm:$0xff]  ;;  %v517_v56 = vld [vmem:[%s4664_s25 + $0x678] sm:$0xff]  ;;  %v508_v28 = vld [vmem:[%s4664_s25 + $0x630] sm:$0xff] }
  0xa5   : > { %1734 = vmatmul.mubr.bf16.gmra.mrb[8].mxu0 %v552_v0  ;;  %v507_v0 = vld [vmem:[%s4664_s25 + $0x628] sm:$0xff] }
  0xa6   : > { %1743 = vmatprep.mubr.bf16.mxu0 %v560_v43  ;;  %v514_v43 = vld [vmem:[%s4664_s25 + $0x660] sm:$0xff] }
  0xa7   : > { %1418 = vmatmul.mubr.bf16.gmra.mrb[36].mxu1 %v597_v60  ;;  %v633_v48 = vpack.c.bf16 %v514_v43, %v507_v0  ;;  %v601_v60 = vpack.c.bf16 %v447_v52, %v440_v58  ;;  %v511_v43 = vld [vmem:[%s4664_s25 + $0x648] sm:$0xff]  ;;  %v532_v58 = vld [vmem:[%s4664_s25 + $0x6f0] sm:$0xff] }
  0xa8   : > { %1427 = vmatprep.mubr.bf16.mxu1 %v605_v61  ;;  %v527_v61 = vld [vmem:[%s4664_s25 + $0x6c8] sm:$0xff]  ;;  %v637_v53 = vpack.c.bf16 %v518_v44, %v511_v43  ;;  %v365_v43 = vld [vmem:[%s4664_s25 + $0x1b8] sm:$0xff] }
  0xa9   : > { %v639_v4 = vpack.c.bf16 %v527_v61, %v520_v18  ;;  %v524_v18 = vld [vmem:[%s4664_s25 + $0x6b0] sm:$0xff]  ;;  %v531_v61 = vld [vmem:[%s4664_s25 + $0x6e8] sm:$0xff] }
  0xad   : > { %1744 = vmatmul.mubr.bf16.gmra.mrb[12].mxu0 %v559_v51  ;;  %v521_v51 = vld [vmem:[%s4664_s25 + $0x698] sm:$0xff] }
  0xae   : > { %1753 = vmatprep.mubr.bf16.mxu0 %v567_v57  ;;  %v528_v57 = vld [vmem:[%s4664_s25 + $0x6d0] sm:$0xff] }
  0xaf   : > { %1428 = vmatmul.mubr.bf16.gmra.mrb[40].mxu1 %v604_v17  ;;  %v640_v14 = vpack.c.bf16 %v528_v57, %v521_v51  ;;  %v608_v17 = vpack.c.bf16 %v461_v13, %v454_v3  ;;  %v525_v57 = vld [vmem:[%s4664_s25 + $0x6b8] sm:$0xff]  ;;  %v643_v3 = vpack.c.bf16 %v531_v61, %v524_v18  ;;  %v494_v13 = vld [vmem:[%s4664_s25 + $0x5c0] sm:$0xff] }
  0xb0   : > { %1437 = vmatprep.mubr.bf16.mxu1 %v612_v20  ;;  %v431_v20 = vld [vmem:[%s4664_s25 + $0x3c8] sm:$0xff]  ;;  %v644_v2 = vpack.c.bf16 %v532_v58, %v525_v57  ;;  %v4288_v57 = vld [vmem:[%s5897_s3 + $0x70] sm:$0xff]  }
  0xb1   : > { %v592_v23 = vpack.c.bf16 %v431_v20, %v424_v19  ;;  %v316_v19 = vld [vmem:[%s4664_s25 + $0x30] sm:$0xff]  ;;  %v323_v20 = vld [vmem:[%s4664_s25 + $0x68] sm:$0xff] }
  0xb5   : > { %1754 = vmatmul.mubr.bf16.gmra.mrb[16].mxu0 %v566_v62  ;;  %v425_v62 = vld [vmem:[%s4664_s25 + $0x398] sm:$0xff] }
  0xb6   : > { %1763 = vmatprep.mubr.bf16.mxu0 %v574_v63  ;;  %v432_v63 = vld [vmem:[%s4664_s25 + $0x3d0] sm:$0xff] }
  0xb7   : > { %1438 = vmatmul.mubr.bf16.gmra.mrb[44].mxu1 %v611_v29  ;;  %v593_v16 = vpack.c.bf16 %v432_v63, %v425_v62  ;;  %v615_v29 = vpack.c.bf16 %v475_v27, %v468_v6  ;;  %v635_v6 = vpack.c.bf16 %v516_v15, %v509_v21  ;;  %v4279_v27 = vld [vmem:[%s5897_s3 + $0x8] sm:$0xff]  }
  0xb8   : > { %1447 = vmatprep.mubr.bf16.mxu1 %v619_v31  ;;  %v445_v31 = vld [vmem:[%s4664_s25 + $0x438] sm:$0xff] }
  0xb9   : > { %v599_v35 = vpack.c.bf16 %v445_v31, %v438_v7  ;;  %v4281_v7 = vld [vmem:[%s5897_s3 + $0x10] sm:$0xff]   ;;  %v4282_v31 = vld [vmem:[%s5897_s3 + $0x58] sm:$0xff]  }
  0xbd   : > { %1764 = vmatmul.mubr.bf16.gmra.mrb[20].mxu0 %v573_v22  ;;  %v439_v22 = vld [vmem:[%s4664_s25 + $0x408] sm:$0xff] }
  0xbe   : > { %1773 = vmatprep.mubr.bf16.mxu0 %v581_v5  ;;  %v446_v5 = vld [vmem:[%s4664_s25 + $0x440] sm:$0xff] }
  0xbf   : > { %1448 = vmatmul.mubr.bf16.gmra.mrb[48].mxu1 %v618_v41  ;;  %v600_v26 = vpack.c.bf16 %v446_v5, %v439_v22  ;;  %v622_v41 = vpack.c.bf16 %v489_v34, %v482_v8  ;;  %v4278_v5 = vld [vmem:[%s5897_s3 + $0x48] sm:$0xff]  }
  0xc0   : > { %1457 = vmatprep.mubr.bf16.mxu1 %v626_v40  ;;  %v459_v40 = vld [vmem:[%s4664_s25 + $0x4a8] sm:$0xff] }
  0xc1   : > { %v606_v0 = vpack.c.bf16 %v459_v40, %v452_v39  ;;  %v4286_v39 = vld [vmem:[%s5897_s3 + $0x68] sm:$0xff]   ;;  %v344_v40 = vld [vmem:[%s4664_s25 + $0x110] sm:$0xff] }
  0xc5   : > { %1774 = vmatmul.mubr.bf16.gmra.mrb[24].mxu0 %v580_v32  ;;  %v453_v32 = vld [vmem:[%s4664_s25 + $0x478] sm:$0xff] }
  0xc6   : > { %1783 = vmatprep.mubr.bf16.mxu0 %v588_v33  ;;  %v460_v33 = vld [vmem:[%s4664_s25 + $0x4b0] sm:$0xff] }
  0xc7   : > { %1458 = vmatmul.mubr.bf16.gmra.mrb[52].mxu1 %v625_v50  ;;  %v607_v38 = vpack.c.bf16 %v460_v33, %v453_v32  ;;  %v629_v50 = vpack.c.bf16 %v503_v46, %v496_v10  ;;  %v330_v32 = vld [vmem:[%s4664_s25 + $0xa0] sm:$0xff]  ;;  %v337_v33 = vld [vmem:[%s4664_s25 + $0xd8] sm:$0xff]  ;;  %v4287_v10 = vld [vmem:[%s5897_s3 + $0x28] sm:$0xff]  }
  0xc8   : > { %1467 = vmatprep.mubr.bf16.mxu1 %v633_v48  ;;  %v473_v48 = vld [vmem:[%s4664_s25 + $0x518] sm:$0xff]  ;;  %v547_v37 = vpack.c.bf16 %v337_v33, %v330_v32  ;;  %v470_v32 = vld [vmem:[%s4664_s25 + $0x500] sm:$0xff] }
  0xc9   : > { %v613_v51 = vpack.c.bf16 %v473_v48, %v466_v47  ;;  %v386_v47 = vld [vmem:[%s4664_s25 + $0x260] sm:$0xff]  ;;  %v393_v48 = vld [vmem:[%s4664_s25 + $0x298] sm:$0xff] }
  0xca   : > { %v477_v33 = vld [vmem:[%s4664_s25 + $0x538] sm:$0xff] }
  0xcd   : > { %1784 = vmatmul.mubr.bf16.gmra.mrb[28].mxu0 %v587_v45  ;;  %v467_v45 = vld [vmem:[%s4664_s25 + $0x4e8] sm:$0xff] }
  0xce   : > { %1793 = vmatprep.mubr.bf16.mxu0 %v595_v9  ;;  %v474_v9 = vld [vmem:[%s4664_s25 + $0x520] sm:$0xff] }
  0xcf   : > { %1468 = vmatmul.mubr.bf16.gmra.mrb[56].mxu1 %v632_v1  ;;  %v614_v49 = vpack.c.bf16 %v474_v9, %v467_v45  ;;  %v636_v1 = vpack.c.bf16 %v517_v56, %v510_v12  ;;  %v351_v45 = vld [vmem:[%s4664_s25 + $0x148] sm:$0xff]  ;;  %v400_v12 = vld [vmem:[%s4664_s25 + $0x2d0] sm:$0xff] }
  0xd0   : > { %1477 = vmatprep.mubr.bf16.mxu1 %v640_v14  ;;  %v487_v14 = vld [vmem:[%s4664_s25 + $0x588] sm:$0xff]  ;;  %v554_v46 = vpack.c.bf16 %v351_v45, %v344_v40  ;;  %v4291_v45 = vld [vmem:[%s5897_s3 + $0x38] sm:$0xff]  }
  0xd1   : > { %v620_v62 = vpack.c.bf16 %v487_v14, %v480_v59  ;;  %v407_v56 = vld [vmem:[%s4664_s25 + $0x308] sm:$0xff]  ;;  %v414_v14 = vld [vmem:[%s4664_s25 + $0x340] sm:$0xff] }
  0xd5   : > { %1794 = vmatmul.mubr.bf16.gmra.mrb[32].mxu0 %v594_v11  ;;  %v481_v11 = vld [vmem:[%s4664_s25 + $0x558] sm:$0xff] }
  0xd6   : > { %1803 = vmatprep.mubr.bf16.mxu0 %v602_v55  ;;  %v488_v55 = vld [vmem:[%s4664_s25 + $0x590] sm:$0xff] }
  0xd7   : > { %1478 = vmatmul.mubr.bf16.gmra.mrb[60].mxu1 %v639_v4  ;;  %v621_v52 = vpack.c.bf16 %v488_v55, %v481_v11  ;;  %v501_v4 = vld [vmem:[%s4664_s25 + $0x5f8] sm:$0xff]  ;;  %v575_v11 = vpack.c.bf16 %v393_v48, %v386_v47  ;;  %v512_v47 = vld [vmem:[%s4664_s25 + $0x650] sm:$0xff]  ;;  %v519_v48 = vld [vmem:[%s4664_s25 + $0x688] sm:$0xff] }
  0xd8   : > { %1600 = vmatprep.mubr.bf16.mxu1 %v593_v16  ;;  %v4276_v16 = vld [vmem:[%s5897_s3 + $0x40] sm:$0xff]   ;;  %v627_v22 = vpack.c.bf16 %v501_v4, %v494_v13  ;;  %v435_v13 = vld [vmem:[%s4664_s25 + $0x3e8] sm:$0xff] }
  0xd9   : > { %3639 = vmatprep.subr.bf16.mxu1 %v4276_v16 }
  0xdd   : > { %1804 = vmatmul.mubr.bf16.gmra.mrb[36].mxu0 %v601_v60  ;;  %v495_v60 = vld [vmem:[%s4664_s25 + $0x5c8] sm:$0xff] }
  0xde   : > { %1813 = vmatprep.mubr.bf16.mxu0 %v609_v54  ;;  %v502_v54 = vld [vmem:[%s4664_s25 + $0x600] sm:$0xff] }
  0xdf   : > { %1601 = vmatmul.mubr.bf16.vlgmr.msra.gmra.mrb[32].mxu1 %v592_v23  ;;  %v628_v63 = vpack.c.bf16 %v502_v54, %v495_v60  ;;  %v540_v23 = vpack.c.bf16 %v323_v20, %v316_v19  ;;  %v421_v60 = vld [vmem:[%s4664_s25 + $0x378] sm:$0xff]  ;;  %v442_v19 = vld [vmem:[%s4664_s25 + $0x420] sm:$0xff] }
  0xe0   : > { %1610 = vmatprep.mubr.bf16.mxu1 %v600_v26  ;;  %v515_v26 = vld [vmem:[%s4664_s25 + $0x668] sm:$0xff]  ;;  %v449_v20 = vld [vmem:[%s4664_s25 + $0x458] sm:$0xff] }
  0xe1   : > { %v634_v8 = vpack.c.bf16 %v515_v26, %v508_v28  ;;  %v463_v28 = vld [vmem:[%s4664_s25 + $0x4c8] sm:$0xff] }
  0xe5   : > { %1814 = vmatmul.mubr.bf16.gmra.mrb[40].mxu0 %v608_v17  ;;  %v4277_v17 = vld [vmem:[%s5897_s3] sm:$0xff]  }
  0xe6   : > { %1823 = vmatprep.mubr.bf16.mxu0 %v616_v24  ;;  %v4508_v24 = vmov 0   ;;  %3640 = vmatpush3.bf16.msra.mxu1 %v4277_v17 }
  0xe7   : > { %1611 = vmatmul.mubr.bf16.gmra.mrb[36].mxu1 %v599_v35  ;;  %3641 = vmatprep.subr.bf16.mxu1 %v4278_v5  ;;  %v4283_v35 = vld [vmem:[%s5897_s3 + $0x18] sm:$0xff]  }
  0xe8   : > { %1620 = vmatprep.mubr.bf16.mxu1 %v607_v38  ;;  %v522_v38 = vld [vmem:[%s4664_s25 + $0x6a0] sm:$0xff] }
  0xea   : > { %3642 = vmatpush3.bf16.msra.mxu1 %v4279_v27  ;;  %v603_v27 = vpack.c.bf16 %v449_v20, %v442_v19 }
  0xeb   : > { %3643 = vmatprep.subr.bf16.mxu1 %v4280_v25  ;;  %v456_v25 = vld [vmem:[%s4664_s25 + $0x490] sm:$0xff] }
  0xed   : > { %1824 = vmatmul.mubr.bf16.gmra.mrb[44].mxu0 %v615_v29  ;;  %v523_v29 = vld [vmem:[%s4664_s25 + $0x6a8] sm:$0xff] }
  0xee   : > { %1833 = vmatprep.mubr.bf16.mxu0 %v623_v30  ;;  %v530_v30 = vld [vmem:[%s4664_s25 + $0x6e0] sm:$0xff]  ;;  %3644 = vmatpush3.bf16.msra.mxu1 %v4281_v7  ;;  %v610_v7 = vpack.c.bf16 %v463_v28, %v456_v25 }
  0xef   : > { %1621 = vmatmul.mubr.bf16.gmra.mrb[40].mxu1 %v606_v0  ;;  %v642_v34 = vpack.c.bf16 %v530_v30, %v523_v29  ;;  %3645 = vmatprep.subr.bf16.mxu1 %v4282_v31  ;;  %v358_v0 = vld [vmem:[%s4664_s25 + $0x180] sm:$0xff] }
  0xf0   : > { %1630 = vmatprep.mubr.bf16.mxu1 %v614_v49  ;;  %v561_v44 = vpack.c.bf16 %v365_v43, %v358_v0  ;;  %v372_v49 = vld [vmem:[%s4664_s25 + $0x1f0] sm:$0xff]  ;;  %v498_v0 = vld [vmem:[%s4664_s25 + $0x5e0] sm:$0xff]  ;;  %v505_v43 = vld [vmem:[%s4664_s25 + $0x618] sm:$0xff] }
  0xf2   : > { %3646 = vmatpush3.bf16.msra.mxu1 %v4283_v35 }
  0xf3   : > { %3647 = vmatprep.subr.bf16.mxu1 %v4284_v36 }
  0xf5   : > { %1834 = vmatmul.mubr.bf16.gmra.mrb[48].mxu0 %v622_v41  ;;  %v529_v41 = vld [vmem:[%s4664_s25 + $0x6d8] sm:$0xff] }
  0xf6   : > { %1843 = vmatprep.mubr.bf16.mxu0 %v630_v42  ;;  %v4285_v42 = vld [vmem:[%s5897_s3 + $0x20] sm:$0xff]   ;;  %v641_v9 = vpack.c.bf16 %v529_v41, %v522_v38  ;;  %v484_v38 = vld [vmem:[%s4664_s25 + $0x570] sm:$0xff]  ;;  %v491_v41 = vld [vmem:[%s4664_s25 + $0x5a8] sm:$0xff] }
  0xf7   : > { %1631 = vmatmul.mubr.bf16.gmra.mrb[44].mxu1 %v613_v51 }
  0xf8   : > { %1640 = vmatprep.mubr.bf16.mxu1 %v621_v52  ;;  %3648 = vmatpush3.bf16.msra.mxu1 %v4285_v42  ;;  %v4289_v52 = vld [vmem:[%s5897_s3 + $0x30] sm:$0xff]  }
  0xf9   : > { %3649 = vmatprep.subr.bf16.mxu1 %v4286_v39  ;;  %v4290_v39 = vld [vmem:[%s5897_s3 + $0x78] sm:$0xff]  }
  0xfc   : > { %3650 = vmatpush3.bf16.msra.mxu1 %v4287_v10  ;;  %v624_v10 = vpack.c.bf16 %v491_v41, %v484_v38 }
  0xfd   : > { %1844 = vmatmul.mubr.bf16.gmra.mrb[52].mxu0 %v629_v50  ;;  %v379_v50 = vld [vmem:[%s4664_s25 + $0x228] sm:$0xff]  ;;  %3651 = vmatprep.subr.bf16.mxu1 %v4288_v57 }
  0xfe   : > { %1853 = vmatprep.mubr.bf16.mxu0 %v637_v53  ;;  %v568_v53 = vpack.c.bf16 %v379_v50, %v372_v49 }
  0xff   : > { %1641 = vmatmul.mubr.bf16.gmra.mrb[48].mxu1 %v620_v62  ;;  %v589_v62 = vpack.c.bf16 %v421_v60, %v414_v14 }
 0x100   : > { %1650 = vmatprep.mubr.bf16.mxu1 %v628_v63  ;;  %3652 = vmatpush3.bf16.msra.mxu1 %v4289_v52 }
 0x101   : > { %3653 = vmatprep.subr.bf16.mxu1 %v4290_v39 }
 0x104   : > { %3654 = vmatpush3.bf16.msra.mxu1 %v4291_v45 }
 0x105   : > { %1854 = vmatmul.mubr.bf16.gmra.mrb[56].mxu0 %v636_v1 }
 0x106   : > { %1863 = vmatprep.mubr.bf16.mxu0 %v644_v2  ;;  %v582_v2 = vpack.c.bf16 %v407_v56, %v400_v12  ;;  %v526_v12 = vld [vmem:[%s4664_s25 + $0x6c0] sm:$0xff]  ;;  %v533_v56 = vld [vmem:[%s4664_s25 + $0x6f8] sm:$0xff] }
 0x107   : > { %1651 = vmatmul.mubr.bf16.gmra.mrb[52].mxu1 %v627_v22  ;;  %v645_v57 = vpack.c.bf16 %v533_v56, %v526_v12 }
 0x108   : > { %1660 = vmatprep.mubr.bf16.mxu1 %v635_v6 }
 0x10d   : > { %1864 = vmatmul.mubr.bf16.gmra.mrb[60].mxu0 %v643_v3  ;;  %v428_v3 = vld [vmem:[%s4664_s25 + $0x3b0] sm:$0xff] }
 0x10e   : > { %1906 = vmatprep.mubr.bf16.mxu0 %v4508_v24  ;;  %v596_v16 = vpack.c.bf16 %v435_v13, %v428_v3 }
 0x10f   : > { %1661 = vmatmul.mubr.bf16.gmra.mrb[56].mxu1 %v634_v8 }
 0x110   : > { %1670 = vmatprep.mubr.bf16.mxu1 %v642_v34 }
 0x115   : > { %3585 = vmatmul.mubr.msk.bf16.vlgmr.msra.gmra.mrb[0].mxu0 %vm1246_vm0, %v540_v23 }
 0x116   : > { %1916 = vmatprep.mubr.bf16.mxu0 %v4508_v24 }
 0x117   : > { %1671 = vmatmul.mubr.bf16.gmra.mrb[60].mxu1 %v641_v9 }
 0x11d   : > { %3586 = vmatmul.mubr.msk.bf16.gmra.mrb[4].mxu0 %vm1246_vm0, %v547_v37  ;;  %v617_v37 = vpack.c.bf16 %v477_v33, %v470_v32 }
 0x11e   : > { %1926 = vmatprep.mubr.bf16.mxu0 %v4508_v24 }
 0x125   : > { %3587 = vmatmul.mubr.msk.bf16.gmra.mrb[8].mxu0 %vm1246_vm0, %v554_v46 }
 0x126   : > { %1936 = vmatprep.mubr.bf16.mxu0 %v4508_v24 }
 0x12d   : > { %3588 = vmatmul.mubr.msk.bf16.gmra.mrb[12].mxu0 %vm1246_vm0, %v561_v44 }
 0x12e   : > { %1946 = vmatprep.mubr.bf16.mxu0 %v4508_v24 }
 0x130   : > { %v5265_v55 = vpop.f32.mrb[0].mxu1 }
 0x131   : > { %v5270_v51 = vpop.f32.mrb[1].mxu1 }
 0x132   : > { %v5275_v58 = vpop.f32.mrb[2].mxu1 }
 0x133   : > { %v5280_v1 = vpop.f32.mrb[3].mxu1 }
 0x135   : > { %3589 = vmatmul.mubr.msk.bf16.gmra.mrb[16].mxu0 %vm1246_vm0, %v568_v53  ;;  %v631_v53 = vpack.c.bf16 %v505_v43, %v498_v0 }
 0x136   : > { %1956 = vmatprep.mubr.bf16.mxu0 %v4508_v24 }
 0x138   : > { %v5283_v59 = vpop.f32.mrb[4].mxu1 }
 0x139   : > { %v5288_v54 = vpop.f32.mrb[5].mxu1 }
 0x13a   : > { %v5290_v18 = vpop.f32.mrb[6].mxu1 }
 0x13b   : > { %v5292_v61 = vpop.f32.mrb[7].mxu1 }
 0x13d   : > { %3590 = vmatmul.mubr.msk.bf16.gmra.mrb[20].mxu0 %vm1246_vm0, %v575_v11  ;;  %v638_v11 = vpack.c.bf16 %v519_v48, %v512_v47 }
 0x13e   : > { %1966 = vmatprep.mubr.bf16.mxu0 %v4508_v24 }
 0x142   : > { %v5295_v63 = vpop.f32.mrb[8].mxu1 }
 0x143   : > { %v5300_v4 = vpop.f32.mrb[9].mxu1 }
 0x144   : > { %v5302_v21 = vpop.f32.mrb[10].mxu1 }
 0x145   : > { %3591 = vmatmul.mubr.msk.bf16.gmra.mrb[24].mxu0 %vm1246_vm0, %v582_v2  ;;  %v5304_v15 = vpop.f32.mrb[11].mxu1 }
 0x146   : > { %1976 = vmatprep.mubr.bf16.mxu0 %v4508_v24 }
 0x14a   : > { %v5307_v17 = vpop.f32.mrb[12].mxu1 }
 0x14b   : > { %v5312_v22 = vpop.f32.mrb[13].mxu1 }
 0x14c   : > { %v5314_v5 = vpop.f32.mrb[14].mxu1 }
 0x14d   : > { %3592 = vmatmul.mubr.msk.bf16.gmra.mrb[28].mxu0 %vm1246_vm0, %v589_v62  ;;  %v5316_v6 = vpop.f32.mrb[15].mxu1 }
 0x14e   : > { %1986 = vmatprep.mubr.bf16.mxu0 %v4508_v24 }
 0x152   : > { %v5319_v23 = vpop.f32.mrb[16].mxu1 }
 0x153   : > { %v5324_v26 = vpop.f32.mrb[17].mxu1 }
 0x154   : > { %v5326_v29 = vpop.f32.mrb[18].mxu1 }
 0x155   : > { %3593 = vmatmul.mubr.msk.bf16.gmra.mrb[32].mxu0 %vm1246_vm0, %v596_v16  ;;  %v5328_v30 = vpop.f32.mrb[19].mxu1 }
 0x156   : > { %1996 = vmatprep.mubr.bf16.mxu0 %v4508_v24 }
 0x15a   : > { %v5331_v31 = vpop.f32.mrb[20].mxu1 }
 0x15b   : > { %v5336_v8 = vpop.f32.mrb[21].mxu1 }
 0x15c   : > { %v5338_v34 = vpop.f32.mrb[22].mxu1 }
 0x15d   : > { %3594 = vmatmul.mubr.msk.bf16.gmra.mrb[36].mxu0 %vm1246_vm0, %v603_v27  ;;  %v5340_v35 = vpop.f32.mrb[23].mxu1 }
 0x15e   : > { %2006 = vmatprep.mubr.bf16.mxu0 %v4508_v24 }
 0x162   : > { %v5343_v36 = vpop.f32.mrb[24].mxu1 }
 0x163   : > { %v5348_v42 = vpop.f32.mrb[25].mxu1 }
 0x164   : > { %v5353_v40 = vpop.f32.mrb[26].mxu1 }
 0x165   : > { %3595 = vmatmul.mubr.msk.bf16.gmra.mrb[40].mxu0 %vm1246_vm0, %v610_v7  ;;  %v5358_v9 = vpop.f32.mrb[27].mxu1  ;;  %v746_v7 = vlaneseq }
 0x166   : > { %2016 = vmatprep.mubr.bf16.mxu0 %v4508_v24 }
 0x16a   : > { %v5361_v46 = vpop.f32.mrb[28].mxu1 }
 0x16b   : > { %v5366_v44 = vpop.f32.mrb[29].mxu1 }
 0x16c   : > { %v5368_v49 = vpop.f32.mrb[30].mxu1 }
 0x16d   : > { %3596 = vmatmul.mubr.msk.bf16.gmra.mrb[44].mxu0 %vm1246_vm0, %v617_v37  ;;  %v5370_v50 = vpop.f32.mrb[31].mxu1  ;;  %v747_v37 = vshrl.u32 %v746_v7, 7 }
 0x16e   : > { %2026 = vmatprep.mubr.bf16.mxu0 %v4508_v24 }
 0x16f   : > { %v748_v39 = vsub.s32 0, %v747_v37  ;;  %v752_v0 = vsub.s32 1, %v747_v37 }
 0x175   : > { %3597 = vmatmul.mubr.msk.bf16.gmra.mrb[48].mxu0 %vm1246_vm0, %v624_v10  ;;  %v744_v10 = vld [vmem:[%s5896_s2] sm:$0x3] }
 0x176   : > { %2036 = vmatprep.mubr.bf16.mxu0 %v4508_v24  ;;  %v5426_v47 = vrot.slane %v744_v10, %v752_v0 }
 0x17d   : > { %3598 = vmatmul.mubr.msk.bf16.gmra.mrb[52].mxu0 %vm1246_vm0, %v631_v53  ;;  %v5424_v53 = vrot.slane %v744_v10, %v748_v39 }
 0x17e   : > { %2046 = vmatprep.mubr.bf16.mxu0 %v4508_v24 }
 0x17f   : > { %v1330_v12 = vadd.f32 %v5265_v55, %v5424_v53  ;;  %v1334_v39 = vadd.f32 %v5275_v58, %v5424_v53 }
 0x185   : > { %3599 = vmatmul.mubr.msk.bf16.gmra.mrb[56].mxu0 %vm1246_vm0, %v638_v11 }
 0x186   : > { %2056 = vmatprep.mubr.bf16.mxu0 %v4508_v24 }
 0x18d   : > { %3600 = vmatmul.mubr.msk.bf16.gmra.mrb[60].mxu0 %vm1246_vm0, %v645_v57  ;;  %v1332_v57 = vadd.f32 %v5270_v51, %v5426_v47 }
 0x1b2   : > { %v5381_v52 = vpop.f32.mrb[32].mxu1 }
 0x1b3   : > { %v5383_v2 = vpop.f32.mrb[33].mxu1 }
 0x1b4   : > { %v5385_v14 = vpop.f32.mrb[34].mxu1 }
 0x1b5   : > { %v5387_v60 = vpop.f32.mrb[35].mxu1 }
 0x1ba   : > { %v5389_v62 = vpop.f32.mrb[36].mxu1 }
 0x1bb   : > { %v5391_v3 = vpop.f32.mrb[37].mxu1 }
 0x1bc   : > { %v5393_v13 = vpop.f32.mrb[38].mxu1 }
 0x1bd   : > { %v5395_v24 = vpop.f32.mrb[39].mxu1 }
 0x1c2   : > { %v5397_v16 = vpop.f32.mrb[40].mxu1 }
 0x1c3   : > { %v5399_v19 = vpop.f32.mrb[41].mxu1 }
 0x1c4   : > { %v5401_v20 = vpop.f32.mrb[42].mxu1 }
 0x1c5   : > { %v5403_v27 = vpop.f32.mrb[43].mxu1 }
 0x1ca   : > { %v5405_v25 = vpop.f32.mrb[44].mxu1 }
 0x1cb   : > { %5903 = vst [vmem:[#allocation4_spill] sm:$0xff] %v5405_v25  ;;  %v5407_v28 = vpop.f32.mrb[45].mxu1 }
 0x1cc   : > { %5904 = vst [vmem:[#allocation5_spill] sm:$0xff] %v5407_v28  ;;  %v5409_v32 = vpop.f32.mrb[46].mxu1 }
 0x1cd   : > { %5905 = vst [vmem:[#allocation6_spill] sm:$0xff] %v5409_v32  ;;  %v5411_v33 = vpop.f32.mrb[47].mxu1 }
 0x1ce   : > { %5906 = vst [vmem:[#allocation7_spill] sm:$0xff] %v5411_v33 }
 0x1d2   : > { %v5413_v38 = vpop.f32.mrb[48].mxu1 }
 0x1d3   : > { %5907 = vst [vmem:[#allocation8_spill] sm:$0xff] %v5413_v38  ;;  %v5415_v41 = vpop.f32.mrb[49].mxu1 }
 0x1d4   : > { %5908 = vst [vmem:[#allocation9_spill] sm:$0xff] %v5415_v41  ;;  %v5417_v45 = vpop.f32.mrb[50].mxu1 }
 0x1d5   : > { %5909 = vst [vmem:[#allocation10_spill] sm:$0xff] %v5417_v45  ;;  %v5422_v43 = vpop.f32.mrb[51].mxu1 }
 0x1d6   : > { %5910 = vst [vmem:[#allocation11_spill] sm:$0xff] %v5422_v43 }
 0x1da   : > { %v5428_v48 = vpop.f32.mrb[52].mxu1 }
 0x1db   : > { %5911 = vst [vmem:[#allocation12_spill] sm:$0xff] %v5428_v48  ;;  %v5430_v11 = vpop.f32.mrb[53].mxu1  ;;  %v1336_v48 = vadd.f32 %v5280_v1, %v5426_v47  ;;  %v1340_v1 = vadd.f32 %v5283_v59, %v5424_v53  ;;  %v1346_v59 = vadd.f32 %v5292_v61, %v5426_v47  ;;  %v1350_v61 = vadd.f32 %v5295_v63, %v5424_v53 }
 0x1dc   : > { %5912 = vst [vmem:[#allocation13_spill] sm:$0xff] %v5430_v11  ;;  %v5434_v56 = vpop.f32.mrb[54].mxu1  ;;  %v1356_v63 = vadd.f32 %v5304_v15, %v5426_v47 }
 0x1dd   : > { %5913 = vst [vmem:[#allocation14_spill] sm:$0xff] %v5434_v56  ;;  %v5438_v37 = vpop.f32.mrb[55].mxu1 }
 0x1de   : > { %5914 = vst [vmem:[#allocation15_spill] sm:$0xff] %v5438_v37 }
 0x1e2   : > { %v5444_v37 = vpop.f32.mrb[56].mxu1 }
 0x1e3   : > { %5915 = vst [vmem:[#allocation16_spill] sm:$0xff] %v5444_v37  ;;  %v1344_v37 = vadd.f32 %v5290_v18, %v5424_v53 }
 0x1e8   : > { %v1908_v7 = vpop.f32.mrb[0].mxu0 }
 0x1e9   : > { %v3784_v10 = vadd.f32 %v1908_v7, %v1330_v12  ;;  %v1910_v0 = vpop.f32.mrb[1].mxu0  ;;  %v5446_v12 = vpop.f32.mrb[57].mxu1 }
 0x1ea   : > { %v3786_v11 = vadd.f32 %v1910_v0, %v1332_v57  ;;  %v1912_v43 = vpop.f32.mrb[2].mxu0  ;;  %5916 = vst [vmem:[#allocation17_spill] sm:$0xff] %v5446_v12  ;;  %v5450_v0 = vpop.f32.mrb[58].mxu1 }
 0x1eb   : > { %v2131_v45 = vmul.f32 0.2, %v3784_v10  ;;  %v3788_v55 = vadd.f32 %v1912_v43, %v1334_v39  ;;  %v1914_v41 = vpop.f32.mrb[3].mxu0  ;;  %vm2067_vm1 = vcmp.gt.f32.partialorder %v3784_v10, 0.0  ;;  %v1342_v43 = vadd.f32 %v5288_v54, %v5426_v47  ;;  %v5454_v32 = vpop.f32.mrb[59].mxu1 }
 0x1ec   : > { %v2132_v56 = vmul.f32 0.2, %v3786_v11  ;;  %v3790_v38 = vadd.f32 %v1914_v41, %v1336_v48  ;;  %vm2068_vm2 = vcmp.gt.f32.partialorder %v3786_v11, 0.0  ;;  %v5460_v18 = vpop.f32.mrb[60].mxu1 }
 0x1ed   : > { %vm2069_vm3 = vcmp.gt.f32.partialorder %v3788_v55, 0.0  ;;  %v2133_v51 = vmul.f32 0.2, %v3788_v55  ;;  %v2195_v57 = vsel %vm2067_vm1, %v3784_v10, %v2131_v45 }
 0x1ee   : > { %vm2070_vm4 = vcmp.gt.f32.partialorder %v3790_v38, 0.0  ;;  %v2134_v58 = vmul.f32 0.2, %v3790_v38  ;;  %v2196_v39 = vsel %vm2068_vm2, %v3786_v11, %v2132_v56 }
 0x1ef   : > { %v2197_v7 = vsel %vm2069_vm3, %v3788_v55, %v2133_v51 }
 0x1f0   : > { %v2259_v41 = vpack.c.bf16 %v2197_v7, %v2195_v57  ;;  %v1918_v48 = vpop.f32.mrb[4].mxu0  ;;  %v2198_v33 = vsel %vm2070_vm4, %v3790_v38, %v2134_v58  ;;  %v5462_v58 = vpop.f32.mrb[61].mxu1 }
 0x1f1   : > { %v3792_v12 = vadd.f32 %v1918_v48, %v1340_v1  ;;  %v1920_v28 = vpop.f32.mrb[5].mxu0  ;;  %v2260_v25 = vpack.c.bf16 %v2198_v33, %v2196_v39  ;;  %v5466_v1 = vpop.f32.mrb[62].mxu1  ;;  %v1354_v39 = vadd.f32 %v5302_v21, %v5424_v53 }
 0x1f2   : > { %v3794_v45 = vadd.f32 %v1920_v28, %v1342_v43  ;;  %v1922_v10 = vpop.f32.mrb[6].mxu0  ;;  %v5470_v48 = vpop.f32.mrb[63].mxu1 }
 0x1f3   : > { %v2135_v55 = vmul.f32 0.2, %v3792_v12  ;;  %v3796_v51 = vadd.f32 %v1922_v10, %v1344_v37  ;;  %v1924_v54 = vpop.f32.mrb[7].mxu0  ;;  %2458 = vmatprep.mubr.bf16.mxu1 %v2260_v25  ;;  %vm2071_vm5 = vcmp.gt.f32.partialorder %v3792_v12, 0.0  ;;  %v1352_v25 = vadd.f32 %v5300_v4, %v5426_v47 }
 0x1f4   : > { %v2136_v11 = vmul.f32 0.2, %v3794_v45  ;;  %v3798_v38 = vadd.f32 %v1924_v54, %v1346_v59  ;;  %2459 = vmatmul.mubr.bf16.vlgmr.msra.gmra.mrb[64].mxu1 %v2259_v41  ;;  %vm2072_vm6 = vcmp.gt.f32.partialorder %v3794_v45, 0.0 }
 0x1f5   : > { %vm2073_vm7 = vcmp.gt.f32.partialorder %v3796_v51, 0.0  ;;  %v2137_v56 = vmul.f32 0.2, %v3796_v51  ;;  %v2199_v28 = vsel %vm2071_vm5, %v3792_v12, %v2135_v55 }
 0x1f6   : > { %vm2074_vm8 = vcmp.gt.f32.partialorder %v3798_v38, 0.0  ;;  %v2138_v33 = vmul.f32 0.2, %v3798_v38  ;;  %v2200_v7 = vsel %vm2072_vm6, %v3794_v45, %v2136_v11 }
 0x1f7   : > { %v2201_v37 = vsel %vm2073_vm7, %v3796_v51, %v2137_v56 }
 0x1f8   : > { %v1928_v57 = vpop.f32.mrb[8].mxu0  ;;  %v2202_v43 = vsel %vm2074_vm8, %v3798_v38, %v2138_v33  ;;  %v2261_v41 = vpack.c.bf16 %v2201_v37, %v2199_v28  ;;  %v1360_v33 = vadd.f32 %v5307_v17, %v5424_v53  ;;  %v1362_v28 = vadd.f32 %v5312_v22, %v5426_v47 }
 0x1f9   : > { %v3800_v59 = vadd.f32 %v1928_v57, %v1350_v61  ;;  %v1930_v10 = vpop.f32.mrb[9].mxu0  ;;  %v2262_v54 = vpack.c.bf16 %v2202_v43, %v2200_v7  ;;  %v1364_v43 = vadd.f32 %v5314_v5, %v5424_v53 }
 0x1fa   : > { %v3802_v12 = vadd.f32 %v1930_v10, %v1352_v25  ;;  %v1932_v55 = vpop.f32.mrb[10].mxu0 }
 0x1fb   : > { %v2139_v51 = vmul.f32 0.2, %v3800_v59  ;;  %v3804_v56 = vadd.f32 %v1932_v55, %v1354_v39  ;;  %v1934_v4 = vpop.f32.mrb[11].mxu0  ;;  %2466 = vmatprep.mubr.bf16.mxu1 %v2262_v54  ;;  %vm2075_vm9 = vcmp.gt.f32.partialorder %v3800_v59, 0.0  ;;  %v1366_v54 = vadd.f32 %v5316_v6, %v5426_v47 }
 0x1fc   : > { %v2140_v45 = vmul.f32 0.2, %v3802_v12  ;;  %v3806_v11 = vadd.f32 %v1934_v4, %v1356_v63  ;;  %2467 = vmatmul.mubr.bf16.gmra.mrb[68].mxu1 %v2261_v41  ;;  %vm2076_vm10 = vcmp.gt.f32.partialorder %v3802_v12, 0.0  ;;  %v1370_v4 = vadd.f32 %v5319_v23, %v5424_v53 }
 0x1fd   : > { %vm2077_vm11 = vcmp.gt.f32.partialorder %v3804_v56, 0.0  ;;  %v2141_v38 = vmul.f32 0.2, %v3804_v56  ;;  %v2203_v61 = vsel %vm2075_vm9, %v3800_v59, %v2139_v51 }
 0x1fe   : > { %vm2078_vm12 = vcmp.gt.f32.partialorder %v3806_v11, 0.0  ;;  %v2142_v21 = vmul.f32 0.2, %v3806_v11  ;;  %v2204_v25 = vsel %vm2076_vm10, %v3802_v12, %v2140_v45 }
 0x1ff   : > { %v2205_v15 = vsel %vm2077_vm11, %v3804_v56, %v2141_v38 }
 0x200   : > { %v1938_v37 = vpop.f32.mrb[12].mxu0  ;;  %v2206_v57 = vsel %vm2078_vm12, %v3806_v11, %v2142_v21  ;;  %v2263_v7 = vpack.c.bf16 %v2205_v15, %v2203_v61  ;;  %v1372_v11 = vadd.f32 %v5324_v26, %v5426_v47  ;;  %v1374_v15 = vadd.f32 %v5326_v29, %v5424_v53 }
 0x201   : > { %v3808_v41 = vadd.f32 %v1938_v37, %v1360_v33  ;;  %v1940_v39 = vpop.f32.mrb[13].mxu0  ;;  %v2264_v10 = vpack.c.bf16 %v2206_v57, %v2204_v25  ;;  %v1376_v57 = vadd.f32 %v5328_v30, %v5426_v47 }
 0x202   : > { %v3810_v63 = vadd.f32 %v1940_v39, %v1362_v28  ;;  %v1942_v17 = vpop.f32.mrb[14].mxu0 }
 0x203   : > { %v2143_v59 = vmul.f32 0.2, %v3808_v41  ;;  %v3812_v55 = vadd.f32 %v1942_v17, %v1364_v43  ;;  %v1944_v51 = vpop.f32.mrb[15].mxu0  ;;  %2474 = vmatprep.mubr.bf16.mxu1 %v2264_v10  ;;  %vm2079_vm13 = vcmp.gt.f32.partialorder %v3808_v41, 0.0 }
 0x204   : > { %v2144_v22 = vmul.f32 0.2, %v3810_v63  ;;  %v3814_v12 = vadd.f32 %v1944_v51, %v1366_v54  ;;  %2475 = vmatmul.mubr.bf16.gmra.mrb[72].mxu1 %v2263_v7  ;;  %vm2080_vm14 = vcmp.gt.f32.partialorder %v3810_v63, 0.0 }
 0x205   : > { %vm2081_vm15 = vcmp.gt.f32.partialorder %v3812_v55, 0.0  ;;  %v2145_v56 = vmul.f32 0.2, %v3812_v55  ;;  %v2207_v45 = vsel %vm2079_vm13, %v3808_v41, %v2143_v59  ;;  %v1382_v59 = vadd.f32 %v5336_v8, %v5426_v47 }
 0x206   : > { %vm2082_vm0 = vcmp.gt.f32.partialorder %v3814_v12, 0.0  ;;  %v2146_v5 = vmul.f32 0.2, %v3814_v12  ;;  %v2208_v21 = vsel %vm2080_vm14, %v3810_v63, %v2144_v22  ;;  %v1380_v63 = vadd.f32 %v5331_v31, %v5424_v53 }
 0x207   : > { %v2209_v6 = vsel %vm2081_vm15, %v3812_v55, %v2145_v56  ;;  %v1384_v56 = vadd.f32 %v5338_v34, %v5424_v53 }
 0x208   : > { %v1948_v38 = vpop.f32.mrb[16].mxu0  ;;  %v2210_v33 = vsel %vm2082_vm0, %v3814_v12, %v2146_v5  ;;  %v2265_v61 = vpack.c.bf16 %v2209_v6, %v2207_v45  ;;  %v1386_v6 = vadd.f32 %v5340_v35, %v5426_v47 }
 0x209   : > { %v3816_v28 = vadd.f32 %v1948_v38, %v1370_v4  ;;  %v1950_v37 = vpop.f32.mrb[17].mxu0  ;;  %v2266_v25 = vpack.c.bf16 %v2210_v33, %v2208_v21 }
 0x20a   : > { %v3818_v7 = vadd.f32 %v1950_v37, %v1372_v11  ;;  %v1952_v23 = vpop.f32.mrb[18].mxu0 }
 0x20b   : > { %v2147_v43 = vmul.f32 0.2, %v3816_v28  ;;  %v3820_v41 = vadd.f32 %v1952_v23, %v1374_v15  ;;  %v1954_v39 = vpop.f32.mrb[19].mxu0  ;;  %2482 = vmatprep.mubr.bf16.mxu1 %v2266_v25  ;;  %vm2083_vm1 = vcmp.gt.f32.partialorder %v3816_v28, 0.0  ;;  %v1392_v25 = vadd.f32 %v5348_v42, %v5426_v47 }
 0x20c   : > { %v2148_v26 = vmul.f32 0.2, %v3818_v7  ;;  %v3822_v10 = vadd.f32 %v1954_v39, %v1376_v57  ;;  %2483 = vmatmul.mubr.bf16.gmra.mrb[76].mxu1 %v2265_v61  ;;  %vm2084_vm2 = vcmp.gt.f32.partialorder %v3818_v7, 0.0 }
 0x20d   : > { %vm2085_vm3 = vcmp.gt.f32.partialorder %v3820_v41, 0.0  ;;  %v2149_v54 = vmul.f32 0.2, %v3820_v41  ;;  %v2211_v17 = vsel %vm2083_vm1, %v3816_v28, %v2147_v43  ;;  %v1390_v28 = vadd.f32 %v5343_v36, %v5424_v53 }
 0x20e   : > { %vm2086_vm4 = vcmp.gt.f32.partialorder %v3822_v10, 0.0  ;;  %v2150_v29 = vmul.f32 0.2, %v3822_v10  ;;  %v2212_v51 = vsel %vm2084_vm2, %v3818_v7, %v2148_v26 }
 0x20f   : > { %v2213_v30 = vsel %vm2085_vm3, %v3820_v41, %v2149_v54  ;;  %v1394_v41 = vadd.f32 %v5353_v40, %v5424_v53  ;;  %v1396_v54 = vadd.f32 %v5358_v9, %v5426_v47 }
 0x210   : > { %v1958_v55 = vpop.f32.mrb[20].mxu0  ;;  %v2214_v22 = vsel %vm2086_vm4, %v3822_v10, %v2150_v29  ;;  %v2267_v12 = vpack.c.bf16 %v2213_v30, %v2211_v17 }
 0x211   : > { %v3824_v5 = vadd.f32 %v1958_v55, %v1380_v63  ;;  %v1960_v4 = vpop.f32.mrb[21].mxu0  ;;  %v2268_v45 = vpack.c.bf16 %v2214_v22, %v2212_v51  ;;  %v1400_v51 = vadd.f32 %v5361_v46, %v5424_v53 }
 0x212   : > { %v3826_v11 = vadd.f32 %v1960_v4, %v1382_v59  ;;  %v1962_v31 = vpop.f32.mrb[22].mxu0 }
 0x213   : > { %v2151_v38 = vmul.f32 0.2, %v3824_v5  ;;  %v3828_v21 = vadd.f32 %v1962_v31, %v1384_v56  ;;  %v1964_v33 = vpop.f32.mrb[23].mxu0  ;;  %2490 = vmatprep.mubr.bf16.mxu1 %v2268_v45  ;;  %vm2087_vm5 = vcmp.gt.f32.partialorder %v3824_v5, 0.0 }
 0x214   : > { %v2152_v8 = vmul.f32 0.2, %v3826_v11  ;;  %v3830_v61 = vadd.f32 %v1964_v33, %v1386_v6  ;;  %2491 = vmatmul.mubr.bf16.gmra.mrb[80].mxu1 %v2267_v12  ;;  %vm2088_vm6 = vcmp.gt.f32.partialorder %v3826_v11, 0.0  ;;  %v1402_v12 = vadd.f32 %v5366_v44, %v5426_v47 }
 0x215   : > { %vm2089_vm7 = vcmp.gt.f32.partialorder %v3828_v21, 0.0  ;;  %v2153_v15 = vmul.f32 0.2, %v3828_v21  ;;  %v2215_v37 = vsel %vm2087_vm5, %v3824_v5, %v2151_v38  ;;  %v1404_v6 = vadd.f32 %v5368_v49, %v5424_v53 }
 0x216   : > { %vm2090_vm8 = vcmp.gt.f32.partialorder %v3830_v61, 0.0  ;;  %v2154_v34 = vmul.f32 0.2, %v3830_v61  ;;  %v2216_v7 = vsel %vm2088_vm6, %v3826_v11, %v2152_v8 }
 0x217   : > { %v2217_v35 = vsel %vm2089_vm7, %v3828_v21, %v2153_v15  ;;  %v1406_v21 = vadd.f32 %v5370_v50, %v5426_v47 }
 0x218   : > { %v1968_v57 = vpop.f32.mrb[24].mxu0  ;;  %v2218_v23 = vsel %vm2090_vm8, %v3830_v61, %v2154_v34  ;;  %v2269_v43 = vpack.c.bf16 %v2217_v35, %v2215_v37  ;;  %v3847_v37 = vadd.f32 %v5381_v52, %v5424_v53 }
 0x219   : > { %v3832_v39 = vadd.f32 %v1968_v57, %v1390_v28  ;;  %v1970_v26 = vpop.f32.mrb[25].mxu0  ;;  %v2270_v10 = vpack.c.bf16 %v2218_v23, %v2216_v7 }
 0x21a   : > { %v3834_v29 = vadd.f32 %v1970_v26, %v1392_v25  ;;  %v1972_v36 = vpop.f32.mrb[26].mxu0  ;;  %v3849_v25 = vadd.f32 %v5383_v2, %v5426_v47 }
 0x21b   : > { %v2155_v63 = vmul.f32 0.2, %v3832_v39  ;;  %v3836_v17 = vadd.f32 %v1972_v36, %v1394_v41  ;;  %v1974_v30 = vpop.f32.mrb[27].mxu0  ;;  %2498 = vmatprep.mubr.bf16.mxu1 %v2270_v10  ;;  %vm2091_vm9 = vcmp.gt.f32.partialorder %v3832_v39, 0.0  ;;  %v3851_v41 = vadd.f32 %v5385_v14, %v5424_v53 }
 0x21c   : > { %v2156_v42 = vmul.f32 0.2, %v3834_v29  ;;  %v3838_v59 = vadd.f32 %v1974_v30, %v1396_v54  ;;  %2499 = vmatmul.mubr.bf16.gmra.mrb[84].mxu1 %v2269_v43  ;;  %vm2092_vm10 = vcmp.gt.f32.partialorder %v3834_v29, 0.0  ;;  %v3853_v54 = vadd.f32 %v5387_v60, %v5426_v47 }
 0x21d   : > { %vm2093_vm11 = vcmp.gt.f32.partialorder %v3836_v17, 0.0  ;;  %v2157_v55 = vmul.f32 0.2, %v3836_v17  ;;  %v2219_v22 = vsel %vm2091_vm9, %v3832_v39, %v2155_v63 }
 0x21e   : > { %vm2094_vm12 = vcmp.gt.f32.partialorder %v3838_v59, 0.0  ;;  %v2158_v40 = vmul.f32 0.2, %v3838_v59  ;;  %v2220_v5 = vsel %vm2092_vm10, %v3834_v29, %v2156_v42 }
 0x21f   : > { %v2221_v9 = vsel %vm2093_vm11, %v3836_v17, %v2157_v55 }
 0x220   : > { %v1978_v56 = vpop.f32.mrb[28].mxu0  ;;  %v2222_v4 = vsel %vm2094_vm12, %v3838_v59, %v2158_v40  ;;  %v2271_v45 = vpack.c.bf16 %v2221_v9, %v2219_v22  ;;  %v3855_v59 = vadd.f32 %v5389_v62, %v5424_v53  ;;  %v3857_v40 = vadd.f32 %v5391_v3, %v5426_v47 }
 0x221   : > { %v3840_v11 = vadd.f32 %v1978_v56, %v1400_v51  ;;  %v1980_v31 = vpop.f32.mrb[29].mxu0  ;;  %v2272_v38 = vpack.c.bf16 %v2222_v4, %v2220_v5  ;;  %v3859_v56 = vadd.f32 %v5393_v13, %v5424_v53 }
 0x222   : > { %v3842_v33 = vadd.f32 %v1980_v31, %v1402_v12  ;;  %v1982_v46 = vpop.f32.mrb[30].mxu0 }
 0x223   : > { %v2159_v8 = vmul.f32 0.2, %v3840_v11  ;;  %v3844_v61 = vadd.f32 %v1982_v46, %v1404_v6  ;;  %v1984_v15 = vpop.f32.mrb[31].mxu0  ;;  %2506 = vmatprep.mubr.bf16.mxu1 %v2272_v38  ;;  %vm2095_vm13 = vcmp.gt.f32.partialorder %v3840_v11, 0.0  ;;  %v3861_v6 = vadd.f32 %v5395_v24, %v5426_v47 }
 0x224   : > { %v2160_v44 = vmul.f32 0.2, %v3842_v33  ;;  %v3846_v34 = vadd.f32 %v1984_v15, %v1406_v21  ;;  %2507 = vmatmul.mubr.bf16.gmra.mrb[88].mxu1 %v2271_v45  ;;  %vm2096_vm14 = vcmp.gt.f32.partialorder %v3842_v33, 0.0  ;;  %v3865_v15 = vadd.f32 %v5399_v19, %v5426_v47 }
 0x225   : > { %vm2097_vm15 = vcmp.gt.f32.partialorder %v3844_v61, 0.0  ;;  %v2161_v28 = vmul.f32 0.2, %v3844_v61  ;;  %v2223_v35 = vsel %vm2095_vm13, %v3840_v11, %v2159_v8  ;;  %v3863_v8 = vadd.f32 %v5397_v16, %v5424_v53 }
 0x226   : > { %vm2098_vm0 = vcmp.gt.f32.partialorder %v3846_v34, 0.0  ;;  %v2162_v49 = vmul.f32 0.2, %v3846_v34  ;;  %v2224_v7 = vsel %vm2096_vm14, %v3842_v33, %v2160_v44 }
 0x227   : > { %v2225_v50 = vsel %vm2097_vm15, %v3844_v61, %v2161_v28 }
 0x228   : > { %v1988_v57 = vpop.f32.mrb[32].mxu0  ;;  %v2226_v23 = vsel %vm2098_vm0, %v3846_v34, %v2162_v49  ;;  %v2273_v43 = vpack.c.bf16 %v2225_v50, %v2223_v35 }
 0x229   : > { %v3848_v39 = vadd.f32 %v3847_v37, %v1988_v57  ;;  %v1990_v26 = vpop.f32.mrb[33].mxu0  ;;  %v2274_v10 = vpack.c.bf16 %v2226_v23, %v2224_v7  ;;  %v3867_v37 = vadd.f32 %v5401_v20, %v5424_v53  ;;  %v3869_v57 = vadd.f32 %v5403_v27, %v5426_v47 }
 0x22a   : > { %v3850_v29 = vadd.f32 %v3849_v25, %v1990_v26  ;;  %v1992_v52 = vpop.f32.mrb[34].mxu0 }
 0x22b   : > { %v2163_v36 = vmul.f32 0.2, %v3848_v39  ;;  %v3852_v63 = vadd.f32 %v3851_v41, %v1992_v52  ;;  %v1994_v17 = vpop.f32.mrb[35].mxu0  ;;  %2514 = vmatprep.mubr.bf16.mxu1 %v2274_v10  ;;  %vm2099_vm1 = vcmp.gt.f32.partialorder %v3848_v39, 0.0  ;;  %v5917_v10 = vld [vmem:[#allocation4_spill] sm:$0xff]  ;;  %v5918_v52 = vld [vmem:[#allocation5_spill] sm:$0xff] }
 0x22c   : > { %v2164_v2 = vmul.f32 0.2, %v3850_v29  ;;  %v3854_v30 = vadd.f32 %v3853_v54, %v1994_v17  ;;  %2515 = vmatmul.mubr.bf16.gmra.mrb[92].mxu1 %v2273_v43  ;;  %vm2100_vm2 = vcmp.gt.f32.partialorder %v3850_v29, 0.0  ;;  %v3871_v54 = vadd.f32 %v5917_v10, %v5424_v53  ;;  %v5926_v10 = vld [vmem:[#allocation13_spill] sm:$0xff] }
 0x22d   : > { %vm2101_vm3 = vcmp.gt.f32.partialorder %v3852_v63, 0.0  ;;  %v2165_v42 = vmul.f32 0.2, %v3852_v63  ;;  %v2227_v55 = vsel %vm2099_vm1, %v3848_v39, %v2163_v36  ;;  %v3873_v36 = vadd.f32 %v5918_v52, %v5426_v47 }
 0x22e   : > { %vm2102_vm4 = vcmp.gt.f32.partialorder %v3854_v30, 0.0  ;;  %v2166_v14 = vmul.f32 0.2, %v3854_v30  ;;  %v2228_v22 = vsel %vm2100_vm2, %v3850_v29, %v2164_v2 }
 0x22f   : > { %v2229_v60 = vsel %vm2101_vm3, %v3852_v63, %v2165_v42  ;;  %v5919_v42 = vld [vmem:[#allocation6_spill] sm:$0xff] }
 0x230   : > { %v1998_v51 = vpop.f32.mrb[36].mxu0  ;;  %v2230_v9 = vsel %vm2102_vm4, %v3854_v30, %v2166_v14  ;;  %v2275_v12 = vpack.c.bf16 %v2229_v60, %v2227_v55  ;;  %v3875_v14 = vadd.f32 %v5919_v42, %v5424_v53 }
 0x231   : > { %v3856_v5 = vadd.f32 %v3855_v59, %v1998_v51  ;;  %v2000_v4 = vpop.f32.mrb[37].mxu0  ;;  %v2276_v45 = vpack.c.bf16 %v2230_v9, %v2228_v22 }
 0x232   : > { %v3858_v11 = vadd.f32 %v3857_v40, %v2000_v4  ;;  %v2002_v62 = vpop.f32.mrb[38].mxu0  ;;  %v5920_v40 = vld [vmem:[#allocation7_spill] sm:$0xff] }
 0x233   : > { %v2167_v31 = vmul.f32 0.2, %v3856_v5  ;;  %v3860_v38 = vadd.f32 %v3859_v56, %v2002_v62  ;;  %v2004_v21 = vpop.f32.mrb[39].mxu0  ;;  %2522 = vmatprep.mubr.bf16.mxu1 %v2276_v45  ;;  %vm2103_vm5 = vcmp.gt.f32.partialorder %v3856_v5, 0.0  ;;  %v3877_v51 = vadd.f32 %v5920_v40, %v5426_v47  ;;  %v5921_v62 = vld [vmem:[#allocation8_spill] sm:$0xff] }
 0x234   : > { %v2168_v3 = vmul.f32 0.2, %v3858_v11  ;;  %v3862_v33 = vadd.f32 %v3861_v6, %v2004_v21  ;;  %2523 = vmatmul.mubr.bf16.gmra.mrb[96].mxu1 %v2275_v12  ;;  %vm2104_vm6 = vcmp.gt.f32.partialorder %v3858_v11, 0.0 }
 0x235   : > { %vm2105_vm7 = vcmp.gt.f32.partialorder %v3860_v38, 0.0  ;;  %v2169_v46 = vmul.f32 0.2, %v3860_v38  ;;  %v2231_v61 = vsel %vm2103_vm5, %v3856_v5, %v2167_v31  ;;  %v3879_v31 = vadd.f32 %v5921_v62, %v5424_v53  ;;  %v5930_v62 = vld [vmem:[#allocation17_spill] sm:$0xff] }
 0x236   : > { %vm2106_vm8 = vcmp.gt.f32.partialorder %v3862_v33, 0.0  ;;  %v2170_v13 = vmul.f32 0.2, %v3862_v33  ;;  %v2232_v34 = vsel %vm2104_vm6, %v3858_v11, %v2168_v3  ;;  %v5922_v3 = vld [vmem:[#allocation9_spill] sm:$0xff] }
 0x237   : > { %v2233_v24 = vsel %vm2105_vm7, %v3860_v38, %v2169_v46 }
 0x238   : > { %v2008_v44 = vpop.f32.mrb[40].mxu0  ;;  %v2234_v28 = vsel %vm2106_vm8, %v3862_v33, %v2170_v13  ;;  %v2277_v49 = vpack.c.bf16 %v2233_v24, %v2231_v61  ;;  %v3881_v33 = vadd.f32 %v5922_v3, %v5426_v47  ;;  %v5923_v24 = vld [vmem:[#allocation10_spill] sm:$0xff] }
 0x239   : > { %v3864_v35 = vadd.f32 %v3863_v8, %v2008_v44  ;;  %v2010_v50 = vpop.f32.mrb[41].mxu0  ;;  %v2278_v25 = vpack.c.bf16 %v2234_v28, %v2232_v34 }
 0x23a   : > { %v3866_v7 = vadd.f32 %v3865_v15, %v2010_v50  ;;  %v2012_v16 = vpop.f32.mrb[42].mxu0  ;;  %v3883_v15 = vadd.f32 %v5923_v24, %v5424_v53  ;;  %v3901_v24 = vadd.f32 %v5454_v32, %v5426_v47 }
 0x23b   : > { %v2171_v23 = vmul.f32 0.2, %v3864_v35  ;;  %v3868_v43 = vadd.f32 %v3867_v37, %v2012_v16  ;;  %v2014_v41 = vpop.f32.mrb[43].mxu0  ;;  %2530 = vmatprep.mubr.bf16.mxu1 %v2278_v25  ;;  %vm2107_vm9 = vcmp.gt.f32.partialorder %v3864_v35, 0.0 }
 0x23c   : > { %v2172_v19 = vmul.f32 0.2, %v3866_v7  ;;  %v3870_v39 = vadd.f32 %v3869_v57, %v2014_v41  ;;  %2531 = vmatmul.mubr.bf16.gmra.mrb[100].mxu1 %v2277_v49  ;;  %vm2108_vm10 = vcmp.gt.f32.partialorder %v3866_v7, 0.0  ;;  %v5924_v49 = vld [vmem:[#allocation11_spill] sm:$0xff] }
 0x23d   : > { %vm2109_vm11 = vcmp.gt.f32.partialorder %v3868_v43, 0.0  ;;  %v2173_v26 = vmul.f32 0.2, %v3868_v43  ;;  %v2235_v29 = vsel %vm2107_vm9, %v3864_v35, %v2171_v23  ;;  %v3885_v37 = vadd.f32 %v5924_v49, %v5426_v47 }
 0x23e   : > { %vm2110_vm12 = vcmp.gt.f32.partialorder %v3870_v39, 0.0  ;;  %v2174_v20 = vmul.f32 0.2, %v3870_v39  ;;  %v2236_v17 = vsel %vm2108_vm10, %v3866_v7, %v2172_v19  ;;  %v5925_v19 = vld [vmem:[#allocation12_spill] sm:$0xff] }
 0x23f   : > { %v2237_v27 = vsel %vm2109_vm11, %v3868_v43, %v2173_v26 }
 0x240   : > { %v2018_v63 = vpop.f32.mrb[44].mxu0  ;;  %v2238_v2 = vsel %vm2110_vm12, %v3870_v39, %v2174_v20  ;;  %v2279_v30 = vpack.c.bf16 %v2237_v27, %v2235_v29  ;;  %v3887_v39 = vadd.f32 %v5925_v19, %v5424_v53  ;;  %v3907_v19 = vadd.f32 %v5466_v1, %v5424_v53 }
 0x241   : > { %v3872_v59 = vadd.f32 %v3871_v54, %v2018_v63  ;;  %v2020_v55 = vpop.f32.mrb[45].mxu0  ;;  %v2280_v60 = vpack.c.bf16 %v2238_v2, %v2236_v17  ;;  %v3889_v54 = vadd.f32 %v5926_v10, %v5426_v47  ;;  %v5927_v63 = vld [vmem:[#allocation14_spill] sm:$0xff]  ;;  %v3909_v10 = vadd.f32 %v5470_v48, %v5426_v47 }
 0x242   : > { %v3874_v22 = vadd.f32 %v3873_v36, %v2020_v55  ;;  %v2022_v9 = vpop.f32.mrb[46].mxu0  ;;  %v3891_v17 = vadd.f32 %v5927_v63, %v5424_v53 }
 0x243   : > { %v2175_v12 = vmul.f32 0.2, %v3872_v59  ;;  %v3876_v56 = vadd.f32 %v3875_v14, %v2022_v9  ;;  %v2024_v5 = vpop.f32.mrb[47].mxu0  ;;  %2538 = vmatprep.mubr.bf16.mxu1 %v2280_v60  ;;  %vm2111_vm13 = vcmp.gt.f32.partialorder %v3872_v59, 0.0  ;;  %v5928_v14 = vld [vmem:[#allocation15_spill] sm:$0xff] }
 0x244   : > { %v2176_v4 = vmul.f32 0.2, %v3874_v22  ;;  %v3878_v45 = vadd.f32 %v3877_v51, %v2024_v5  ;;  %2539 = vmatmul.mubr.bf16.gmra.mrb[104].mxu1 %v2279_v30  ;;  %vm2112_vm14 = vcmp.gt.f32.partialorder %v3874_v22, 0.0 }
 0x245   : > { %vm2113_vm15 = vcmp.gt.f32.partialorder %v3876_v56, 0.0  ;;  %v2177_v6 = vmul.f32 0.2, %v3876_v56  ;;  %v2239_v38 = vsel %vm2111_vm13, %v3872_v59, %v2175_v12  ;;  %v3893_v59 = vadd.f32 %v5928_v14, %v5426_v47  ;;  %v5583_v14 = vld [vmem:[%s5898_s4] ss:$0 sm:$0xff] }
 0x246   : > { %vm2114_vm0 = vcmp.gt.f32.partialorder %v3878_v45, 0.0  ;;  %v2178_v11 = vmul.f32 0.2, %v3878_v45  ;;  %v2240_v13 = vsel %vm2112_vm14, %v3874_v22, %v2176_v4  ;;  %v5929_v4 = vld [vmem:[#allocation16_spill] sm:$0xff] }
 0x247   : > { %v2241_v21 = vsel %vm2113_vm15, %v3876_v56, %v2177_v6 }
 0x248   : > { %v2028_v46 = vpop.f32.mrb[48].mxu0  ;;  %v2242_v8 = vsel %vm2114_vm0, %v3878_v45, %v2178_v11  ;;  %v2281_v61 = vpack.c.bf16 %v2241_v21, %v2239_v38  ;;  %v3895_v45 = vadd.f32 %v5929_v4, %v5424_v53 }
 0x249   : > { %v3880_v44 = vadd.f32 %v3879_v31, %v2028_v46  ;;  %v2030_v34 = vpop.f32.mrb[49].mxu0  ;;  %v2282_v28 = vpack.c.bf16 %v2242_v8, %v2240_v13  ;;  %v3897_v31 = vadd.f32 %v5930_v62, %v5426_v47  ;;  %v3899_v46 = vadd.f32 %v5450_v0, %v5424_v53 }
 0x24a   : > { %v3882_v35 = vadd.f32 %v3881_v33, %v2030_v34  ;;  %v2032_v50 = vpop.f32.mrb[50].mxu0 }
 0x24b   : > { %v2179_v25 = vmul.f32 0.2, %v3880_v44  ;;  %v3884_v57 = vadd.f32 %v3883_v15, %v2032_v50  ;;  %v2034_v7 = vpop.f32.mrb[51].mxu0  ;;  %2546 = vmatprep.mubr.bf16.mxu1 %v2282_v28  ;;  %vm2115_vm1 = vcmp.gt.f32.partialorder %v3880_v44, 0.0 }
 0x24c   : > { %v2180_v16 = vmul.f32 0.2, %v3882_v35  ;;  %v3886_v23 = vadd.f32 %v3885_v37, %v2034_v7  ;;  %2547 = vmatmul.mubr.bf16.gmra.mrb[108].mxu1 %v2281_v61  ;;  %vm2116_vm2 = vcmp.gt.f32.partialorder %v3882_v35, 0.0  ;;  %v3905_v7 = vadd.f32 %v5462_v58, %v5426_v47 }
 0x24d   : > { %vm2117_vm3 = vcmp.gt.f32.partialorder %v3884_v57, 0.0  ;;  %v2181_v43 = vmul.f32 0.2, %v3884_v57  ;;  %v2243_v26 = vsel %vm2115_vm1, %v3880_v44, %v2179_v25  ;;  %v3903_v25 = vadd.f32 %v5460_v18, %v5424_v53 }
 0x24e   : > { %vm2118_vm4 = vcmp.gt.f32.partialorder %v3886_v23, 0.0  ;;  %v2182_v41 = vmul.f32 0.2, %v3886_v23  ;;  %v2244_v27 = vsel %vm2116_vm2, %v3882_v35, %v2180_v16 }
 0x24f   : > { %v2245_v20 = vsel %vm2117_vm3, %v3884_v57, %v2181_v43 }
 0x250   : > { %v2038_v29 = vpop.f32.mrb[52].mxu0  ;;  %v2246_v52 = vsel %vm2118_vm4, %v3886_v23, %v2182_v41  ;;  %v2283_v36 = vpack.c.bf16 %v2245_v20, %v2243_v26 }
 0x251   : > { %v3888_v2 = vadd.f32 %v3887_v39, %v2038_v29  ;;  %v2040_v30 = vpop.f32.mrb[53].mxu0  ;;  %v2284_v42 = vpack.c.bf16 %v2246_v52, %v2244_v27 }
 0x252   : > { %v3890_v55 = vadd.f32 %v3889_v54, %v2040_v30  ;;  %v2042_v60 = vpop.f32.mrb[54].mxu0 }
 0x253   : > { %v2183_v40 = vmul.f32 0.2, %v3888_v2  ;;  %v3892_v51 = vadd.f32 %v3891_v17, %v2042_v60  ;;  %v2044_v22 = vpop.f32.mrb[55].mxu0  ;;  %2554 = vmatprep.mubr.bf16.mxu1 %v2284_v42  ;;  %vm2119_vm5 = vcmp.gt.f32.partialorder %v3888_v2, 0.0 }
 0x254   : > { %v2184_v9 = vmul.f32 0.2, %v3890_v55  ;;  %v3894_v12 = vadd.f32 %v3893_v59, %v2044_v22  ;;  %2555 = vmatmul.mubr.bf16.gmra.mrb[112].mxu1 %v2283_v36  ;;  %vm2120_vm6 = vcmp.gt.f32.partialorder %v3890_v55, 0.0 }
 0x255   : > { %vm2121_vm7 = vcmp.gt.f32.partialorder %v3892_v51, 0.0  ;;  %v2185_v56 = vmul.f32 0.2, %v3892_v51  ;;  %v2247_v6 = vsel %vm2119_vm5, %v3888_v2, %v2183_v40 }
 0x256   : > { %vm2122_vm8 = vcmp.gt.f32.partialorder %v3894_v12, 0.0  ;;  %v2186_v5 = vmul.f32 0.2, %v3894_v12  ;;  %v2248_v21 = vsel %vm2120_vm6, %v3890_v55, %v2184_v9 }
 0x257   : > { %v2249_v11 = vsel %vm2121_vm7, %v3892_v51, %v2185_v56  ;;  %v5590_v56 = vld [vmem:[%s5899_s5] ss:$0 sm:$0xff] }
 0x258   : > { %v2048_v38 = vpop.f32.mrb[56].mxu0  ;;  %v2250_v3 = vsel %vm2122_vm8, %v3894_v12, %v2186_v5  ;;  %v2285_v33 = vpack.c.bf16 %v2249_v11, %v2247_v6 }
 0x259   : > { %v3896_v13 = vadd.f32 %v3895_v45, %v2048_v38  ;;  %v2050_v8 = vpop.f32.mrb[57].mxu0  ;;  %v2286_v61 = vpack.c.bf16 %v2250_v3, %v2248_v21 }
 0x25a   : > { %v3898_v15 = vadd.f32 %v3897_v31, %v2050_v8  ;;  %v2052_v44 = vpop.f32.mrb[58].mxu0 }
 0x25b   : > { %v2187_v34 = vmul.f32 0.2, %v3896_v13  ;;  %v3900_v28 = vadd.f32 %v3899_v46, %v2052_v44  ;;  %v2054_v49 = vpop.f32.mrb[59].mxu0  ;;  %2562 = vmatprep.mubr.bf16.mxu1 %v2286_v61  ;;  %vm2123_vm9 = vcmp.gt.f32.partialorder %v3896_v13, 0.0 }
 0x25c   : > { %v2188_v37 = vmul.f32 0.2, %v3898_v15  ;;  %v3902_v35 = vadd.f32 %v3901_v24, %v2054_v49  ;;  %2563 = vmatmul.mubr.bf16.gmra.mrb[116].mxu1 %v2285_v33  ;;  %vm2124_vm10 = vcmp.gt.f32.partialorder %v3898_v15, 0.0 }
 0x25d   : > { %vm2125_vm11 = vcmp.gt.f32.partialorder %v3900_v28, 0.0  ;;  %v2189_v50 = vmul.f32 0.2, %v3900_v28  ;;  %v2251_v57 = vsel %vm2123_vm9, %v3896_v13, %v2187_v34 }
 0x25e   : > { %vm2126_vm12 = vcmp.gt.f32.partialorder %v3902_v35, 0.0  ;;  %v2190_v0 = vmul.f32 0.2, %v3902_v35  ;;  %v2252_v23 = vsel %vm2124_vm10, %v3898_v15, %v2188_v37 }
 0x25f   : > { %v2253_v32 = vsel %vm2125_vm11, %v3900_v28, %v2189_v50 }
 0x260   : > { %v2058_v16 = vpop.f32.mrb[60].mxu0  ;;  %v2254_v43 = vsel %vm2126_vm12, %v3902_v35, %v2190_v0  ;;  %v2287_v41 = vpack.c.bf16 %v2253_v32, %v2251_v57 }
 0x261   : > { %v3904_v39 = vadd.f32 %v3903_v25, %v2058_v16  ;;  %v2060_v26 = vpop.f32.mrb[61].mxu0  ;;  %v2288_v20 = vpack.c.bf16 %v2254_v43, %v2252_v23 }
 0x262   : > { %v3906_v54 = vadd.f32 %v3905_v7, %v2060_v26  ;;  %v2062_v18 = vpop.f32.mrb[62].mxu0 }
 0x263   : > { %v2191_v29 = vmul.f32 0.2, %v3904_v39  ;;  %v3908_v27 = vadd.f32 %v3907_v19, %v2062_v18  ;;  %v2064_v52 = vpop.f32.mrb[63].mxu0  ;;  %2570 = vmatprep.mubr.bf16.mxu1 %v2288_v20  ;;  %vm2127_vm13 = vcmp.gt.f32.partialorder %v3904_v39, 0.0 }
 0x264   : > { %v2192_v58 = vmul.f32 0.2, %v3906_v54  ;;  %v3910_v36 = vadd.f32 %v3909_v10, %v2064_v52  ;;  %2571 = vmatmul.mubr.bf16.gmra.mrb[120].mxu1 %v2287_v41  ;;  %vm2128_vm14 = vcmp.gt.f32.partialorder %v3906_v54, 0.0 }
 0x265   : > { %vm2129_vm15 = vcmp.gt.f32.partialorder %v3908_v27, 0.0  ;;  %v2193_v63 = vmul.f32 0.2, %v3908_v27  ;;  %v2255_v1 = vsel %vm2127_vm13, %v3904_v39, %v2191_v29 }
 0x266   : > { %vm2130_vm0 = vcmp.gt.f32.partialorder %v3910_v36, 0.0  ;;  %v2194_v53 = vmul.f32 0.2, %v3910_v36  ;;  %v2256_v2 = vsel %vm2128_vm14, %v3906_v54, %v2192_v58 }
 0x267   : > { %v2257_v17 = vsel %vm2129_vm15, %v3908_v27, %v2193_v63 }
 0x268   : > { %v2258_v30 = vsel %vm2130_vm0, %v3910_v36, %v2194_v53  ;;  %v2289_v47 = vpack.c.bf16 %v2257_v17, %v2255_v1 }
 0x269   : > { %v2290_v48 = vpack.c.bf16 %v2258_v30, %v2256_v2 }
 0x26b   : > { %2578 = vmatprep.mubr.bf16.mxu1 %v2290_v48 }
 0x26c   : > { %2579 = vmatmul.mubr.bf16.gmra.mrb[124].mxu1 %v2289_v47 }
 0x2c7   : > { %v3655_v42 = vpop.f32.mrb[64].mxu1 }
 0x2c8   : > { %v3656_v59 = vpop.f32.mrb[65].mxu1 }
 0x2c9   : > { %v3657_v55 = vadd.f32 %v3656_v59, %v3655_v42  ;;  %v3658_v60 = vpop.f32.mrb[66].mxu1 }
 0x2ca   : > { %v3659_v40 = vpop.f32.mrb[67].mxu1 }
 0x2cb   : > { %v2461_v51 = vadd.f32 %v3657_v55, %v5583_v14  ;;  %v3660_v22 = vadd.f32 %v3659_v40, %v3658_v60 }
 0x2cd   : > { %v2464_v9 = vadd.f32 %v3660_v22, %v5583_v14  ;;  %vm2587_vm1 = vcmp.gt.f32.partialorder %v2461_v51, 0.0  ;;  %v2619_v12 = vmul.f32 0.2, %v2461_v51 }
 0x2cf   : > { %v3661_v5 = vpop.f32.mrb[68].mxu1  ;;  %v2651_v4 = vsel %vm2587_vm1, %v2461_v51, %v2619_v12  ;;  %vm2588_vm2 = vcmp.gt.f32.partialorder %v2464_v9, 0.0  ;;  %v2620_v45 = vmul.f32 0.2, %v2464_v9 }
 0x2d0   : > { %v3662_v6 = vpop.f32.mrb[69].mxu1  ;;  %v2690_v11 = vmul.f32 %v5590_v56, %v2651_v4 }
 0x2d1   : > { %v3663_v62 = vadd.f32 %v3662_v6, %v3661_v5  ;;  %v3664_v31 = vpop.f32.mrb[70].mxu1  ;;  %v2652_v38 = vsel %vm2588_vm2, %v2464_v9, %v2620_v45 }
 0x2d2   : > { %v3665_v21 = vpop.f32.mrb[71].mxu1  ;;  %2722 = vadd.xlane.f32.xlu0 %v2690_v11  ;;  %v2691_v46 = vmul.f32 %v5590_v56, %v2652_v38 }
 0x2d3   : > { %v2469_v3 = vadd.f32 %v3663_v62, %v5583_v14  ;;  %v3666_v33 = vadd.f32 %v3665_v21, %v3664_v31 }
 0x2d5   : > { %v2472_v13 = vadd.f32 %v3666_v33, %v5583_v14  ;;  %vm2589_vm3 = vcmp.gt.f32.partialorder %v2469_v3, 0.0  ;;  %v2621_v8 = vmul.f32 0.2, %v2469_v3 }
 0x2d6   : > { %2724 = vadd.xlane.f32.xlu0 %v2691_v46 }
 0x2d7   : > { %v3667_v61 = vpop.f32.mrb[72].mxu1  ;;  %v2653_v24 = vsel %vm2589_vm3, %v2469_v3, %v2621_v8  ;;  %vm2590_vm4 = vcmp.gt.f32.partialorder %v2472_v13, 0.0  ;;  %v2622_v15 = vmul.f32 0.2, %v2472_v13 }
 0x2d8   : > { %v3668_v44 = vpop.f32.mrb[73].mxu1  ;;  %v2692_v34 = vmul.f32 %v5590_v56, %v2653_v24 }
 0x2d9   : > { %v3669_v28 = vadd.f32 %v3668_v44, %v3667_v61  ;;  %v3670_v49 = vpop.f32.mrb[74].mxu1  ;;  %v2654_v37 = vsel %vm2590_vm4, %v2472_v13, %v2622_v15 }
 0x2da   : > { %v3671_v35 = vpop.f32.mrb[75].mxu1  ;;  %2726 = vadd.xlane.f32.xlu1 %v2692_v34  ;;  %v2693_v25 = vmul.f32 %v5590_v56, %v2654_v37 }
 0x2db   : > { %v2477_v50 = vadd.f32 %v3669_v28, %v5583_v14  ;;  %v3672_v0 = vadd.f32 %v3671_v35, %v3670_v49 }
 0x2dd   : > { %v2480_v57 = vadd.f32 %v3672_v0, %v5583_v14  ;;  %vm2591_vm5 = vcmp.gt.f32.partialorder %v2477_v50, 0.0  ;;  %v2623_v32 = vmul.f32 0.2, %v2477_v50 }
 0x2de   : > { %2728 = vadd.xlane.f32.xlu1 %v2693_v25 }
 0x2df   : > { %v3673_v7 = vpop.f32.mrb[76].mxu1  ;;  %v2655_v16 = vsel %vm2591_vm5, %v2477_v50, %v2623_v32  ;;  %vm2592_vm6 = vcmp.gt.f32.partialorder %v2480_v57, 0.0  ;;  %v2624_v23 = vmul.f32 0.2, %v2480_v57 }
 0x2e0   : > { %v3674_v43 = vpop.f32.mrb[77].mxu1  ;;  %v2694_v41 = vmul.f32 %v5590_v56, %v2655_v16 }
 0x2e1   : > { %v3675_v19 = vadd.f32 %v3674_v43, %v3673_v7  ;;  %v3676_v39 = vpop.f32.mrb[78].mxu1  ;;  %v2656_v26 = vsel %vm2592_vm6, %v2480_v57, %v2624_v23 }
 0x2e2   : > { %v3677_v20 = vpop.f32.mrb[79].mxu1  ;;  %2730 = vadd.xlane.f32.xlu0 %v2694_v41  ;;  %v2695_v10 = vmul.f32 %v5590_v56, %v2656_v26 }
 0x2e3   : > { %v2485_v54 = vadd.f32 %v3675_v19, %v5583_v14  ;;  %v3678_v18 = vadd.f32 %v3677_v20, %v3676_v39 }
 0x2e4   : > { %2732 = vadd.xlane.f32.xlu1 %v2695_v10 }
 0x2e5   : > { %v2488_v29 = vadd.f32 %v3678_v18, %v5583_v14  ;;  %vm2593_vm7 = vcmp.gt.f32.partialorder %v2485_v54, 0.0  ;;  %v2625_v27 = vmul.f32 0.2, %v2485_v54 }
 0x2e7   : > { %v3679_v52 = vpop.f32.mrb[80].mxu1  ;;  %v2657_v58 = vsel %vm2593_vm7, %v2485_v54, %v2625_v27  ;;  %vm2594_vm8 = vcmp.gt.f32.partialorder %v2488_v29, 0.0  ;;  %v2626_v36 = vmul.f32 0.2, %v2488_v29 }
 0x2e8   : > { %v3680_v63 = vpop.f32.mrb[81].mxu1  ;;  %v2696_v53 = vmul.f32 %v5590_v56, %v2657_v58 }
 0x2e9   : > { %v3681_v1 = vadd.f32 %v3680_v63, %v3679_v52  ;;  %v3682_v17 = vpop.f32.mrb[82].mxu1  ;;  %v2658_v2 = vsel %vm2594_vm8, %v2488_v29, %v2626_v36 }
 0x2ea   : > { %v3683_v30 = vpop.f32.mrb[83].mxu1  ;;  %2734 = vadd.xlane.f32.xlu0 %v2696_v53  ;;  %v2697_v47 = vmul.f32 %v5590_v56, %v2658_v2 }
 0x2eb   : > { %v2493_v48 = vadd.f32 %v3681_v1, %v5583_v14  ;;  %v3684_v42 = vadd.f32 %v3683_v30, %v3682_v17 }
 0x2ec   : > { %2736 = vadd.xlane.f32.xlu1 %v2697_v47 }
 0x2ed   : > { %v2496_v59 = vadd.f32 %v3684_v42, %v5583_v14  ;;  %vm2595_vm9 = vcmp.gt.f32.partialorder %v2493_v48, 0.0  ;;  %v2627_v55 = vmul.f32 0.2, %v2493_v48 }
 0x2ef   : > { %v3685_v60 = vpop.f32.mrb[84].mxu1  ;;  %v2659_v40 = vsel %vm2595_vm9, %v2493_v48, %v2627_v55  ;;  %vm2596_vm10 = vcmp.gt.f32.partialorder %v2496_v59, 0.0  ;;  %v2628_v51 = vmul.f32 0.2, %v2496_v59 }
 0x2f0   : > { %v3686_v22 = vpop.f32.mrb[85].mxu1  ;;  %v2698_v9 = vmul.f32 %v5590_v56, %v2659_v40 }
 0x2f1   : > { %v3687_v12 = vadd.f32 %v3686_v22, %v3685_v60  ;;  %v3688_v5 = vpop.f32.mrb[86].mxu1  ;;  %v2660_v4 = vsel %vm2596_vm10, %v2496_v59, %v2628_v51 }
 0x2f2   : > { %v3689_v45 = vpop.f32.mrb[87].mxu1  ;;  %2738 = vadd.xlane.f32.xlu0 %v2698_v9  ;;  %v2699_v6 = vmul.f32 %v5590_v56, %v2660_v4 }
 0x2f3   : > { %v2501_v11 = vadd.f32 %v3687_v12, %v5583_v14  ;;  %v3690_v62 = vadd.f32 %v3689_v45, %v3688_v5 }
 0x2f4   : > { %2740 = vadd.xlane.f32.xlu1 %v2699_v6 }
 0x2f5   : > { %v2504_v31 = vadd.f32 %v3690_v62, %v5583_v14  ;;  %vm2597_vm11 = vcmp.gt.f32.partialorder %v2501_v11, 0.0  ;;  %v2629_v38 = vmul.f32 0.2, %v2501_v11 }
 0x2f7   : > { %v3691_v21 = vpop.f32.mrb[88].mxu1  ;;  %v2661_v3 = vsel %vm2597_vm11, %v2501_v11, %v2629_v38  ;;  %vm2598_vm12 = vcmp.gt.f32.partialorder %v2504_v31, 0.0  ;;  %v2630_v33 = vmul.f32 0.2, %v2504_v31 }
 0x2f8   : > { %v3692_v46 = vpop.f32.mrb[89].mxu1  ;;  %v2700_v13 = vmul.f32 %v5590_v56, %v2661_v3 }
 0x2f9   : > { %v3693_v8 = vadd.f32 %v3692_v46, %v3691_v21  ;;  %v3694_v61 = vpop.f32.mrb[90].mxu1  ;;  %v2662_v24 = vsel %vm2598_vm12, %v2504_v31, %v2630_v33 }
 0x2fa   : > { %v3695_v15 = vpop.f32.mrb[91].mxu1  ;;  %2742 = vadd.xlane.f32.xlu0 %v2700_v13  ;;  %v2701_v44 = vmul.f32 %v5590_v56, %v2662_v24 }
 0x2fb   : > { %v2509_v34 = vadd.f32 %v3693_v8, %v5583_v14  ;;  %v3696_v28 = vadd.f32 %v3695_v15, %v3694_v61 }
 0x2fc   : > { %2744 = vadd.xlane.f32.xlu1 %v2701_v44 }
 0x2fd   : > { %v2512_v49 = vadd.f32 %v3696_v28, %v5583_v14  ;;  %vm2599_vm13 = vcmp.gt.f32.partialorder %v2509_v34, 0.0  ;;  %v2631_v37 = vmul.f32 0.2, %v2509_v34 }
 0x2ff   : > { %v3697_v35 = vpop.f32.mrb[92].mxu1  ;;  %v2663_v50 = vsel %vm2599_vm13, %v2509_v34, %v2631_v37  ;;  %vm2600_vm14 = vcmp.gt.f32.partialorder %v2512_v49, 0.0  ;;  %v2632_v0 = vmul.f32 0.2, %v2512_v49 }
 0x300   : > { %v3698_v25 = vpop.f32.mrb[93].mxu1  ;;  %v2702_v57 = vmul.f32 %v5590_v56, %v2663_v50 }
 0x301   : > { %v3699_v32 = vadd.f32 %v3698_v25, %v3697_v35  ;;  %v3700_v7 = vpop.f32.mrb[94].mxu1  ;;  %v2664_v16 = vsel %vm2600_vm14, %v2512_v49, %v2632_v0 }
 0x302   : > { %v3701_v23 = vpop.f32.mrb[95].mxu1  ;;  %2746 = vadd.xlane.f32.xlu0 %v2702_v57  ;;  %v2703_v43 = vmul.f32 %v5590_v56, %v2664_v16 }
 0x303   : > { %v2517_v41 = vadd.f32 %v3699_v32, %v5583_v14  ;;  %v3702_v19 = vadd.f32 %v3701_v23, %v3700_v7 }
 0x304   : > { %2748 = vadd.xlane.f32.xlu1 %v2703_v43 }
 0x305   : > { %v2520_v39 = vadd.f32 %v3702_v19, %v5583_v14  ;;  %vm2601_vm15 = vcmp.gt.f32.partialorder %v2517_v41, 0.0  ;;  %v2633_v26 = vmul.f32 0.2, %v2517_v41 }
 0x307   : > { %v3703_v20 = vpop.f32.mrb[96].mxu1  ;;  %v2665_v10 = vsel %vm2601_vm15, %v2517_v41, %v2633_v26  ;;  %vm2602_vm0 = vcmp.gt.f32.partialorder %v2520_v39, 0.0  ;;  %v2634_v54 = vmul.f32 0.2, %v2520_v39 }
 0x308   : > { %v3704_v18 = vpop.f32.mrb[97].mxu1  ;;  %v2704_v29 = vmul.f32 %v5590_v56, %v2665_v10 }
 0x309   : > { %v3705_v27 = vadd.f32 %v3704_v18, %v3703_v20  ;;  %v3706_v52 = vpop.f32.mrb[98].mxu1  ;;  %v2666_v58 = vsel %vm2602_vm0, %v2520_v39, %v2634_v54 }
 0x30a   : > { %v3707_v36 = vpop.f32.mrb[99].mxu1  ;;  %2750 = vadd.xlane.f32.xlu0 %v2704_v29  ;;  %v2705_v63 = vmul.f32 %v5590_v56, %v2666_v58 }
 0x30b   : > { %v2525_v53 = vadd.f32 %v3705_v27, %v5583_v14  ;;  %v3708_v1 = vadd.f32 %v3707_v36, %v3706_v52 }
 0x30c   : > { %2752 = vadd.xlane.f32.xlu1 %v2705_v63 }
 0x30d   : > { %v2528_v17 = vadd.f32 %v3708_v1, %v5583_v14  ;;  %vm2603_vm1 = vcmp.gt.f32.partialorder %v2525_v53, 0.0  ;;  %v2635_v2 = vmul.f32 0.2, %v2525_v53 }
 0x30f   : > { %v3709_v30 = vpop.f32.mrb[100].mxu1  ;;  %v2667_v47 = vsel %vm2603_vm1, %v2525_v53, %v2635_v2  ;;  %vm2604_vm2 = vcmp.gt.f32.partialorder %v2528_v17, 0.0  ;;  %v2636_v48 = vmul.f32 0.2, %v2528_v17 }
 0x310   : > { %v3710_v42 = vpop.f32.mrb[101].mxu1  ;;  %v2706_v59 = vmul.f32 %v5590_v56, %v2667_v47 }
 0x311   : > { %v3711_v55 = vadd.f32 %v3710_v42, %v3709_v30  ;;  %v3712_v60 = vpop.f32.mrb[102].mxu1  ;;  %v2668_v40 = vsel %vm2604_vm2, %v2528_v17, %v2636_v48 }
 0x312   : > { %v3713_v51 = vpop.f32.mrb[103].mxu1  ;;  %2754 = vadd.xlane.f32.xlu0 %v2706_v59  ;;  %v2707_v22 = vmul.f32 %v5590_v56, %v2668_v40 }
 0x313   : > { %v2533_v9 = vadd.f32 %v3711_v55, %v5583_v14  ;;  %v3714_v12 = vadd.f32 %v3713_v51, %v3712_v60 }
 0x314   : > { %2756 = vadd.xlane.f32.xlu1 %v2707_v22 }
 0x315   : > { %v2536_v5 = vadd.f32 %v3714_v12, %v5583_v14  ;;  %vm2605_vm3 = vcmp.gt.f32.partialorder %v2533_v9, 0.0  ;;  %v2637_v4 = vmul.f32 0.2, %v2533_v9 }
 0x317   : > { %v3715_v45 = vpop.f32.mrb[104].mxu1  ;;  %v2669_v6 = vsel %vm2605_vm3, %v2533_v9, %v2637_v4  ;;  %vm2606_vm4 = vcmp.gt.f32.partialorder %v2536_v5, 0.0  ;;  %v2638_v11 = vmul.f32 0.2, %v2536_v5 }
 0x318   : > { %v3716_v62 = vpop.f32.mrb[105].mxu1  ;;  %v2708_v31 = vmul.f32 %v5590_v56, %v2669_v6 }
 0x319   : > { %v3717_v38 = vadd.f32 %v3716_v62, %v3715_v45  ;;  %v3718_v21 = vpop.f32.mrb[106].mxu1  ;;  %v2670_v3 = vsel %vm2606_vm4, %v2536_v5, %v2638_v11 }
 0x31a   : > { %v3719_v33 = vpop.f32.mrb[107].mxu1  ;;  %2758 = vadd.xlane.f32.xlu0 %v2708_v31  ;;  %v2709_v46 = vmul.f32 %v5590_v56, %v2670_v3 }
 0x31b   : > { %v2541_v13 = vadd.f32 %v3717_v38, %v5583_v14  ;;  %v3720_v8 = vadd.f32 %v3719_v33, %v3718_v21 }
 0x31c   : > { %2760 = vadd.xlane.f32.xlu1 %v2709_v46 }
 0x31d   : > { %v2544_v61 = vadd.f32 %v3720_v8, %v5583_v14  ;;  %vm2607_vm5 = vcmp.gt.f32.partialorder %v2541_v13, 0.0  ;;  %v2639_v24 = vmul.f32 0.2, %v2541_v13 }
 0x31f   : > { %v3721_v15 = vpop.f32.mrb[108].mxu1  ;;  %v2671_v44 = vsel %vm2607_vm5, %v2541_v13, %v2639_v24  ;;  %vm2608_vm6 = vcmp.gt.f32.partialorder %v2544_v61, 0.0  ;;  %v2640_v34 = vmul.f32 0.2, %v2544_v61 }
 0x320   : > { %v3722_v28 = vpop.f32.mrb[109].mxu1  ;;  %v2710_v49 = vmul.f32 %v5590_v56, %v2671_v44 }
 0x321   : > { %v3723_v37 = vadd.f32 %v3722_v28, %v3721_v15  ;;  %v3724_v35 = vpop.f32.mrb[110].mxu1  ;;  %v2672_v50 = vsel %vm2608_vm6, %v2544_v61, %v2640_v34 }
 0x322   : > { %v3725_v0 = vpop.f32.mrb[111].mxu1  ;;  %2762 = vadd.xlane.f32.xlu0 %v2710_v49  ;;  %v2711_v25 = vmul.f32 %v5590_v56, %v2672_v50 }
 0x323   : > { %v2549_v57 = vadd.f32 %v3723_v37, %v5583_v14  ;;  %v3726_v32 = vadd.f32 %v3725_v0, %v3724_v35 }
 0x324   : > { %2764 = vadd.xlane.f32.xlu1 %v2711_v25 }
 0x325   : > { %v2552_v7 = vadd.f32 %v3726_v32, %v5583_v14  ;;  %vm2609_vm7 = vcmp.gt.f32.partialorder %v2549_v57, 0.0  ;;  %v2641_v16 = vmul.f32 0.2, %v2549_v57 }
 0x327   : > { %v3727_v23 = vpop.f32.mrb[112].mxu1  ;;  %v2673_v43 = vsel %vm2609_vm7, %v2549_v57, %v2641_v16  ;;  %vm2610_vm8 = vcmp.gt.f32.partialorder %v2552_v7, 0.0  ;;  %v2642_v41 = vmul.f32 0.2, %v2552_v7  ;;  %v5654_v16 = vstv %s2786_s24 }
 0x328   : > { %v3728_v19 = vpop.f32.mrb[113].mxu1  ;;  %v2712_v39 = vmul.f32 %v5590_v56, %v2673_v43 }
 0x329   : > { %v3729_v26 = vadd.f32 %v3728_v19, %v3727_v23  ;;  %v3730_v20 = vpop.f32.mrb[114].mxu1  ;;  %v2674_v10 = vsel %vm2610_vm8, %v2552_v7, %v2642_v41 }
 0x32a   : > { %v3731_v54 = vpop.f32.mrb[115].mxu1  ;;  %2766 = vadd.xlane.f32.xlu0 %v2712_v39  ;;  %v2713_v18 = vmul.f32 %v5590_v56, %v2674_v10 }
 0x32b   : > { %v2557_v29 = vadd.f32 %v3729_v26, %v5583_v14  ;;  %v3732_v27 = vadd.f32 %v3731_v54, %v3730_v20 }
 0x32c   : > { %2768 = vadd.xlane.f32.xlu1 %v2713_v18 }
 0x32d   : > { %v2560_v52 = vadd.f32 %v3732_v27, %v5583_v14  ;;  %vm2611_vm9 = vcmp.gt.f32.partialorder %v2557_v29, 0.0  ;;  %v2643_v58 = vmul.f32 0.2, %v2557_v29 }
 0x32f   : > { %v3733_v36 = vpop.f32.mrb[116].mxu1  ;;  %v2675_v63 = vsel %vm2611_vm9, %v2557_v29, %v2643_v58  ;;  %vm2612_vm10 = vcmp.gt.f32.partialorder %v2560_v52, 0.0  ;;  %v2644_v53 = vmul.f32 0.2, %v2560_v52  ;;  %vm3108_vm9 = vcmask 7168  }
 0x330   : > { %v3734_v1 = vpop.f32.mrb[117].mxu1  ;;  %v2714_v17 = vmul.f32 %v5590_v56, %v2675_v63 }
 0x331   : > { %v3735_v2 = vadd.f32 %v3734_v1, %v3733_v36  ;;  %v3736_v30 = vpop.f32.mrb[118].mxu1  ;;  %v2676_v47 = vsel %vm2612_vm10, %v2560_v52, %v2644_v53 }
 0x332   : > { %v3737_v48 = vpop.f32.mrb[119].mxu1  ;;  %2770 = vadd.xlane.f32.xlu0 %v2714_v17  ;;  %v2715_v42 = vmul.f32 %v5590_v56, %v2676_v47 }
 0x333   : > { %v2565_v59 = vadd.f32 %v3735_v2, %v5583_v14  ;;  %v3738_v55 = vadd.f32 %v3737_v48, %v3736_v30 }
 0x334   : > { %2772 = vadd.xlane.f32.xlu1 %v2715_v42 }
 0x335   : > { %v2568_v60 = vadd.f32 %v3738_v55, %v5583_v14  ;;  %vm2613_vm11 = vcmp.gt.f32.partialorder %v2565_v59, 0.0  ;;  %v2645_v40 = vmul.f32 0.2, %v2565_v59 }
 0x337   : > { %v3739_v51 = vpop.f32.mrb[120].mxu1  ;;  %v2677_v22 = vsel %vm2613_vm11, %v2565_v59, %v2645_v40  ;;  %vm2614_vm12 = vcmp.gt.f32.partialorder %v2568_v60, 0.0  ;;  %v2646_v9 = vmul.f32 0.2, %v2568_v60 }
 0x338   : > { %v3740_v12 = vpop.f32.mrb[121].mxu1  ;;  %v2716_v5 = vmul.f32 %v5590_v56, %v2677_v22 }
 0x339   : > { %v3741_v4 = vadd.f32 %v3740_v12, %v3739_v51  ;;  %v3742_v45 = vpop.f32.mrb[122].mxu1  ;;  %v2678_v6 = vsel %vm2614_vm12, %v2568_v60, %v2646_v9 }
 0x33a   : > { %v3743_v11 = vpop.f32.mrb[123].mxu1  ;;  %2774 = vadd.xlane.f32.xlu0 %v2716_v5  ;;  %v2717_v62 = vmul.f32 %v5590_v56, %v2678_v6 }
 0x33b   : > { %v2573_v31 = vadd.f32 %v3741_v4, %v5583_v14  ;;  %v3744_v38 = vadd.f32 %v3743_v11, %v3742_v45 }
 0x33c   : > { %2776 = vadd.xlane.f32.xlu1 %v2717_v62 }
 0x33d   : > { %v2576_v21 = vadd.f32 %v3744_v38, %v5583_v14  ;;  %vm2615_vm13 = vcmp.gt.f32.partialorder %v2573_v31, 0.0  ;;  %v2647_v3 = vmul.f32 0.2, %v2573_v31 }
 0x33f   : > { %v3745_v33 = vpop.f32.mrb[124].mxu1  ;;  %v2679_v46 = vsel %vm2615_vm13, %v2573_v31, %v2647_v3  ;;  %vm2616_vm14 = vcmp.gt.f32.partialorder %v2576_v21, 0.0  ;;  %v2648_v13 = vmul.f32 0.2, %v2576_v21 }
 0x340   : > { %v3746_v8 = vpop.f32.mrb[125].mxu1  ;;  %v2718_v61 = vmul.f32 %v5590_v56, %v2679_v46 }
 0x341   : > { %v3747_v24 = vadd.f32 %v3746_v8, %v3745_v33  ;;  %v3748_v15 = vpop.f32.mrb[126].mxu1  ;;  %v2680_v44 = vsel %vm2616_vm14, %v2576_v21, %v2648_v13 }
 0x342   : > { %v3749_v34 = vpop.f32.mrb[127].mxu1  ;;  %2778 = vadd.xlane.f32.xlu0 %v2718_v61  ;;  %v2719_v28 = vmul.f32 %v5590_v56, %v2680_v44 }
 0x343   : > { %v2581_v49 = vadd.f32 %v3747_v24, %v5583_v14  ;;  %v3750_v37 = vadd.f32 %v3749_v34, %v3748_v15 }
 0x344   : > { %2780 = vadd.xlane.f32.xlu1 %v2719_v28 }
 0x345   : > { %v2584_v35 = vadd.f32 %v3750_v37, %v5583_v14  ;;  %vm2617_vm15 = vcmp.gt.f32.partialorder %v2581_v49, 0.0  ;;  %v2649_v50 = vmul.f32 0.2, %v2581_v49 }
 0x347   : > { %v2681_v0 = vsel %vm2617_vm15, %v2581_v49, %v2649_v50  ;;  %vm2618_vm0 = vcmp.gt.f32.partialorder %v2584_v35, 0.0  ;;  %v2650_v25 = vmul.f32 0.2, %v2584_v35 }
 0x348   : > { %v2720_v57 = vmul.f32 %v5590_v56, %v2681_v0 }
 0x349   : > { %v2682_v32 = vsel %vm2618_vm0, %v2584_v35, %v2650_v25 }
 0x34a   : > { %2782 = vadd.xlane.f32.xlu0 %v2720_v57  ;;  %v2721_v7 = vmul.f32 %v5590_v56, %v2682_v32 }
 0x34c   : > { %2784 = vadd.xlane.f32.xlu1 %v2721_v7 }
 0x35f   : > { %v2723_v23 = vpop.xlane.xlu0 %2722 }
 0x360   : > { %v2788_v43 = vadd.f32 %v5654_v16, %v2723_v23 }
 0x362   : > { %vm2820_vm1 = vcmp.gt.f32.partialorder %v2788_v43, 0.0  ;;  %v2852_v14 = vmul.f32 0.2, %v2788_v43 }
 0x363   : > { %v2725_v41 = vpop.xlane.xlu0 %2724 }
 0x364   : > { %v2884_v19 = vsel %vm2820_vm1, %v2788_v43, %v2852_v14  ;;  %v2789_v39 = vadd.f32 %v5654_v16, %v2725_v41 }
 0x365   : > { %v2916_v26 = vsub.f32 0.0, %v2884_v19 }
 0x366   : > { %vm2821_vm2 = vcmp.gt.f32.partialorder %v2789_v39, 0.0  ;;  %v2853_v20 = vmul.f32 0.2, %v2789_v39 }
 0x367   : > { %v2948_v10 = vmin.f32 %v2916_v26, 80.0  ;;  %v2727_v54 = vpop.xlane.xlu1 %2726 }
 0x368   : > { %v2885_v18 = vsel %vm2821_vm2, %v2789_v39, %v2853_v20  ;;  %v2790_v56 = vadd.f32 %v5654_v16, %v2727_v54 }
 0x369   : > { %v2980_v29 = vmul.f32 1.442695, %v2948_v10  ;;  %v2917_v27 = vsub.f32 0.0, %v2885_v18 }
 0x36a   : > { %vm2822_vm3 = vcmp.gt.f32.partialorder %v2790_v56, 0.0  ;;  %v2854_v52 = vmul.f32 0.2, %v2790_v56 }
 0x36b   : > { %4292 = vpow2.f32 %v2980_v29  ;;  %v2949_v58 = vmin.f32 %v2917_v27, 80.0  ;;  %v2729_v36 = vpop.xlane.xlu1 %2728 }
 0x36c   : > { %v2886_v63 = vsel %vm2822_vm3, %v2790_v56, %v2854_v52  ;;  %v2791_v53 = vadd.f32 %v5654_v16, %v2729_v36 }
 0x36d   : > { %v2982_v1 = vmul.f32 1.442695, %v2949_v58  ;;  %v2918_v17 = vsub.f32 0.0, %v2886_v63 }
 0x36e   : > { %vm2823_vm4 = vcmp.gt.f32.partialorder %v2791_v53, 0.0  ;;  %v2855_v2 = vmul.f32 0.2, %v2791_v53 }
 0x36f   : > { %4294 = vpow2.f32 %v2982_v1  ;;  %v2950_v30 = vmin.f32 %v2918_v17, 80.0  ;;  %v2731_v47 = vpop.xlane.xlu0 %2730 }
 0x370   : > { %v2887_v48 = vsel %vm2823_vm4, %v2791_v53, %v2855_v2  ;;  %v2792_v42 = vadd.f32 %v5654_v16, %v2731_v47 }
 0x371   : > { %v2984_v59 = vmul.f32 1.442695, %v2950_v30  ;;  %v2919_v55 = vsub.f32 0.0, %v2887_v48  ;;  %v2733_v60 = vpop.xlane.xlu1 %2732 }
 0x372   : > { %vm2824_vm5 = vcmp.gt.f32.partialorder %v2792_v42, 0.0  ;;  %v2856_v40 = vmul.f32 0.2, %v2792_v42  ;;  %v2793_v51 = vadd.f32 %v5654_v16, %v2733_v60 }
 0x373   : > { %4296 = vpow2.f32 %v2984_v59  ;;  %v2951_v22 = vmin.f32 %v2919_v55, 80.0 }
 0x374   : > { %v2888_v9 = vsel %vm2824_vm5, %v2792_v42, %v2856_v40  ;;  %vm2825_vm6 = vcmp.gt.f32.partialorder %v2793_v51, 0.0  ;;  %v2857_v12 = vmul.f32 0.2, %v2793_v51 }
 0x375   : > { %v4293_v5 = vpop.eup %4292  ;;  %v2986_v4 = vmul.f32 1.442695, %v2951_v22  ;;  %v2920_v45 = vsub.f32 0.0, %v2888_v9 }
 0x376   : > { %v3044_v6 = vadd.f32 1.0, %v4293_v5  ;;  %v2889_v11 = vsel %vm2825_vm6, %v2793_v51, %v2857_v12 }
 0x377   : > { %4298 = vpow2.f32 %v2986_v4  ;;  %v2952_v62 = vmin.f32 %v2920_v45, 80.0  ;;  %v2921_v31 = vsub.f32 0.0, %v2889_v11  ;;  %v2735_v38 = vpop.xlane.xlu0 %2734 }
 0x378   : > { %4300 = vrcp.f32 %v3044_v6  ;;  %v2794_v21 = vadd.f32 %v5654_v16, %v2735_v38 }
 0x379   : > { %v4295_v3 = vpop.eup %4294  ;;  %v2988_v33 = vmul.f32 1.442695, %v2952_v62  ;;  %v2953_v46 = vmin.f32 %v2921_v31, 80.0  ;;  %v2737_v13 = vpop.xlane.xlu1 %2736 }
 0x37a   : > { %v3045_v8 = vadd.f32 1.0, %v4295_v3  ;;  %vm2826_vm7 = vcmp.gt.f32.partialorder %v2794_v21, 0.0  ;;  %v2858_v61 = vmul.f32 0.2, %v2794_v21  ;;  %v2795_v24 = vadd.f32 %v5654_v16, %v2737_v13 }
 0x37b   : > { %4302 = vpow2.f32 %v2988_v33  ;;  %v2990_v15 = vmul.f32 1.442695, %v2953_v46 }
 0x37c   : > { %4304 = vrcp.f32 %v3045_v8  ;;  %v2890_v44 = vsel %vm2826_vm7, %v2794_v21, %v2858_v61  ;;  %vm2827_vm8 = vcmp.gt.f32.partialorder %v2795_v24, 0.0  ;;  %v2859_v34 = vmul.f32 0.2, %v2795_v24 }
 0x37d   : > { %v4297_v28 = vpop.eup %4296  ;;  %4306 = vpow2.f32 %v2990_v15  ;;  %v2922_v49 = vsub.f32 0.0, %v2890_v44 }
 0x37e   : > { %v3046_v37 = vadd.f32 1.0, %v4297_v28  ;;  %v2891_v35 = vsel %vm2827_vm8, %v2795_v24, %v2859_v34 }
 0x37f   : > { %v2954_v50 = vmin.f32 %v2922_v49, 80.0  ;;  %v2923_v0 = vsub.f32 0.0, %v2891_v35  ;;  %v2739_v25 = vpop.xlane.xlu0 %2738 }
 0x380   : > { %4308 = vrcp.f32 %v3046_v37  ;;  %v2796_v57 = vadd.f32 %v5654_v16, %v2739_v25 }
 0x381   : > { %v4299_v32 = vpop.eup %4298  ;;  %v2992_v7 = vmul.f32 1.442695, %v2954_v50  ;;  %v2955_v23 = vmin.f32 %v2923_v0, 80.0  ;;  %v2741_v43 = vpop.xlane.xlu1 %2740 }
 0x382   : > { %v4301_v14 = vpop.eup %4300  ;;  %v3047_v41 = vadd.f32 1.0, %v4299_v32  ;;  %vm2828_vm10 = vcmp.gt.f32.partialorder %v2796_v57, 0.0  ;;  %v2860_v19 = vmul.f32 0.2, %v2796_v57  ;;  %v2797_v39 = vadd.f32 %v5654_v16, %v2741_v43 }
 0x383   : > { %3109 = vst.msk [vmem:[%s5667_s26] sm:$0xff] %vm3108_vm9, %v4301_v14  ;;  %4310 = vpow2.f32 %v2992_v7  ;;  %v2994_v26 = vmul.f32 1.442695, %v2955_v23 }
 0x384   : > { %4312 = vrcp.f32 %v3047_v41  ;;  %v2892_v20 = vsel %vm2828_vm10, %v2796_v57, %v2860_v19  ;;  %vm2829_vm11 = vcmp.gt.f32.partialorder %v2797_v39, 0.0  ;;  %v2861_v10 = vmul.f32 0.2, %v2797_v39 }
 0x385   : > { %v4303_v54 = vpop.eup %4302  ;;  %4314 = vpow2.f32 %v2994_v26  ;;  %v2924_v18 = vsub.f32 0.0, %v2892_v20 }
 0x386   : > { %v4305_v56 = vpop.eup %4304  ;;  %v3048_v29 = vadd.f32 1.0, %v4303_v54  ;;  %v2893_v27 = vsel %vm2829_vm11, %v2797_v39, %v2861_v10 }
 0x387   : > { %v4307_v52 = vpop.eup %4306  ;;  %3110 = vst.msk [vmem:[%s5667_s26 + $0x8] sm:$0xff] %vm3108_vm9, %v4305_v56  ;;  %v2956_v58 = vmin.f32 %v2924_v18, 80.0  ;;  %v2925_v36 = vsub.f32 0.0, %v2893_v27  ;;  %v2743_v63 = vpop.xlane.xlu0 %2742 }
 0x388   : > { %4316 = vrcp.f32 %v3048_v29  ;;  %v3049_v53 = vadd.f32 1.0, %v4307_v52  ;;  %v2798_v1 = vadd.f32 %v5654_v16, %v2743_v63 }
 0x389   : > { %v2996_v17 = vmul.f32 1.442695, %v2956_v58  ;;  %v2957_v2 = vmin.f32 %v2925_v36, 80.0  ;;  %v2745_v30 = vpop.xlane.xlu1 %2744 }
 0x38a   : > { %v4309_v47 = vpop.eup %4308  ;;  %4318 = vrcp.f32 %v3049_v53  ;;  %vm2830_vm12 = vcmp.gt.f32.partialorder %v2798_v1, 0.0  ;;  %v2862_v48 = vmul.f32 0.2, %v2798_v1  ;;  %v2799_v42 = vadd.f32 %v5654_v16, %v2745_v30 }
 0x38b   : > { %3111 = vst.msk [vmem:[%s5667_s26 + $0x10] sm:$0xff] %vm3108_vm9, %v4309_v47  ;;  %4320 = vpow2.f32 %v2996_v17  ;;  %v2998_v59 = vmul.f32 1.442695, %v2957_v2 }
 0x38c   : > { %v2894_v55 = vsel %vm2830_vm12, %v2798_v1, %v2862_v48  ;;  %vm2831_vm13 = vcmp.gt.f32.partialorder %v2799_v42, 0.0  ;;  %v2863_v60 = vmul.f32 0.2, %v2799_v42 }
 0x38d   : > { %v4311_v40 = vpop.eup %4310  ;;  %4322 = vpow2.f32 %v2998_v59  ;;  %v2926_v51 = vsub.f32 0.0, %v2894_v55 }
 0x38e   : > { %v4313_v22 = vpop.eup %4312  ;;  %v3050_v9 = vadd.f32 1.0, %v4311_v40  ;;  %v2895_v12 = vsel %vm2831_vm13, %v2799_v42, %v2863_v60 }
 0x38f   : > { %v4315_v5 = vpop.eup %4314  ;;  %3112 = vst.msk [vmem:[%s5667_s26 + $0x18] sm:$0xff] %vm3108_vm9, %v4313_v22  ;;  %v2958_v4 = vmin.f32 %v2926_v51, 80.0  ;;  %v2927_v45 = vsub.f32 0.0, %v2895_v12  ;;  %v2747_v6 = vpop.xlane.xlu0 %2746 }
 0x390   : > { %4324 = vrcp.f32 %v3050_v9  ;;  %v3051_v11 = vadd.f32 1.0, %v4315_v5  ;;  %v2800_v62 = vadd.f32 %v5654_v16, %v2747_v6 }
 0x391   : > { %v3000_v31 = vmul.f32 1.442695, %v2958_v4  ;;  %v2959_v38 = vmin.f32 %v2927_v45, 80.0  ;;  %v2749_v21 = vpop.xlane.xlu1 %2748 }
 0x392   : > { %v4317_v3 = vpop.eup %4316  ;;  %4326 = vrcp.f32 %v3051_v11  ;;  %vm2832_vm14 = vcmp.gt.f32.partialorder %v2800_v62, 0.0  ;;  %v2864_v33 = vmul.f32 0.2, %v2800_v62  ;;  %v2801_v46 = vadd.f32 %v5654_v16, %v2749_v21 }
 0x393   : > { %3113 = vst.msk [vmem:[%s5667_s26 + $0x20] sm:$0xff] %vm3108_vm9, %v4317_v3  ;;  %4328 = vpow2.f32 %v3000_v31  ;;  %v3002_v13 = vmul.f32 1.442695, %v2959_v38 }
 0x394   : > { %v4319_v8 = vpop.eup %4318  ;;  %v2896_v61 = vsel %vm2832_vm14, %v2800_v62, %v2864_v33  ;;  %vm2833_vm15 = vcmp.gt.f32.partialorder %v2801_v46, 0.0  ;;  %v2865_v24 = vmul.f32 0.2, %v2801_v46 }
 0x395   : > { %v4321_v15 = vpop.eup %4320  ;;  %3114 = vst.msk [vmem:[%s5667_s26 + $0x28] sm:$0xff] %vm3108_vm9, %v4319_v8  ;;  %4330 = vpow2.f32 %v3002_v13  ;;  %v2928_v44 = vsub.f32 0.0, %v2896_v61 }
 0x396   : > { %v3052_v34 = vadd.f32 1.0, %v4321_v15  ;;  %v2897_v28 = vsel %vm2833_vm15, %v2801_v46, %v2865_v24 }
 0x397   : > { %v4323_v49 = vpop.eup %4322  ;;  %v2960_v37 = vmin.f32 %v2928_v44, 80.0  ;;  %v2929_v35 = vsub.f32 0.0, %v2897_v28  ;;  %v2751_v50 = vpop.xlane.xlu0 %2750 }
 0x398   : > { %4332 = vrcp.f32 %v3052_v34  ;;  %v3053_v0 = vadd.f32 1.0, %v4323_v49  ;;  %v2802_v25 = vadd.f32 %v5654_v16, %v2751_v50 }
 0x399   : > { %v3004_v57 = vmul.f32 1.442695, %v2960_v37  ;;  %v2961_v32 = vmin.f32 %v2929_v35, 80.0  ;;  %v2753_v7 = vpop.xlane.xlu1 %2752 }
 0x39a   : > { %v4325_v23 = vpop.eup %4324  ;;  %4334 = vrcp.f32 %v3053_v0  ;;  %vm2834_vm0 = vcmp.gt.f32.partialorder %v2802_v25, 0.0  ;;  %v2866_v43 = vmul.f32 0.2, %v2802_v25  ;;  %v2803_v14 = vadd.f32 %v5654_v16, %v2753_v7 }
 0x39b   : > { %3115 = vst.msk [vmem:[%s5667_s26 + $0x30] sm:$0xff] %vm3108_vm9, %v4325_v23  ;;  %4336 = vpow2.f32 %v3004_v57  ;;  %v3006_v41 = vmul.f32 1.442695, %v2961_v32 }
 0x39c   : > { %v4327_v19 = vpop.eup %4326  ;;  %v2898_v39 = vsel %vm2834_vm0, %v2802_v25, %v2866_v43  ;;  %vm2835_vm1 = vcmp.gt.f32.partialorder %v2803_v14, 0.0  ;;  %v2867_v26 = vmul.f32 0.2, %v2803_v14 }
 0x39d   : > { %v4329_v20 = vpop.eup %4328  ;;  %3116 = vst.msk [vmem:[%s5667_s26 + $0x38] sm:$0xff] %vm3108_vm9, %v4327_v19  ;;  %4338 = vpow2.f32 %v3006_v41  ;;  %v2930_v10 = vsub.f32 0.0, %v2898_v39 }
 0x39e   : > { %v3054_v54 = vadd.f32 1.0, %v4329_v20  ;;  %v2899_v18 = vsel %vm2835_vm1, %v2803_v14, %v2867_v26 }
 0x39f   : > { %v4331_v56 = vpop.eup %4330  ;;  %v2962_v29 = vmin.f32 %v2930_v10, 80.0  ;;  %v2931_v27 = vsub.f32 0.0, %v2899_v18  ;;  %v2755_v52 = vpop.xlane.xlu0 %2754 }
 0x3a0   : > { %4340 = vrcp.f32 %v3054_v54  ;;  %v3055_v58 = vadd.f32 1.0, %v4331_v56  ;;  %v2804_v36 = vadd.f32 %v5654_v16, %v2755_v52 }
 0x3a1   : > { %v3008_v63 = vmul.f32 1.442695, %v2962_v29  ;;  %v2963_v53 = vmin.f32 %v2931_v27, 80.0  ;;  %v2757_v1 = vpop.xlane.xlu1 %2756 }
 0x3a2   : > { %v4333_v17 = vpop.eup %4332  ;;  %4342 = vrcp.f32 %v3055_v58  ;;  %vm2836_vm2 = vcmp.gt.f32.partialorder %v2804_v36, 0.0  ;;  %v2868_v2 = vmul.f32 0.2, %v2804_v36  ;;  %v2805_v30 = vadd.f32 %v5654_v16, %v2757_v1 }
 0x3a3   : > { %3117 = vst.msk [vmem:[%s5667_s26 + $0x40] sm:$0xff] %vm3108_vm9, %v4333_v17  ;;  %4344 = vpow2.f32 %v3008_v63  ;;  %v3010_v47 = vmul.f32 1.442695, %v2963_v53 }
 0x3a4   : > { %v4335_v48 = vpop.eup %4334  ;;  %v2900_v42 = vsel %vm2836_vm2, %v2804_v36, %v2868_v2  ;;  %vm2837_vm3 = vcmp.gt.f32.partialorder %v2805_v30, 0.0  ;;  %v2869_v59 = vmul.f32 0.2, %v2805_v30 }
 0x3a5   : > { %v4337_v55 = vpop.eup %4336  ;;  %3118 = vst.msk [vmem:[%s5667_s26 + $0x48] sm:$0xff] %vm3108_vm9, %v4335_v48  ;;  %4346 = vpow2.f32 %v3010_v47  ;;  %v2932_v60 = vsub.f32 0.0, %v2900_v42 }
 0x3a6   : > { %v3056_v40 = vadd.f32 1.0, %v4337_v55  ;;  %v2901_v51 = vsel %vm2837_vm3, %v2805_v30, %v2869_v59 }
 0x3a7   : > { %v4339_v22 = vpop.eup %4338  ;;  %v2964_v9 = vmin.f32 %v2932_v60, 80.0  ;;  %v2933_v12 = vsub.f32 0.0, %v2901_v51  ;;  %v2759_v5 = vpop.xlane.xlu0 %2758 }
 0x3a8   : > { %4348 = vrcp.f32 %v3056_v40  ;;  %v3057_v4 = vadd.f32 1.0, %v4339_v22  ;;  %v2806_v45 = vadd.f32 %v5654_v16, %v2759_v5 }
 0x3a9   : > { %v3012_v6 = vmul.f32 1.442695, %v2964_v9  ;;  %v2965_v11 = vmin.f32 %v2933_v12, 80.0  ;;  %v2761_v62 = vpop.xlane.xlu1 %2760 }
 0x3aa   : > { %v4341_v31 = vpop.eup %4340  ;;  %4350 = vrcp.f32 %v3057_v4  ;;  %vm2838_vm4 = vcmp.gt.f32.partialorder %v2806_v45, 0.0  ;;  %v2870_v38 = vmul.f32 0.2, %v2806_v45  ;;  %v2807_v21 = vadd.f32 %v5654_v16, %v2761_v62 }
 0x3ab   : > { %3119 = vst.msk [vmem:[%s5667_s26 + $0x50] sm:$0xff] %vm3108_vm9, %v4341_v31  ;;  %4352 = vpow2.f32 %v3012_v6  ;;  %v3014_v3 = vmul.f32 1.442695, %v2965_v11 }
 0x3ac   : > { %v4343_v33 = vpop.eup %4342  ;;  %v2902_v46 = vsel %vm2838_vm4, %v2806_v45, %v2870_v38  ;;  %vm2839_vm5 = vcmp.gt.f32.partialorder %v2807_v21, 0.0  ;;  %v2871_v13 = vmul.f32 0.2, %v2807_v21 }
 0x3ad   : > { %v4345_v8 = vpop.eup %4344  ;;  %3120 = vst.msk [vmem:[%s5667_s26 + $0x58] sm:$0xff] %vm3108_vm9, %v4343_v33  ;;  %4354 = vpow2.f32 %v3014_v3  ;;  %v2934_v61 = vsub.f32 0.0, %v2902_v46 }
 0x3ae   : > { %v3058_v24 = vadd.f32 1.0, %v4345_v8  ;;  %v2903_v15 = vsel %vm2839_vm5, %v2807_v21, %v2871_v13 }
 0x3af   : > { %v4347_v44 = vpop.eup %4346  ;;  %v2966_v34 = vmin.f32 %v2934_v61, 80.0  ;;  %v2935_v28 = vsub.f32 0.0, %v2903_v15  ;;  %v2763_v49 = vpop.xlane.xlu0 %2762 }
 0x3b0   : > { %4356 = vrcp.f32 %v3058_v24  ;;  %v3059_v37 = vadd.f32 1.0, %v4347_v44  ;;  %v2808_v35 = vadd.f32 %v5654_v16, %v2763_v49 }
 0x3b1   : > { %v3016_v50 = vmul.f32 1.442695, %v2966_v34  ;;  %v2967_v0 = vmin.f32 %v2935_v28, 80.0  ;;  %v2765_v25 = vpop.xlane.xlu1 %2764 }
 0x3b2   : > { %v4349_v57 = vpop.eup %4348  ;;  %4358 = vrcp.f32 %v3059_v37  ;;  %vm2840_vm6 = vcmp.gt.f32.partialorder %v2808_v35, 0.0  ;;  %v2872_v32 = vmul.f32 0.2, %v2808_v35  ;;  %v2809_v7 = vadd.f32 %v5654_v16, %v2765_v25 }
 0x3b3   : > { %3121 = vst.msk [vmem:[%s5667_s26 + $0x60] sm:$0xff] %vm3108_vm9, %v4349_v57  ;;  %4360 = vpow2.f32 %v3016_v50  ;;  %v3018_v23 = vmul.f32 1.442695, %v2967_v0 }
 0x3b4   : > { %v4351_v43 = vpop.eup %4350  ;;  %v2904_v14 = vsel %vm2840_vm6, %v2808_v35, %v2872_v32  ;;  %vm2841_vm7 = vcmp.gt.f32.partialorder %v2809_v7, 0.0  ;;  %v2873_v41 = vmul.f32 0.2, %v2809_v7 }
 0x3b5   : > { %v4353_v19 = vpop.eup %4352  ;;  %3122 = vst.msk [vmem:[%s5667_s26 + $0x68] sm:$0xff] %vm3108_vm9, %v4351_v43  ;;  %4362 = vpow2.f32 %v3018_v23  ;;  %v2936_v39 = vsub.f32 0.0, %v2904_v14 }
 0x3b6   : > { %v3060_v26 = vadd.f32 1.0, %v4353_v19  ;;  %v2905_v20 = vsel %vm2841_vm7, %v2809_v7, %v2873_v41 }
 0x3b7   : > { %v4355_v10 = vpop.eup %4354  ;;  %v2968_v54 = vmin.f32 %v2936_v39, 80.0  ;;  %v2937_v18 = vsub.f32 0.0, %v2905_v20  ;;  %v2767_v56 = vpop.xlane.xlu0 %2766 }
 0x3b8   : > { %4364 = vrcp.f32 %v3060_v26  ;;  %v3061_v29 = vadd.f32 1.0, %v4355_v10  ;;  %v2810_v27 = vadd.f32 %v5654_v16, %v2767_v56 }
 0x3b9   : > { %v3020_v52 = vmul.f32 1.442695, %v2968_v54  ;;  %v2969_v58 = vmin.f32 %v2937_v18, 80.0  ;;  %v2769_v36 = vpop.xlane.xlu1 %2768 }
 0x3ba   : > { %v4357_v63 = vpop.eup %4356  ;;  %4366 = vrcp.f32 %v3061_v29  ;;  %vm2842_vm8 = vcmp.gt.f32.partialorder %v2810_v27, 0.0  ;;  %v2874_v53 = vmul.f32 0.2, %v2810_v27  ;;  %v2811_v1 = vadd.f32 %v5654_v16, %v2769_v36 }
 0x3bb   : > { %3123 = vst.msk [vmem:[%s5667_s26 + $0x70] sm:$0xff] %vm3108_vm9, %v4357_v63  ;;  %4368 = vpow2.f32 %v3020_v52  ;;  %v3022_v17 = vmul.f32 1.442695, %v2969_v58 }
 0x3bc   : > { %v4359_v2 = vpop.eup %4358  ;;  %v2906_v30 = vsel %vm2842_vm8, %v2810_v27, %v2874_v53  ;;  %vm2843_vm10 = vcmp.gt.f32.partialorder %v2811_v1, 0.0  ;;  %v2875_v47 = vmul.f32 0.2, %v2811_v1 }
 0x3bd   : > { %v4361_v48 = vpop.eup %4360  ;;  %3124 = vst.msk [vmem:[%s5667_s26 + $0x78] sm:$0xff] %vm3108_vm9, %v4359_v2  ;;  %4370 = vpow2.f32 %v3022_v17  ;;  %v2938_v42 = vsub.f32 0.0, %v2906_v30 }
 0x3be   : > { %v3062_v59 = vadd.f32 1.0, %v4361_v48  ;;  %v2907_v55 = vsel %vm2843_vm10, %v2811_v1, %v2875_v47 }
 0x3bf   : > { %v4363_v60 = vpop.eup %4362  ;;  %v2970_v40 = vmin.f32 %v2938_v42, 80.0  ;;  %v2939_v51 = vsub.f32 0.0, %v2907_v55  ;;  %v2771_v22 = vpop.xlane.xlu0 %2770 }
 0x3c0   : > { %4372 = vrcp.f32 %v3062_v59  ;;  %v3063_v9 = vadd.f32 1.0, %v4363_v60  ;;  %v2812_v12 = vadd.f32 %v5654_v16, %v2771_v22 }
 0x3c1   : > { %v3024_v5 = vmul.f32 1.442695, %v2970_v40  ;;  %v2971_v4 = vmin.f32 %v2939_v51, 80.0  ;;  %v2773_v45 = vpop.xlane.xlu1 %2772 }
 0x3c2   : > { %v4365_v6 = vpop.eup %4364  ;;  %4374 = vrcp.f32 %v3063_v9  ;;  %vm2844_vm11 = vcmp.gt.f32.partialorder %v2812_v12, 0.0  ;;  %v2876_v11 = vmul.f32 0.2, %v2812_v12  ;;  %v2813_v62 = vadd.f32 %v5654_v16, %v2773_v45 }
 0x3c3   : > { %3125 = vst.msk [vmem:[%s5667_s26 + $0x80] sm:$0xff] %vm3108_vm9, %v4365_v6  ;;  %4376 = vpow2.f32 %v3024_v5  ;;  %v3026_v31 = vmul.f32 1.442695, %v2971_v4 }
 0x3c4   : > { %v4367_v38 = vpop.eup %4366  ;;  %v2908_v21 = vsel %vm2844_vm11, %v2812_v12, %v2876_v11  ;;  %vm2845_vm12 = vcmp.gt.f32.partialorder %v2813_v62, 0.0  ;;  %v2877_v3 = vmul.f32 0.2, %v2813_v62 }
 0x3c5   : > { %v4369_v33 = vpop.eup %4368  ;;  %3126 = vst.msk [vmem:[%s5667_s26 + $0x88] sm:$0xff] %vm3108_vm9, %v4367_v38  ;;  %4378 = vpow2.f32 %v3026_v31  ;;  %v2940_v46 = vsub.f32 0.0, %v2908_v21 }
 0x3c6   : > { %v3064_v13 = vadd.f32 1.0, %v4369_v33  ;;  %v2909_v8 = vsel %vm2845_vm12, %v2813_v62, %v2877_v3 }
 0x3c7   : > { %v4371_v61 = vpop.eup %4370  ;;  %v2972_v24 = vmin.f32 %v2940_v46, 80.0  ;;  %v2941_v15 = vsub.f32 0.0, %v2909_v8  ;;  %v2775_v44 = vpop.xlane.xlu0 %2774 }
 0x3c8   : > { %4380 = vrcp.f32 %v3064_v13  ;;  %v3065_v34 = vadd.f32 1.0, %v4371_v61  ;;  %v2814_v28 = vadd.f32 %v5654_v16, %v2775_v44 }
 0x3c9   : > { %v3028_v49 = vmul.f32 1.442695, %v2972_v24  ;;  %v2973_v37 = vmin.f32 %v2941_v15, 80.0  ;;  %v2777_v35 = vpop.xlane.xlu1 %2776 }
 0x3ca   : > { %v4373_v50 = vpop.eup %4372  ;;  %4382 = vrcp.f32 %v3065_v34  ;;  %vm2846_vm13 = vcmp.gt.f32.partialorder %v2814_v28, 0.0  ;;  %v2878_v0 = vmul.f32 0.2, %v2814_v28  ;;  %v2815_v25 = vadd.f32 %v5654_v16, %v2777_v35 }
 0x3cb   : > { %3127 = vst.msk [vmem:[%s5667_s26 + $0x90] sm:$0xff] %vm3108_vm9, %v4373_v50  ;;  %4384 = vpow2.f32 %v3028_v49  ;;  %v3030_v57 = vmul.f32 1.442695, %v2973_v37 }
 0x3cc   : > { %v4375_v32 = vpop.eup %4374  ;;  %v2910_v7 = vsel %vm2846_vm13, %v2814_v28, %v2878_v0  ;;  %vm2847_vm14 = vcmp.gt.f32.partialorder %v2815_v25, 0.0  ;;  %v2879_v23 = vmul.f32 0.2, %v2815_v25 }
 0x3cd   : > { %v4377_v43 = vpop.eup %4376  ;;  %3128 = vst.msk [vmem:[%s5667_s26 + $0x98] sm:$0xff] %vm3108_vm9, %v4375_v32  ;;  %4386 = vpow2.f32 %v3030_v57  ;;  %v2942_v14 = vsub.f32 0.0, %v2910_v7 }
 0x3ce   : > { %v3066_v41 = vadd.f32 1.0, %v4377_v43  ;;  %v2911_v19 = vsel %vm2847_vm14, %v2815_v25, %v2879_v23 }
 0x3cf   : > { %v4379_v39 = vpop.eup %4378  ;;  %v2974_v26 = vmin.f32 %v2942_v14, 80.0  ;;  %v2943_v20 = vsub.f32 0.0, %v2911_v19  ;;  %v2779_v10 = vpop.xlane.xlu0 %2778 }
 0x3d0   : > { %4388 = vrcp.f32 %v3066_v41  ;;  %v3067_v54 = vadd.f32 1.0, %v4379_v39  ;;  %v2816_v18 = vadd.f32 %v5654_v16, %v2779_v10 }
 0x3d1   : > { %v3032_v56 = vmul.f32 1.442695, %v2974_v26  ;;  %v2975_v29 = vmin.f32 %v2943_v20, 80.0  ;;  %v2781_v27 = vpop.xlane.xlu1 %2780 }
 0x3d2   : > { %v4381_v52 = vpop.eup %4380  ;;  %4390 = vrcp.f32 %v3067_v54  ;;  %vm2848_vm15 = vcmp.gt.f32.partialorder %v2816_v18, 0.0  ;;  %v2880_v58 = vmul.f32 0.2, %v2816_v18  ;;  %v2817_v36 = vadd.f32 %v5654_v16, %v2781_v27 }
 0x3d3   : > { %3129 = vst.msk [vmem:[%s5667_s26 + $0xa0] sm:$0xff] %vm3108_vm9, %v4381_v52  ;;  %4392 = vpow2.f32 %v3032_v56  ;;  %v3034_v63 = vmul.f32 1.442695, %v2975_v29 }
 0x3d4   : > { %v4383_v53 = vpop.eup %4382  ;;  %v2912_v1 = vsel %vm2848_vm15, %v2816_v18, %v2880_v58  ;;  %vm2849_vm0 = vcmp.gt.f32.partialorder %v2817_v36, 0.0  ;;  %v2881_v17 = vmul.f32 0.2, %v2817_v36 }
 0x3d5   : > { %v4385_v2 = vpop.eup %4384  ;;  %3130 = vst.msk [vmem:[%s5667_s26 + $0xa8] sm:$0xff] %vm3108_vm9, %v4383_v53  ;;  %4394 = vpow2.f32 %v3034_v63  ;;  %v2944_v30 = vsub.f32 0.0, %v2912_v1 }
 0x3d6   : > { %v3068_v47 = vadd.f32 1.0, %v4385_v2  ;;  %v2913_v48 = vsel %vm2849_vm0, %v2817_v36, %v2881_v17 }
 0x3d7   : > { %v4387_v42 = vpop.eup %4386  ;;  %v2976_v59 = vmin.f32 %v2944_v30, 80.0  ;;  %v2945_v55 = vsub.f32 0.0, %v2913_v48  ;;  %v2783_v60 = vpop.xlane.xlu0 %2782 }
 0x3d8   : > { %4396 = vrcp.f32 %v3068_v47  ;;  %v3069_v40 = vadd.f32 1.0, %v4387_v42  ;;  %v2818_v51 = vadd.f32 %v5654_v16, %v2783_v60 }
 0x3d9   : > { %v3036_v22 = vmul.f32 1.442695, %v2976_v59  ;;  %v2977_v9 = vmin.f32 %v2945_v55, 80.0  ;;  %v2785_v12 = vpop.xlane.xlu1 %2784 }
 0x3da   : > { %v4389_v5 = vpop.eup %4388  ;;  %4398 = vrcp.f32 %v3069_v40  ;;  %vm2850_vm1 = vcmp.gt.f32.partialorder %v2818_v51, 0.0  ;;  %v2882_v4 = vmul.f32 0.2, %v2818_v51  ;;  %v2819_v45 = vadd.f32 %v5654_v16, %v2785_v12 }
 0x3db   : > { %3131 = vst.msk [vmem:[%s5667_s26 + $0xb0] sm:$0xff] %vm3108_vm9, %v4389_v5  ;;  %4400 = vpow2.f32 %v3036_v22  ;;  %v3038_v6 = vmul.f32 1.442695, %v2977_v9 }
 0x3dc   : > { %v4391_v11 = vpop.eup %4390  ;;  %v2914_v62 = vsel %vm2850_vm1, %v2818_v51, %v2882_v4  ;;  %vm2851_vm2 = vcmp.gt.f32.partialorder %v2819_v45, 0.0  ;;  %v2883_v31 = vmul.f32 0.2, %v2819_v45 }
 0x3dd   : > { %v4393_v38 = vpop.eup %4392  ;;  %3132 = vst.msk [vmem:[%s5667_s26 + $0xb8] sm:$0xff] %vm3108_vm9, %v4391_v11  ;;  %4402 = vpow2.f32 %v3038_v6  ;;  %v2946_v21 = vsub.f32 0.0, %v2914_v62 }
 0x3de   : > { %v3070_v3 = vadd.f32 1.0, %v4393_v38  ;;  %v2915_v33 = vsel %vm2851_vm2, %v2819_v45, %v2883_v31 }
 0x3df   : > { %v4395_v46 = vpop.eup %4394  ;;  %v2978_v13 = vmin.f32 %v2946_v21, 80.0  ;;  %v2947_v16 = vsub.f32 0.0, %v2915_v33 }
 0x3e0   : > { %4404 = vrcp.f32 %v3070_v3  ;;  %v3071_v8 = vadd.f32 1.0, %v4395_v46 }
 0x3e1   : > { %v3040_v61 = vmul.f32 1.442695, %v2978_v13  ;;  %v2979_v24 = vmin.f32 %v2947_v16, 80.0 }
 0x3e2   : > { %v4397_v15 = vpop.eup %4396  ;;  %4406 = vrcp.f32 %v3071_v8 }
 0x3e3   : > { %3133 = vst.msk [vmem:[%s5667_s26 + $0xc0] sm:$0xff] %vm3108_vm9, %v4397_v15  ;;  %4408 = vpow2.f32 %v3040_v61  ;;  %v3042_v44 = vmul.f32 1.442695, %v2979_v24 }
 0x3e4   : > { %v4399_v34 = vpop.eup %4398 }
 0x3e5   : > { %v4401_v28 = vpop.eup %4400  ;;  %3134 = vst.msk [vmem:[%s5667_s26 + $0xc8] sm:$0xff] %vm3108_vm9, %v4399_v34  ;;  %4410 = vpow2.f32 %v3042_v44 }
 0x3e6   : > { %v3072_v49 = vadd.f32 1.0, %v4401_v28 }
 0x3e7   : > { %v4403_v37 = vpop.eup %4402 }
 0x3e8   : > { %4412 = vrcp.f32 %v3072_v49  ;;  %v3073_v35 = vadd.f32 1.0, %v4403_v37 }
 0x3ea   : > { %v4405_v50 = vpop.eup %4404  ;;  %4414 = vrcp.f32 %v3073_v35 }
 0x3eb   : > { %3135 = vst.msk [vmem:[%s5667_s26 + $0xd0] sm:$0xff] %vm3108_vm9, %v4405_v50 }
 0x3ec   : > { %v4407_v0 = vpop.eup %4406 }
 0x3ed   : > { %v4409_v25 = vpop.eup %4408  ;;  %3136 = vst.msk [vmem:[%s5667_s26 + $0xd8] sm:$0xff] %vm3108_vm9, %v4407_v0 }
 0x3ee   : > { %v3074_v57 = vadd.f32 1.0, %v4409_v25 }
 0x3ef   : > { %v4411_v32 = vpop.eup %4410 }
 0x3f0   : > { %4416 = vrcp.f32 %v3074_v57  ;;  %v3075_v7 = vadd.f32 1.0, %v4411_v32 }
 0x3f2   : > { %v4413_v23 = vpop.eup %4412  ;;  %4418 = vrcp.f32 %v3075_v7 }
 0x3f3   : > { %3137 = vst.msk [vmem:[%s5667_s26 + $0xe0] sm:$0xff] %vm3108_vm9, %v4413_v23 }
 0x3f4   : > { %v4415_v43 = vpop.eup %4414 }
 0x3f5   : > { %3138 = vst.msk [vmem:[%s5667_s26 + $0xe8] sm:$0xff] %vm3108_vm9, %v4415_v43 }
 0x3f7   : > { %3147 = sbr.rel (!%p4577_p4) target bundleno = 1078 (0x436), region = 52 }
 0x3fa   : > { %v4417_v14 = vpop.eup %4416 }
 0x3fb   : > { %3139 = vst.msk [vmem:[%s5667_s26 + $0xf0] sm:$0xff] %vm3108_vm9, %v4417_v14 }
 0x3fc   : > { %v4419_v41 = vpop.eup %4418 }
 0x3fd   : > { %3140 = vst.msk [vmem:[%s5667_s26 + $0xf8] sm:$0xff] %vm3108_vm9, %v4419_v41 }
 0x3fe   : > { %s5940_s8 = smov (!%p3150_p8, %s3149_s8), 32 }
 0x3ff   : > { %s3621_s15 = sshll.u32 %s5940_s8, 7 }
 0x400   : > { %p3624_p9 = scmp.eq.s32.totalorder %s3621_s15, 0 }
 0x401   : > { %s5768_s16 = sshrl.u32 (!%p3624_p9), %s5940_s8, 5 }
 0x402   : > { %3158 = sbr.rel (%p3624_p9) target bundleno = 1078 (0x436), region = 56  ;;  %p3625_p10 = scmp.le.s32.totalorder (!%p3624_p9), %s5768_s16, 0 }
 0x409   : > { %3436 = sbr.rel (%p3625_p10) target bundleno = 1057 (0x421), region = 132  ;;  %s5931_s6 = smov (!%p3625_p10), %s5762_s14 }
 0x40a   : > { %s5932_s10 = smov (!%p3625_p10), %s5667_s26  ;;  %s5777_s21 = smov (!%p3625_p10), 0  }
 0x40b   : > { %s5779_s17 = smov (!%p3625_p10), 0  }
 0x410 LB: >> { %v3282_v19 = vld [vmem:[%s4482_s10] sm:$0xff]  ;;  %v3284_v39 = vld [vmem:[%s4482_s10 + $0x8] sm:$0xff]  ;;  %v3286_v26 = vld [vmem:[%s4482_s10 + $0x10] sm:$0xff]  ;;  %s3346_s25 = sadd.s32 1, %s4486_s21  ;;  %s3276_s17 = sadd.s32 1, %s4490_s17   ;;  %s4490_s17 = sphi %s5779_s17, %s3276_s17   ;;  %s4486_s21 = sphi %s5777_s21, %s5935_s21   ;;  %s4482_s10 = sphi %s5932_s10, %s5934_s10   ;;  %s4478_s6 = sphi %s5931_s6, %s5933_s6  }
 0x411   : >> { %3283 = vst [vmem:[%s4478_s6] sm:$0xff] %v3282_v19  ;;  %3285 = vst [vmem:[%s4478_s6 + $0x8] sm:$0xff] %v3284_v39  ;;  %v3288_v20 = vld [vmem:[%s4482_s10 + $0x18] sm:$0xff]  ;;  %v3290_v10 = vld [vmem:[%s4482_s10 + $0x20] sm:$0xff]  ;;  %p3347_p11 = scmp.ge.s32.totalorder %s3346_s25, %s5768_s16  ;;  %p3275_p12 = scmp.ge.s32.totalorder %s3276_s17, %s5768_s16 }
 0x412   : >> { %3287 = vst [vmem:[%s4478_s6 + $0x10] sm:$0xff] %v3286_v26  ;;  %v3292_v54 = vld [vmem:[%s4482_s10 + $0x28] sm:$0xff]  ;;  %3289 = vst [vmem:[%s4478_s6 + $0x18] sm:$0xff] %v3288_v20  ;;  %v3294_v18 = vld [vmem:[%s4482_s10 + $0x30] sm:$0xff] }
 0x413   : >> { %3291 = vst [vmem:[%s4478_s6 + $0x20] sm:$0xff] %v3290_v10  ;;  %3293 = vst [vmem:[%s4478_s6 + $0x28] sm:$0xff] %v3292_v54  ;;  %v3296_v56 = vld [vmem:[%s4482_s10 + $0x38] sm:$0xff]  ;;  %v3298_v29 = vld [vmem:[%s4482_s10 + $0x40] sm:$0xff]  ;;  %s5942_s25 = smov (%p3347_p11, %s3346_s25), 0 }
 0x414   : >> { %3295 = vst [vmem:[%s4478_s6 + $0x30] sm:$0xff] %v3294_v18  ;;  %3297 = vst [vmem:[%s4478_s6 + $0x38] sm:$0xff] %v3296_v56  ;;  %v3300_v27 = vld [vmem:[%s4482_s10 + $0x48] sm:$0xff]  ;;  %v3302_v52 = vld [vmem:[%s4482_s10 + $0x50] sm:$0xff]  ;;  %s3626_s18 = sshll.u32 %s5942_s25, 8  ;;  %s5935_s21 = smov %s5942_s25 }
 0x415   : >> { %3299 = vst [vmem:[%s4478_s6 + $0x40] sm:$0xff] %v3298_v29  ;;  %v3304_v58 = vld [vmem:[%s4482_s10 + $0x58] sm:$0xff]  ;;  %3301 = vst [vmem:[%s4478_s6 + $0x48] sm:$0xff] %v3300_v27  ;;  %v3306_v36 = vld [vmem:[%s4482_s10 + $0x60] sm:$0xff]  ;;  %s5835_s19 = scalar_lea.vmem %s5667_s26, %s3626_s18 [#allocation3]   ;;  %s3352_s20 = scalar_lea.vmem %s5762_s14, %s3626_s18  }
 0x416   : >> { %3303 = vst [vmem:[%s4478_s6 + $0x50] sm:$0xff] %v3302_v52  ;;  %3305 = vst [vmem:[%s4478_s6 + $0x58] sm:$0xff] %v3304_v58  ;;  %v3308_v63 = vld [vmem:[%s4482_s10 + $0x68] sm:$0xff]  ;;  %v3310_v53 = vld [vmem:[%s4482_s10 + $0x70] sm:$0xff] }
 0x417   : >> { %3307 = vst [vmem:[%s4478_s6 + $0x60] sm:$0xff] %v3306_v36  ;;  %3309 = vst [vmem:[%s4478_s6 + $0x68] sm:$0xff] %v3308_v63  ;;  %v3312_v1 = vld [vmem:[%s4482_s10 + $0x78] sm:$0xff]  ;;  %v3314_v17 = vld [vmem:[%s4482_s10 + $0x80] sm:$0xff] }
 0x418   : >> { %3311 = vst [vmem:[%s4478_s6 + $0x70] sm:$0xff] %v3310_v53  ;;  %v3316_v2 = vld [vmem:[%s4482_s10 + $0x88] sm:$0xff]  ;;  %3313 = vst [vmem:[%s4478_s6 + $0x78] sm:$0xff] %v3312_v1  ;;  %v3318_v30 = vld [vmem:[%s4482_s10 + $0x90] sm:$0xff] }
 0x419   : >> { %3315 = vst [vmem:[%s4478_s6 + $0x80] sm:$0xff] %v3314_v17  ;;  %3317 = vst [vmem:[%s4478_s6 + $0x88] sm:$0xff] %v3316_v2  ;;  %v3320_v47 = vld [vmem:[%s4482_s10 + $0x98] sm:$0xff]  ;;  %v3322_v48 = vld [vmem:[%s4482_s10 + $0xa0] sm:$0xff] }
 0x41a   : >> { %3319 = vst [vmem:[%s4478_s6 + $0x90] sm:$0xff] %v3318_v30  ;;  %3321 = vst [vmem:[%s4478_s6 + $0x98] sm:$0xff] %v3320_v47  ;;  %v3324_v42 = vld [vmem:[%s4482_s10 + $0xa8] sm:$0xff]  ;;  %v3326_v59 = vld [vmem:[%s4482_s10 + $0xb0] sm:$0xff]  ;;  %3278 = sbr.rel (!%p3275_p12) target bundleno = 1040 (0x410), region = 138 }
 0x41b   : >> { %3323 = vst [vmem:[%s4478_s6 + $0xa0] sm:$0xff] %v3322_v48  ;;  %v3328_v55 = vld [vmem:[%s4482_s10 + $0xb8] sm:$0xff]  ;;  %3325 = vst [vmem:[%s4478_s6 + $0xa8] sm:$0xff] %v3324_v42  ;;  %v3330_v60 = vld [vmem:[%s4482_s10 + $0xc0] sm:$0xff] }
 0x41c   : >> { %3327 = vst [vmem:[%s4478_s6 + $0xb0] sm:$0xff] %v3326_v59  ;;  %3329 = vst [vmem:[%s4478_s6 + $0xb8] sm:$0xff] %v3328_v55  ;;  %v3332_v40 = vld [vmem:[%s4482_s10 + $0xc8] sm:$0xff]  ;;  %v3334_v51 = vld [vmem:[%s4482_s10 + $0xd0] sm:$0xff] }
 0x41d   : >> { %3331 = vst [vmem:[%s4478_s6 + $0xc0] sm:$0xff] %v3330_v60  ;;  %3333 = vst [vmem:[%s4478_s6 + $0xc8] sm:$0xff] %v3332_v40  ;;  %v3336_v22 = vld [vmem:[%s4482_s10 + $0xd8] sm:$0xff]  ;;  %v3338_v9 = vld [vmem:[%s4482_s10 + $0xe0] sm:$0xff] }
 0x41e   : >> { %3335 = vst [vmem:[%s4478_s6 + $0xd0] sm:$0xff] %v3334_v51  ;;  %v3340_v12 = vld [vmem:[%s4482_s10 + $0xe8] sm:$0xff]  ;;  %3337 = vst [vmem:[%s4478_s6 + $0xd8] sm:$0xff] %v3336_v22  ;;  %v3342_v5 = vld [vmem:[%s4482_s10 + $0xf0] sm:$0xff] }
 0x41f   : >> { %3339 = vst [vmem:[%s4478_s6 + $0xe0] sm:$0xff] %v3338_v9  ;;  %3341 = vst [vmem:[%s4478_s6 + $0xe8] sm:$0xff] %v3340_v12  ;;  %v3344_v4 = vld [vmem:[%s4482_s10 + $0xf8] sm:$0xff]  ;;  %s5934_s10 = smov %s5835_s19 }
 0x420   : >> { %3343 = vst [vmem:[%s4478_s6 + $0xf0] sm:$0xff] %v3342_v5  ;;  %3345 = vst [vmem:[%s4478_s6 + $0xf8] sm:$0xff] %v3344_v4  ;;  %s5933_s6 = smov %s3352_s20 }
 0x421 PF: > { %s5876_s22 = sand.u32 31, %s5940_s8   ;;  %s3637_s23 = sshll.u32 %s5768_s16, 8 }
 0x422   : > { %s3357_s24 = scalar_lea.vmem %s5667_s26, %s3637_s23 [#allocation3]   ;;  %s3359_s28 = scalar_lea.vmem %s5762_s14, %s3637_s23  }
 0x423   : > { %p3631_p13 = scmp.le.s32.totalorder %s5876_s22, 0 }
 0x424   : > { %s4492_s30 = smov (!%p3631_p13), %s3359_s28   ;;  %s4496_s11 = smov (!%p3631_p13), %s3357_s24  }
 0x425   : > { %3450 = sbr.rel (%p3631_p13) target bundleno = 1078 (0x436), region = 143  ;;  %s4500_s12 = smov (!%p3631_p13), 0  }
 0x426   : > { %s4504_s13 = smov (!%p3631_p13), 0  }
 0x42c LB: >> { %v3369_v45 = vld [vmem:[%s4498_s11] sm:$0xff]  ;;  %s3371_s8 = sadd.s32 1, %s4502_s12  ;;  %s3363_s13 = sadd.s32 1, %s4506_s13   ;;  %s4506_s13 = sphi %s4504_s13, %s3363_s13   ;;  %s4502_s12 = sphi %s4500_s12, %s4501_s12   ;;  %s4498_s11 = sphi %s4496_s11, %s3376_s11   ;;  %s4494_s30 = sphi %s4492_s30, %s3377_s30  }
 0x42d   : >> { %3370 = vst [vmem:[%s4494_s30] sm:$0xff] %v3369_v45  ;;  %p3372_p0 = scmp.ge.s32.totalorder %s3371_s8, %s5876_s22  ;;  %p3362_p1 = scmp.ge.s32.totalorder %s3363_s13, %s5876_s22 }
 0x42f   : >> { %s5944_s8 = smov (%p3372_p0, %s3371_s8), 0  ;;  %3365 = sbr.rel (!%p3362_p1) target bundleno = 1068 (0x42c), region = 149 }
 0x430   : >> { %s3632_s26 = sshll.u32 %s5944_s8, 3  ;;  %s4501_s12 = smov %s5944_s8  }
 0x431   : >> { %s3376_s11 = scalar_lea.vmem %s3357_s24, %s3632_s26 [#allocation3]   ;;  %s3377_s30 = scalar_lea.vmem %s3359_s28, %s3632_s26  }
 0x436 PF: > { %p15_p2 = scmp.ge.s32.totalorder %s4567_s29, 4   ;;  %s5936_s26 = smov %s4470_s27 }
 0x437   : > { %s5937_s27 = smov %s4575_s9  ;;  %s5938_s28 = smov %s4567_s29 }
 0x438   :  { %17 = sbr.rel (!%p15_p2) target bundleno = 4 (0x4), region = 160 }

</bundles_post_ra>
